<compile_context>
chip_gen: v7x
topology: tpu7x:2x2x1
jax: 0.10.0
libtpu: 0.0.40
codegen_flags: <defaults>
</compile_context>

<pallas_src>
from functools import partial

import numpy as np
import jax
import jax.numpy as jnp
from jax.experimental import pallas as pl
from jax.experimental.pallas import tpu as pltpu

# ----- hyperparameters (hp.*) ----------------------------------------------
VOCAB_SIZE = 16      # hp.vocab_size
EMBED_DIM = 32       # hp.embedding_dim
HIDDEN_DIM = 32      # hp.hidden_dim (== embedding_dim for the forward to type-check)
TARGET_DIM = 8       # hp.target_dim
MAX_LEN = 16         # hp.max_len
SEQ_LEN = 16
BATCH = 2
KSIZE = 7
PAD = 3
N_LAYERS = 4
PE = True            # hp.pe

# ----- kernel-internal layout constants -------------------------------------
ZHALO = 8            # zero-halo block rows (multiple of 8 -> tile-aligned sublane concat)
TPAD = 128           # lane-dense regression-head output width (sliced to T outside)


# ----- Pallas kernel ---------------------------------------------------------


def conv_regress_kernel(x_ref, wcat_ref, bcat_ref, wr_ref, br_ref, o_ref):
    # x_ref:    (nb, L, E) f32 embedded input for this grid step
    # wcat_ref: (N_LAYERS, KSIZE*E, 2E) f32 packed conv weights ([a | b] GLU halves)
    # bcat_ref: (N_LAYERS, 1, 2E)       f32 packed conv biases
    # wr_ref:   (E, TPAD) f32 regression weights (lane-padded); br_ref: (1, TPAD)
    # o_ref:    (nb, L, TPAD) f32
    nb, seq, emb = x_ref.shape
    rows = nb * seq

    x = x_ref[...]                                            # (nb, L, E) f32

    # 8-row zero halo blocks: the sublane concat below stays tile-aligned.
    halo = jnp.zeros((nb, ZHALO, emb), jnp.float32)

    for layer in range(N_LAYERS):
        # Conv "same" padding, entirely in registers: (nb, L + 2*ZHALO, E).
        xp = jnp.concatenate([halo, x, halo], axis=1)
        # In-register im2col: tap k of the k=7 / pad=3 conv is the static
        # window [ZHALO - PAD + k, ... + L); concat along lanes -> (nb, L, 7E).
        taps = [xp[:, ZHALO - PAD + k: ZHALO - PAD + k + seq, :]
                for k in range(KSIZE)]
        xcat = jnp.concatenate(taps, axis=-1).reshape(rows, KSIZE * emb)
        # One fused MXU matmul per layer: (rows, 224) @ (224, 2E), full f32.
        conv = jnp.dot(xcat, wcat_ref[layer],
                       precision=jax.lax.Precision.HIGHEST,
                       preferred_element_type=jnp.float32)    # (rows, 2E)
        conv = (conv + bcat_ref[layer]).reshape(nb, seq, 2 * emb)
        # GLU-style residual gate on the VPU/EUP: out = out + a * sigmoid(b).
        x = x + conv[..., :emb] * jax.nn.sigmoid(conv[..., emb:])

    # Regression head: Linear(hidden_dim -> TPAD lane-padded) + Sigmoid.
    y = jnp.dot(x.reshape(rows, emb), wr_ref[...],
                precision=jax.lax.Precision.HIGHEST,
                preferred_element_type=jnp.float32) + br_ref[...]
    o_ref[...] = jax.nn.sigmoid(y).reshape(nb, seq, TPAD)


# ----- wrapper ----------------------------------------------------------------


def pack_conv_regression_params(wa, wb, ba, bb, wr, br):
    # Pack once (hoisted out of the per-call path).
    # wa/wb: (N_LAYERS, KSIZE, E, E) -> wcat: (N_LAYERS, KSIZE*E, 2E) where row
    # k*E + e holds tap k / input channel e for the [a | b] output halves.
    n_layers, ksize, e_in, e_out = wa.shape
    t = wr.shape[1]
    wcat = jnp.concatenate([wa, wb], axis=-1).reshape(
        n_layers, ksize * e_in, 2 * e_out).astype(jnp.float32)
    bcat = jnp.concatenate([ba, bb], axis=-1).astype(jnp.float32)   # (N_LAYERS, 1, 2E)
    wr_p = jnp.zeros((wr.shape[0], TPAD), jnp.float32).at[:, :t].set(wr)
    br_p = jnp.zeros((1, TPAD), jnp.float32).at[:, :t].set(br)
    return wcat, bcat, wr_p, br_p


@partial(jax.jit, static_argnames=("target_dim", "batch_per_step"))
def conv_regression_pallas(x_emb, wcat, bcat, wr_p, br_p, *, target_dim,
                           batch_per_step=None):
    B, L, E = x_emb.shape
    # Default: whole batch in a single grid step (no per-step overhead, weights
    # DMA'd once).  On v7x, only pass batch_per_step < B once a step would
    # still carry >= 128 rows (>= 8 batch elements) so the MXU M dim is filled.
    nb = B if batch_per_step is None else batch_per_step
    assert B % nb == 0 and L % 8 == 0

    out = pl.pallas_call(
        conv_regress_kernel,
        out_shape=jax.ShapeDtypeStruct((B, L, TPAD), jnp.float32),
        grid=(B // nb,),
        in_specs=[
            pl.BlockSpec((nb, L, E), lambda i: (i, 0, 0)),
            # constant index maps -> weights are DMA'd once, not per grid step
            pl.BlockSpec(wcat.shape, lambda i: (0, 0, 0)),
            pl.BlockSpec(bcat.shape, lambda i: (0, 0, 0)),
            pl.BlockSpec(wr_p.shape, lambda i: (0, 0)),
            pl.BlockSpec(br_p.shape, lambda i: (0, 0)),
        ],
        out_specs=pl.BlockSpec((nb, L, TPAD), lambda i: (i, 0, 0)),
        compiler_params=pltpu.CompilerParams(dimension_semantics=("parallel",)),
    )(x_emb, wcat, bcat, wr_p, br_p)
    return out[:, :, :target_dim]


# ----- glue: embeddings & positional table ----------------------------------


def embed_position_table(position_len, embed_dim, padding_index=0):
    pos = np.arange(position_len)[:, None].astype(np.float64)
    i = np.arange(embed_dim)[None, :]
    angle = pos / np.power(10000.0, 2 * (i // 2) / embed_dim)
    table = np.zeros((position_len, embed_dim))
    table[:, 0::2] = np.sin(angle[:, 0::2])
    table[:, 1::2] = np.cos(angle[:, 1::2])
    if padding_index is not None:
        table[padding_index] = 0
    return jnp.asarray(table, jnp.float32)


def reference_forward(x_emb, wa, wb, ba, bb, wr, br):
    # pure-JAX f32 reference (same math, no Pallas) for the correctness check
    hi = jax.lax.Precision.HIGHEST
    x = x_emb.astype(jnp.float32)
    B, L, E = x.shape
    for layer in range(N_LAYERS):
        xp = jnp.pad(x, ((0, 0), (PAD, PAD), (0, 0)))
        acc_a = jnp.broadcast_to(ba[layer], (B, L, E))
        acc_b = jnp.broadcast_to(bb[layer], (B, L, E))
        for k in range(KSIZE):
            xk = xp[:, k:k + L]
            acc_a = acc_a + jnp.einsum("ble,ef->blf", xk, wa[layer, k], precision=hi)
            acc_b = acc_b + jnp.einsum("ble,ef->blf", xk, wb[layer, k], precision=hi)
        x = x + acc_a * jax.nn.sigmoid(acc_b)
    y = jnp.einsum("ble,et->blt", x, wr, precision=hi) + br
    return jax.nn.sigmoid(y)


if __name__ == "__main__":
    key = jax.random.PRNGKey(0)
    (k_emb, k_data, k_wa, k_wb, k_ba, k_bb, k_wr, k_br) = jax.random.split(key, 8)

    # deterministic "parameters"
    embed_table = jax.random.normal(k_emb, (VOCAB_SIZE, EMBED_DIM), jnp.float32)
    pos_table = embed_position_table(MAX_LEN + 1, EMBED_DIM, padding_index=0)

    conv_scale = 1.0 / np.sqrt(EMBED_DIM * KSIZE)
    wa = jax.random.normal(k_wa, (N_LAYERS, KSIZE, EMBED_DIM, EMBED_DIM), jnp.float32) * conv_scale
    wb = jax.random.normal(k_wb, (N_LAYERS, KSIZE, EMBED_DIM, EMBED_DIM), jnp.float32) * conv_scale
    ba = jax.random.normal(k_ba, (N_LAYERS, 1, EMBED_DIM), jnp.float32) * conv_scale
    bb = jax.random.normal(k_bb, (N_LAYERS, 1, EMBED_DIM), jnp.float32) * conv_scale
    wr = jax.random.normal(k_wr, (HIDDEN_DIM, TARGET_DIM), jnp.float32) * (1.0 / np.sqrt(HIDDEN_DIM))
    br = jax.random.normal(k_br, (1, TARGET_DIM), jnp.float32) * 0.1

    # input tokens + (hp.pe) positional-encoding lookup (1-based positions, 0 = pad)
    # TODO(synk): embedding / positional gathers stay in JAX (gather glue, not kernel work).
    data = jax.random.randint(k_data, (BATCH, SEQ_LEN), 0, VOCAB_SIZE)
    x_emb = embed_table[data]                                    # (B, L, E)
    if PE:
        position = jnp.arange(1, SEQ_LEN + 1)
        x_emb = x_emb + pos_table[position][None, :, :]

    # weight packing done once, outside the jitted forward
    wcat, bcat, wr_p, br_p = pack_conv_regression_params(wa, wb, ba, bb, wr, br)

    out = conv_regression_pallas(x_emb, wcat, bcat, wr_p, br_p, target_dim=TARGET_DIM)
    out = jax.block_until_ready(out)

    ref = reference_forward(x_emb, wa, wb, ba, bb, wr, br)
    # full-f32 kernel path -> tolerance tightened vs the previous bf16 version
    np.testing.assert_allclose(np.asarray(out), np.asarray(ref), rtol=1e-3, atol=1e-3)
    assert out.shape == (BATCH, SEQ_LEN, TARGET_DIM)

    print("KERNEL_OK")
</pallas_src>

<mosaic_0001>
module attributes {stable_mosaic.version = 11 : i64} {
  func.func @conv_regress_kernel(%arg0: i32, %arg1: memref<2x16x32xf32, #tpu.memory_space<vmem>>, %arg2: memref<4x224x64xf32, #tpu.memory_space<vmem>>, %arg3: memref<4x1x64xf32, #tpu.memory_space<vmem>>, %arg4: memref<32x128xf32, #tpu.memory_space<vmem>>, %arg5: memref<1x128xf32, #tpu.memory_space<vmem>>, %arg6: memref<2x16x128xf32, #tpu.memory_space<vmem>>) attributes {dimension_semantics = [#tpu.dimension_semantics<parallel>], iteration_bounds = array<i64: 1>, scalar_prefetch = 0 : i64, scratch_operands = 0 : i64, tpu.core_type = #tpu.core_type<tc>, window_params = [{transform_indices = @transform_0, window_bounds = array<i64: 2, 16, 32>}, {pipeline_mode = #tpu.pipeline_mode<synchronous>, transform_indices = @transform_1, window_bounds = array<i64: 4, 224, 64>}, {pipeline_mode = #tpu.pipeline_mode<synchronous>, transform_indices = @transform_2, window_bounds = array<i64: 4, 1, 64>}, {pipeline_mode = #tpu.pipeline_mode<synchronous>, transform_indices = @transform_3, window_bounds = array<i64: 32, 128>}, {pipeline_mode = #tpu.pipeline_mode<synchronous>, transform_indices = @transform_4, window_bounds = array<i64: 1, 128>}, {transform_indices = @transform_5, window_bounds = array<i64: 2, 16, 128>}]} {
    %c0 = arith.constant 0 : index
    %c0_0 = arith.constant 0 : index
    %c0_1 = arith.constant 0 : index
    %0 = vector.load %arg1[%c0, %c0_0, %c0_1] : memref<2x16x32xf32, #tpu.memory_space<vmem>>, vector<2x16x32xf32>
    %cst = arith.constant 0.000000e+00 : f32
    %1 = vector.broadcast %cst : f32 to vector<2x8x32xf32>
    %2 = tpu.concatenate %1, %0, %1 in 1 : vector<2x8x32xf32>, vector<2x16x32xf32>, vector<2x8x32xf32> -> vector<2x32x32xf32>
    %3 = vector.extract_strided_slice %2 {offsets = [0, 5, 0], sizes = [2, 16, 32], strides = [1, 1, 1]} : vector<2x32x32xf32> to vector<2x16x32xf32>
    %4 = vector.extract_strided_slice %2 {offsets = [0, 6, 0], sizes = [2, 16, 32], strides = [1, 1, 1]} : vector<2x32x32xf32> to vector<2x16x32xf32>
    %5 = vector.extract_strided_slice %2 {offsets = [0, 7, 0], sizes = [2, 16, 32], strides = [1, 1, 1]} : vector<2x32x32xf32> to vector<2x16x32xf32>
    %6 = vector.extract_strided_slice %2 {offsets = [0, 8, 0], sizes = [2, 16, 32], strides = [1, 1, 1]} : vector<2x32x32xf32> to vector<2x16x32xf32>
    %7 = vector.extract_strided_slice %2 {offsets = [0, 9, 0], sizes = [2, 16, 32], strides = [1, 1, 1]} : vector<2x32x32xf32> to vector<2x16x32xf32>
    %8 = vector.extract_strided_slice %2 {offsets = [0, 10, 0], sizes = [2, 16, 32], strides = [1, 1, 1]} : vector<2x32x32xf32> to vector<2x16x32xf32>
    %9 = vector.extract_strided_slice %2 {offsets = [0, 11, 0], sizes = [2, 16, 32], strides = [1, 1, 1]} : vector<2x32x32xf32> to vector<2x16x32xf32>
    %10 = tpu.concatenate %3, %4, %5, %6, %7, %8, %9 in 2 : vector<2x16x32xf32>, vector<2x16x32xf32>, vector<2x16x32xf32>, vector<2x16x32xf32>, vector<2x16x32xf32>, vector<2x16x32xf32>, vector<2x16x32xf32> -> vector<2x16x224xf32>
    %11 = vector.shape_cast %10 : vector<2x16x224xf32> to vector<32x224xf32>
    %c0_2 = arith.constant 0 : index
    %c0_3 = arith.constant 0 : index
    %c0_4 = arith.constant 0 : index
    %12 = vector.load %arg2[%c0_2, %c0_3, %c0_4] : memref<4x224x64xf32, #tpu.memory_space<vmem>>, vector<1x224x64xf32>
    %13 = vector.shape_cast %12 : vector<1x224x64xf32> to vector<224x64xf32>
    %cst_5 = arith.constant dense<0.000000e+00> : vector<32x64xf32>
    %14 = tpu.matmul %11, %13, %cst_5 {dimension_numbers = #tpu.dot_dimension_numbers<[1], [0], [0], [1], [0, 0, 1, 1], [], []>, precision = #tpu.contract_precision<fp32>} : vector<32x224xf32>, vector<224x64xf32>, vector<32x64xf32> -> vector<32x64xf32>
    %c0_6 = arith.constant 0 : index
    %c0_7 = arith.constant 0 : index
    %c0_8 = arith.constant 0 : index
    %15 = vector.load %arg3[%c0_6, %c0_7, %c0_8] : memref<4x1x64xf32, #tpu.memory_space<vmem>>, vector<1x1x64xf32>
    %16 = vector.shape_cast %15 : vector<1x1x64xf32> to vector<1x64xf32>
    %17 = vector.broadcast %16 : vector<1x64xf32> to vector<32x64xf32>
    %18 = arith.addf %14, %17 : vector<32x64xf32>
    %19 = vector.shape_cast %18 : vector<32x64xf32> to vector<2x16x64xf32>
    %20 = vector.extract_strided_slice %19 {offsets = [0, 0, 0], sizes = [2, 16, 32], strides = [1, 1, 1]} : vector<2x16x64xf32> to vector<2x16x32xf32>
    %21 = vector.extract_strided_slice %19 {offsets = [0, 0, 32], sizes = [2, 16, 32], strides = [1, 1, 1]} : vector<2x16x64xf32> to vector<2x16x32xf32>
    %22 = arith.negf %21 : vector<2x16x32xf32>
    %23 = math.exp %22 : vector<2x16x32xf32>
    %cst_9 = arith.constant 1.000000e+00 : f32
    %24 = vector.broadcast %cst_9 : f32 to vector<2x16x32xf32>
    %25 = arith.addf %24, %23 : vector<2x16x32xf32>
    %26 = arith.divf %24, %25 : vector<2x16x32xf32>
    %27 = arith.mulf %20, %26 : vector<2x16x32xf32>
    %28 = arith.addf %0, %27 : vector<2x16x32xf32>
    %29 = tpu.concatenate %1, %28, %1 in 1 : vector<2x8x32xf32>, vector<2x16x32xf32>, vector<2x8x32xf32> -> vector<2x32x32xf32>
    %30 = vector.extract_strided_slice %29 {offsets = [0, 5, 0], sizes = [2, 16, 32], strides = [1, 1, 1]} : vector<2x32x32xf32> to vector<2x16x32xf32>
    %31 = vector.extract_strided_slice %29 {offsets = [0, 6, 0], sizes = [2, 16, 32], strides = [1, 1, 1]} : vector<2x32x32xf32> to vector<2x16x32xf32>
    %32 = vector.extract_strided_slice %29 {offsets = [0, 7, 0], sizes = [2, 16, 32], strides = [1, 1, 1]} : vector<2x32x32xf32> to vector<2x16x32xf32>
    %33 = vector.extract_strided_slice %29 {offsets = [0, 8, 0], sizes = [2, 16, 32], strides = [1, 1, 1]} : vector<2x32x32xf32> to vector<2x16x32xf32>
    %34 = vector.extract_strided_slice %29 {offsets = [0, 9, 0], sizes = [2, 16, 32], strides = [1, 1, 1]} : vector<2x32x32xf32> to vector<2x16x32xf32>
    %35 = vector.extract_strided_slice %29 {offsets = [0, 10, 0], sizes = [2, 16, 32], strides = [1, 1, 1]} : vector<2x32x32xf32> to vector<2x16x32xf32>
    %36 = vector.extract_strided_slice %29 {offsets = [0, 11, 0], sizes = [2, 16, 32], strides = [1, 1, 1]} : vector<2x32x32xf32> to vector<2x16x32xf32>
    %37 = tpu.concatenate %30, %31, %32, %33, %34, %35, %36 in 2 : vector<2x16x32xf32>, vector<2x16x32xf32>, vector<2x16x32xf32>, vector<2x16x32xf32>, vector<2x16x32xf32>, vector<2x16x32xf32>, vector<2x16x32xf32> -> vector<2x16x224xf32>
    %38 = vector.shape_cast %37 : vector<2x16x224xf32> to vector<32x224xf32>
    %c1 = arith.constant 1 : index
    %c0_10 = arith.constant 0 : index
    %c0_11 = arith.constant 0 : index
    %39 = vector.load %arg2[%c1, %c0_10, %c0_11] : memref<4x224x64xf32, #tpu.memory_space<vmem>>, vector<1x224x64xf32>
    %40 = vector.shape_cast %39 : vector<1x224x64xf32> to vector<224x64xf32>
    %cst_12 = arith.constant dense<0.000000e+00> : vector<32x64xf32>
    %41 = tpu.matmul %38, %40, %cst_12 {dimension_numbers = #tpu.dot_dimension_numbers<[1], [0], [0], [1], [0, 0, 1, 1], [], []>, precision = #tpu.contract_precision<fp32>} : vector<32x224xf32>, vector<224x64xf32>, vector<32x64xf32> -> vector<32x64xf32>
    %c1_13 = arith.constant 1 : index
    %c0_14 = arith.constant 0 : index
    %c0_15 = arith.constant 0 : index
    %42 = vector.load %arg3[%c1_13, %c0_14, %c0_15] : memref<4x1x64xf32, #tpu.memory_space<vmem>>, vector<1x1x64xf32>
    %43 = vector.shape_cast %42 : vector<1x1x64xf32> to vector<1x64xf32>
    %44 = vector.broadcast %43 : vector<1x64xf32> to vector<32x64xf32>
    %45 = arith.addf %41, %44 : vector<32x64xf32>
    %46 = vector.shape_cast %45 : vector<32x64xf32> to vector<2x16x64xf32>
    %47 = vector.extract_strided_slice %46 {offsets = [0, 0, 0], sizes = [2, 16, 32], strides = [1, 1, 1]} : vector<2x16x64xf32> to vector<2x16x32xf32>
    %48 = vector.extract_strided_slice %46 {offsets = [0, 0, 32], sizes = [2, 16, 32], strides = [1, 1, 1]} : vector<2x16x64xf32> to vector<2x16x32xf32>
    %49 = arith.negf %48 : vector<2x16x32xf32>
    %50 = math.exp %49 : vector<2x16x32xf32>
    %cst_16 = arith.constant 1.000000e+00 : f32
    %51 = vector.broadcast %cst_16 : f32 to vector<2x16x32xf32>
    %52 = arith.addf %51, %50 : vector<2x16x32xf32>
    %53 = arith.divf %51, %52 : vector<2x16x32xf32>
    %54 = arith.mulf %47, %53 : vector<2x16x32xf32>
    %55 = arith.addf %28, %54 : vector<2x16x32xf32>
    %56 = tpu.concatenate %1, %55, %1 in 1 : vector<2x8x32xf32>, vector<2x16x32xf32>, vector<2x8x32xf32> -> vector<2x32x32xf32>
    %57 = vector.extract_strided_slice %56 {offsets = [0, 5, 0], sizes = [2, 16, 32], strides = [1, 1, 1]} : vector<2x32x32xf32> to vector<2x16x32xf32>
    %58 = vector.extract_strided_slice %56 {offsets = [0, 6, 0], sizes = [2, 16, 32], strides = [1, 1, 1]} : vector<2x32x32xf32> to vector<2x16x32xf32>
    %59 = vector.extract_strided_slice %56 {offsets = [0, 7, 0], sizes = [2, 16, 32], strides = [1, 1, 1]} : vector<2x32x32xf32> to vector<2x16x32xf32>
    %60 = vector.extract_strided_slice %56 {offsets = [0, 8, 0], sizes = [2, 16, 32], strides = [1, 1, 1]} : vector<2x32x32xf32> to vector<2x16x32xf32>
    %61 = vector.extract_strided_slice %56 {offsets = [0, 9, 0], sizes = [2, 16, 32], strides = [1, 1, 1]} : vector<2x32x32xf32> to vector<2x16x32xf32>
    %62 = vector.extract_strided_slice %56 {offsets = [0, 10, 0], sizes = [2, 16, 32], strides = [1, 1, 1]} : vector<2x32x32xf32> to vector<2x16x32xf32>
    %63 = vector.extract_strided_slice %56 {offsets = [0, 11, 0], sizes = [2, 16, 32], strides = [1, 1, 1]} : vector<2x32x32xf32> to vector<2x16x32xf32>
    %64 = tpu.concatenate %57, %58, %59, %60, %61, %62, %63 in 2 : vector<2x16x32xf32>, vector<2x16x32xf32>, vector<2x16x32xf32>, vector<2x16x32xf32>, vector<2x16x32xf32>, vector<2x16x32xf32>, vector<2x16x32xf32> -> vector<2x16x224xf32>
    %65 = vector.shape_cast %64 : vector<2x16x224xf32> to vector<32x224xf32>
    %c2 = arith.constant 2 : index
    %c0_17 = arith.constant 0 : index
    %c0_18 = arith.constant 0 : index
    %66 = vector.load %arg2[%c2, %c0_17, %c0_18] : memref<4x224x64xf32, #tpu.memory_space<vmem>>, vector<1x224x64xf32>
    %67 = vector.shape_cast %66 : vector<1x224x64xf32> to vector<224x64xf32>
    %cst_19 = arith.constant dense<0.000000e+00> : vector<32x64xf32>
    %68 = tpu.matmul %65, %67, %cst_19 {dimension_numbers = #tpu.dot_dimension_numbers<[1], [0], [0], [1], [0, 0, 1, 1], [], []>, precision = #tpu.contract_precision<fp32>} : vector<32x224xf32>, vector<224x64xf32>, vector<32x64xf32> -> vector<32x64xf32>
    %c2_20 = arith.constant 2 : index
    %c0_21 = arith.constant 0 : index
    %c0_22 = arith.constant 0 : index
    %69 = vector.load %arg3[%c2_20, %c0_21, %c0_22] : memref<4x1x64xf32, #tpu.memory_space<vmem>>, vector<1x1x64xf32>
    %70 = vector.shape_cast %69 : vector<1x1x64xf32> to vector<1x64xf32>
    %71 = vector.broadcast %70 : vector<1x64xf32> to vector<32x64xf32>
    %72 = arith.addf %68, %71 : vector<32x64xf32>
    %73 = vector.shape_cast %72 : vector<32x64xf32> to vector<2x16x64xf32>
    %74 = vector.extract_strided_slice %73 {offsets = [0, 0, 0], sizes = [2, 16, 32], strides = [1, 1, 1]} : vector<2x16x64xf32> to vector<2x16x32xf32>
    %75 = vector.extract_strided_slice %73 {offsets = [0, 0, 32], sizes = [2, 16, 32], strides = [1, 1, 1]} : vector<2x16x64xf32> to vector<2x16x32xf32>
    %76 = arith.negf %75 : vector<2x16x32xf32>
    %77 = math.exp %76 : vector<2x16x32xf32>
    %cst_23 = arith.constant 1.000000e+00 : f32
    %78 = vector.broadcast %cst_23 : f32 to vector<2x16x32xf32>
    %79 = arith.addf %78, %77 : vector<2x16x32xf32>
    %80 = arith.divf %78, %79 : vector<2x16x32xf32>
    %81 = arith.mulf %74, %80 : vector<2x16x32xf32>
    %82 = arith.addf %55, %81 : vector<2x16x32xf32>
    %83 = tpu.concatenate %1, %82, %1 in 1 : vector<2x8x32xf32>, vector<2x16x32xf32>, vector<2x8x32xf32> -> vector<2x32x32xf32>
    %84 = vector.extract_strided_slice %83 {offsets = [0, 5, 0], sizes = [2, 16, 32], strides = [1, 1, 1]} : vector<2x32x32xf32> to vector<2x16x32xf32>
    %85 = vector.extract_strided_slice %83 {offsets = [0, 6, 0], sizes = [2, 16, 32], strides = [1, 1, 1]} : vector<2x32x32xf32> to vector<2x16x32xf32>
    %86 = vector.extract_strided_slice %83 {offsets = [0, 7, 0], sizes = [2, 16, 32], strides = [1, 1, 1]} : vector<2x32x32xf32> to vector<2x16x32xf32>
    %87 = vector.extract_strided_slice %83 {offsets = [0, 8, 0], sizes = [2, 16, 32], strides = [1, 1, 1]} : vector<2x32x32xf32> to vector<2x16x32xf32>
    %88 = vector.extract_strided_slice %83 {offsets = [0, 9, 0], sizes = [2, 16, 32], strides = [1, 1, 1]} : vector<2x32x32xf32> to vector<2x16x32xf32>
    %89 = vector.extract_strided_slice %83 {offsets = [0, 10, 0], sizes = [2, 16, 32], strides = [1, 1, 1]} : vector<2x32x32xf32> to vector<2x16x32xf32>
    %90 = vector.extract_strided_slice %83 {offsets = [0, 11, 0], sizes = [2, 16, 32], strides = [1, 1, 1]} : vector<2x32x32xf32> to vector<2x16x32xf32>
    %91 = tpu.concatenate %84, %85, %86, %87, %88, %89, %90 in 2 : vector<2x16x32xf32>, vector<2x16x32xf32>, vector<2x16x32xf32>, vector<2x16x32xf32>, vector<2x16x32xf32>, vector<2x16x32xf32>, vector<2x16x32xf32> -> vector<2x16x224xf32>
    %92 = vector.shape_cast %91 : vector<2x16x224xf32> to vector<32x224xf32>
    %c3 = arith.constant 3 : index
    %c0_24 = arith.constant 0 : index
    %c0_25 = arith.constant 0 : index
    %93 = vector.load %arg2[%c3, %c0_24, %c0_25] : memref<4x224x64xf32, #tpu.memory_space<vmem>>, vector<1x224x64xf32>
    %94 = vector.shape_cast %93 : vector<1x224x64xf32> to vector<224x64xf32>
    %cst_26 = arith.constant dense<0.000000e+00> : vector<32x64xf32>
    %95 = tpu.matmul %92, %94, %cst_26 {dimension_numbers = #tpu.dot_dimension_numbers<[1], [0], [0], [1], [0, 0, 1, 1], [], []>, precision = #tpu.contract_precision<fp32>} : vector<32x224xf32>, vector<224x64xf32>, vector<32x64xf32> -> vector<32x64xf32>
    %c3_27 = arith.constant 3 : index
    %c0_28 = arith.constant 0 : index
    %c0_29 = arith.constant 0 : index
    %96 = vector.load %arg3[%c3_27, %c0_28, %c0_29] : memref<4x1x64xf32, #tpu.memory_space<vmem>>, vector<1x1x64xf32>
    %97 = vector.shape_cast %96 : vector<1x1x64xf32> to vector<1x64xf32>
    %98 = vector.broadcast %97 : vector<1x64xf32> to vector<32x64xf32>
    %99 = arith.addf %95, %98 : vector<32x64xf32>
    %100 = vector.shape_cast %99 : vector<32x64xf32> to vector<2x16x64xf32>
    %101 = vector.extract_strided_slice %100 {offsets = [0, 0, 0], sizes = [2, 16, 32], strides = [1, 1, 1]} : vector<2x16x64xf32> to vector<2x16x32xf32>
    %102 = vector.extract_strided_slice %100 {offsets = [0, 0, 32], sizes = [2, 16, 32], strides = [1, 1, 1]} : vector<2x16x64xf32> to vector<2x16x32xf32>
    %103 = arith.negf %102 : vector<2x16x32xf32>
    %104 = math.exp %103 : vector<2x16x32xf32>
    %cst_30 = arith.constant 1.000000e+00 : f32
    %105 = vector.broadcast %cst_30 : f32 to vector<2x16x32xf32>
    %106 = arith.addf %105, %104 : vector<2x16x32xf32>
    %107 = arith.divf %105, %106 : vector<2x16x32xf32>
    %108 = arith.mulf %101, %107 : vector<2x16x32xf32>
    %109 = arith.addf %82, %108 : vector<2x16x32xf32>
    %110 = vector.shape_cast %109 : vector<2x16x32xf32> to vector<32x32xf32>
    %c0_31 = arith.constant 0 : index
    %c0_32 = arith.constant 0 : index
    %111 = vector.load %arg4[%c0_31, %c0_32] : memref<32x128xf32, #tpu.memory_space<vmem>>, vector<32x128xf32>
    %cst_33 = arith.constant dense<0.000000e+00> : vector<32x128xf32>
    %112 = tpu.matmul %110, %111, %cst_33 {dimension_numbers = #tpu.dot_dimension_numbers<[1], [0], [0], [1], [0, 0, 1, 1], [], []>, precision = #tpu.contract_precision<fp32>} : vector<32x32xf32>, vector<32x128xf32>, vector<32x128xf32> -> vector<32x128xf32>
    %c0_34 = arith.constant 0 : index
    %c0_35 = arith.constant 0 : index
    %113 = vector.load %arg5[%c0_34, %c0_35] : memref<1x128xf32, #tpu.memory_space<vmem>>, vector<1x128xf32>
    %114 = vector.broadcast %113 : vector<1x128xf32> to vector<32x128xf32>
    %115 = arith.addf %112, %114 : vector<32x128xf32>
    %116 = arith.negf %115 : vector<32x128xf32>
    %117 = math.exp %116 : vector<32x128xf32>
    %cst_36 = arith.constant 1.000000e+00 : f32
    %118 = vector.broadcast %cst_36 : f32 to vector<32x128xf32>
    %119 = arith.addf %118, %117 : vector<32x128xf32>
    %120 = arith.divf %118, %119 : vector<32x128xf32>
    %121 = vector.shape_cast %120 : vector<32x128xf32> to vector<2x16x128xf32>
    %c0_37 = arith.constant 0 : index
    %c0_38 = arith.constant 0 : index
    %c0_39 = arith.constant 0 : index
    %122 = vector.load %arg6[%c0_37, %c0_38, %c0_39] : memref<2x16x128xf32, #tpu.memory_space<vmem>>, vector<2x16x128xf32>
    tpu.vector_store %arg6[%c0_37, %c0_38, %c0_39], %121 {strides = array<i32>} : memref<2x16x128xf32, #tpu.memory_space<vmem>>, vector<2x16x128xf32>,
    return
  }
  func.func @transform_0(%arg0: i32) -> (i32, i32, i32) {
    %c0_i32 = arith.constant 0 : i32
    %c0_i32_0 = arith.constant 0 : i32
    %c0_i32_1 = arith.constant 0 : i32
    return %arg0, %c0_i32, %c0_i32_0 : i32, i32, i32
  }
  func.func @transform_1(%arg0: i32) -> (i32, i32, i32) {
    %c0_i32 = arith.constant 0 : i32
    %c0_i32_0 = arith.constant 0 : i32
    %c0_i32_1 = arith.constant 0 : i32
    %c0_i32_2 = arith.constant 0 : i32
    return %c0_i32, %c0_i32_0, %c0_i32_1 : i32, i32, i32
  }
  func.func @transform_2(%arg0: i32) -> (i32, i32, i32) {
    %c0_i32 = arith.constant 0 : i32
    %c0_i32_0 = arith.constant 0 : i32
    %c0_i32_1 = arith.constant 0 : i32
    %c0_i32_2 = arith.constant 0 : i32
    return %c0_i32, %c0_i32_0, %c0_i32_1 : i32, i32, i32
  }
  func.func @transform_3(%arg0: i32) -> (i32, i32) {
    %c0_i32 = arith.constant 0 : i32
    %c0_i32_0 = arith.constant 0 : i32
    %c0_i32_1 = arith.constant 0 : i32
    return %c0_i32, %c0_i32_0 : i32, i32
  }
  func.func @transform_4(%arg0: i32) -> (i32, i32) {
    %c0_i32 = arith.constant 0 : i32
    %c0_i32_0 = arith.constant 0 : i32
    %c0_i32_1 = arith.constant 0 : i32
    return %c0_i32, %c0_i32_0 : i32, i32
  }
  func.func @transform_5(%arg0: i32) -> (i32, i32, i32) {
    %c0_i32 = arith.constant 0 : i32
    %c0_i32_0 = arith.constant 0 : i32
    %c0_i32_1 = arith.constant 0 : i32
    return %arg0, %c0_i32, %c0_i32_0 : i32, i32, i32
  }
}

</mosaic_0001>

<bundles_post_ra>
// kernel: conv_regression_pallas.1
= control target key start
LH: loop header
LB: loop body
LE: loop exit
PB: predicated region body
PF: predicated region fallthrough
CT: control target
= control target key end

     0   :  { %vm29_vm0 = vcmask 1046528   ;;  %v11285_v1 = vmov 0.0   ;;  %vm126_vm1 = vcmask 1042432   ;;  %s7428_s22 = smov 32   ;;  %vm154_vm2 = vcmask 1041408   ;;  %s7429_s12 = smov 64   ;;  %s11279_s0 = inlined_call_operand.vmem [shape: f32[2,16,32], index: 0, kind: input, shape index: {}]   ;;  %s11280_s1 = inlined_call_operand.vmem [shape: f32[4,224,64], index: 1, kind: input, shape index: {}]   ;;  %s11281_s2 = inlined_call_operand.vmem [shape: f32[4,1,64], index: 2, kind: input, shape index: {}]   ;;  %s11282_s3 = inlined_call_operand.vmem [shape: f32[32,128], index: 3, kind: input, shape index: {}]   ;;  %s11283_s4 = inlined_call_operand.vmem [shape: f32[1,128], index: 4, kind: input, shape index: {}]   ;;  %s11284_s5 = inlined_call_operand.vmem [shape: f32[2,16,128], index: 5, kind: output, shape index: {}]  }
   0x1   :  { %v7465_v0 = vld [vmem:[%s11279_s0] sm:$0xff]  ;;  %v7468_v2 = vrot.slane %v11285_v1, 1  ;;  %v7473_v3 = vld [vmem:[%s11279_s0 + $0x8] sm:$0xff]  ;;  %v7492_v13 = vrot.slane %v11285_v1, 2  ;;  %vm57_vm3 = vcmask 1045504   ;;  %v253_v18 = vld [vmem:[%s11280_s1 + $0x10] sm:$0xff] }
   0x2   :  { %11674 = vst [vmem:[#allocation2_spill] sm:$0xff] %v7465_v0  ;;  %11676 = vst [vmem:[#allocation4_spill] sm:$0xff] %v7473_v3  ;;  %v127_v4 = vrot.slane %v7465_v0, 5  ;;  %v31_v5 = vrot.slane %v7465_v0, 1  ;;  %v128_v6 = vrot.slane %v7473_v3, 5  ;;  %v33_v7 = vrot.slane %v7473_v3, 1 }
   0x3   :  { %11675 = vst [vmem:[#allocation3_spill] sm:$0xff] %v7468_v2  ;;  %v155_v11 = vrot.slane %v7465_v0, 6  ;;  %v156_v12 = vrot.slane %v7473_v3, 6  ;;  %11677 = vst [vmem:[#allocation5_spill] sm:$0xff] %v7492_v13  ;;  %v59_v14 = vrot.slane %v7465_v0, 2  ;;  %v11300_v15 = vrot.slane %v7473_v3, 2 }
   0x4   :  { %136 = vrot.lane.b32.xlu0 %v127_v4, %s7428_s22  ;;  %v32_v8 = vsel %vm29_vm0, %v7468_v2, %v31_v5  ;;  %v129_v9 = vsel %vm126_vm1, %v127_v4, %v128_v6  ;;  %v34_v10 = vsel %vm29_vm0, %v31_v5, %v33_v7  ;;  %v251_v16 = vld [vmem:[%s11280_s1] sm:$0xff]  ;;  %v252_v17 = vld [vmem:[%s11280_s1 + $0x8] sm:$0xff]  ;;  %v86_v20 = vrot.slane %v7465_v0, 3  ;;  %v254_v21 = vld [vmem:[%s11280_s1 + $0x18] sm:$0xff]  ;;  %s7431_s11 = smov 96  }
   0x5   :  { %39 = vrot.lane.b32.xlu1 %v32_v8, %s7428_s22  ;;  %v157_v19 = vsel %vm154_vm2, %v155_v11, %v156_v12  ;;  %v7517_v22 = vld [vmem:[%s11280_s1 + $0x20] sm:$0xff]  ;;  %v7522_v23 = vld [vmem:[%s11280_s1 + $0x28] sm:$0xff]  ;;  %v60_v24 = vsel %vm57_vm3, %v7492_v13, %v59_v14  ;;  %v62_v25 = vsel %vm57_vm3, %v59_v14, %v11300_v15  ;;  %vm85_vm4 = vcmask 1044480   ;;  %v7532_v26 = vld [vmem:[%s11280_s1 + $0x30] sm:$0xff] }
   0x6   :  { %v11289_v27 = vrot.slane %v7473_v3, 3  ;;  %v7537_v28 = vrot.slane %v11285_v1, 5  ;;  %v11296_v29 = vmov 0.0|0.0   ;;  %v295_v30 = vand.u32 4294901760, %v251_v16  ;;  %v7544_v32 = vld [vmem:[%s11279_s0 + $0x10] sm:$0xff]  ;;  %v7551_v37 = vld [vmem:[%s11280_s1 + $0x38] sm:$0xff] }
   0x7   :  { %6082 = vmatprep.subr.bf16.mxu0 %v11296_v29  ;;  %v298_v31 = vand.u32 4294901760, %v252_v17  ;;  %v301_v33 = vand.u32 4294901760, %v253_v18  ;;  %v304_v34 = vand.u32 4294901760, %v254_v21  ;;  %v307_v35 = vand.u32 4294901760, %v7517_v22  ;;  %6334 = vmatprep.subr.bf16.mxu1 %v11296_v29  ;;  %v7557_v38 = vld [vmem:[%s11279_s0 + $0x18] sm:$0xff]  ;;  %v7569_v43 = vld [vmem:[%s11280_s1 + $0x40] sm:$0xff] }
   0x8   :  { %138 = vrot.lane.b32.xlu0 %v129_v9, %s7428_s22  ;;  %11678 = vst [vmem:[#allocation6_spill] sm:$0xff] %v7537_v28  ;;  %v310_v36 = vand.u32 4294901760, %v7522_v23  ;;  %v7561_v40 = vsub.f32 %v251_v16, %v295_v30  ;;  %v313_v42 = vand.u32 4294901760, %v7532_v26  ;;  %v7574_v44 = vld [vmem:[%s11280_s1 + $0x48] sm:$0xff]  ;;  %v7577_v45 = vrot.slane %v11285_v1, 6  ;;  %v7588_v49 = vld [vmem:[%s11280_s1 + $0x50] sm:$0xff] }
   0x9   :  { %41 = vrot.lane.b32.xlu1 %v34_v10, %s7428_s22  ;;  %v7559_v39 = vpack.c.bf16 %v298_v31, %v295_v30  ;;  %v7563_v41 = vsub.f32 %v252_v17, %v298_v31  ;;  %v7579_v46 = vpack.c.bf16 %v304_v34, %v301_v33  ;;  %v7581_v47 = vsub.f32 %v253_v18, %v301_v33  ;;  %v7593_v50 = vld [vmem:[%s11280_s1 + $0x58] sm:$0xff]  ;;  %v7610_v55 = vld [vmem:[%s11280_s1 + $0x60] sm:$0xff]  ;;  %v7615_v56 = vld [vmem:[%s11280_s1 + $0x68] sm:$0xff] }
   0xa   :  { %11681 = vst [vmem:[#allocation9_spill] sm:$0xff] %v7577_v45  ;;  %v7583_v48 = vsub.f32 %v254_v21, %v304_v34  ;;  %v7598_v51 = vsub.f32 %v7517_v22, %v307_v35  ;;  %v7601_v52 = vsub.f32 %v7522_v23, %v310_v36  ;;  %v316_v53 = vand.u32 4294901760, %v7551_v37  ;;  %v7634_v5 = vld [vmem:[%s11280_s1 + $0x70] sm:$0xff]  ;;  %v7651_v14 = vld [vmem:[%s11280_s1 + $0x78] sm:$0xff]  ;;  %v7676_v21 = vld [vmem:[%s11280_s1 + $0x88] sm:$0xff] }
   0xb   :  { %11679 = vst [vmem:[#allocation7_spill] sm:$0xff] %v7559_v39  ;;  %11680 = vst [vmem:[#allocation8_spill] sm:$0xff] %v7563_v41  ;;  %6084 = vmatpush1.bf16.msra.mxu0 %v7559_v39  ;;  %v7605_v54 = vsub.f32 %v7532_v26, %v313_v42  ;;  %v11295_v57 = vrot.slane %v7544_v32, 5  ;;  %v11292_v58 = vrot.slane %v7557_v38, 5  ;;  %v319_v59 = vand.u32 4294901760, %v7569_v43  ;;  %v7698_v26 = vld [vmem:[%s11280_s1 + $0x90] sm:$0xff] }
   0xc   :  { %164 = vrot.lane.b32.xlu0 %v155_v11, %s7429_s12  ;;  %11682 = vst [vmem:[#allocation10_spill] sm:$0xff] %v7579_v46  ;;  %11683 = vst [vmem:[#allocation11_spill] sm:$0xff] %v7581_v47  ;;  %6085 = vmatprep.subr.bf16.mxu0 %v11296_v29  ;;  %v322_v60 = vand.u32 4294901760, %v7574_v44  ;;  %v88_v61 = vsel %vm85_vm4, %v86_v20, %v11289_v27  ;;  %v7627_v62 = vsub.f32 %v7551_v37, %v316_v53  ;;  %v7728_v1 = vld [vmem:[%s11280_s1 + $0xa8] sm:$0xff]  ;;  %v7807_v15 = vld [vmem:[%s11280_s1 + $0xd0] sm:$0xff]  ;;  %vm110_vm5 = vcmask 1043456  }
   0xd   :  { %166 = vrot.lane.b32.xlu1 %v157_v19, %s7429_s12  ;;  %11684 = vst [vmem:[#allocation12_spill] sm:$0xff] %v7583_v48  ;;  %11685 = vst [vmem:[#allocation13_spill] sm:$0xff] %v7598_v51  ;;  %v11291_v63 = vand.u32 4294901760, %v7588_v49  ;;  %v11290_v4 = vand.u32 4294901760, %v7593_v50  ;;  %v7639_v8 = vsub.f32 %v7569_v43, %v319_v59  ;;  %v11287_v10 = vand.u32 4294901760, %v7610_v55 }
   0xe   :  { %11686 = vst [vmem:[#allocation14_spill] sm:$0xff] %v7601_v52  ;;  %v7644_v9 = vsub.f32 %v7574_v44, %v322_v60  ;;  %v11286_v11 = vand.u32 4294901760, %v7615_v56  ;;  %v35_v16 = vrot.slane %v7544_v32, 1  ;;  %v7656_v17 = vpack.c.bf16 %v310_v36, %v307_v35  ;;  %v7715_v35 = vld [vmem:[%s11280_s1 + $0xa0] sm:$0xff] }
   0xf   :  { %6087 = vmatpush1.bf16.msra.mxu0 %v7579_v46  ;;  %v7661_v18 = vsub.f32 %v7588_v49, %v11291_v63  ;;  %v7666_v19 = vsub.f32 %v7593_v50, %v11290_v4  ;;  %v131_v22 = vsel %vm126_vm1, %v128_v6, %v7537_v28  ;;  %v7687_v23 = vsub.f32 %v7610_v55, %v11287_v10  ;;  %v7703_v6 = vld [vmem:[%s11280_s1 + $0x98] sm:$0xff]  ;;  %v7742_v4 = vld [vmem:[%s11280_s1 + $0xb0] sm:$0xff]  ;;  %v7772_v63 = vld [vmem:[%s11280_s1 + $0xc0] sm:$0xff] }
  0x10   :  { %67 = vrot.lane.b32.xlu0 %v60_v24, %s7429_s12  ;;  %11687 = vst [vmem:[#allocation15_spill] sm:$0xff] %v7656_v17  ;;  %6088 = vmatprep.subr.bf16.mxu0 %v11296_v29  ;;  %v7692_v24 = vsub.f32 %v7615_v56, %v11286_v11  ;;  %v159_v30 = vsel %vm154_vm2, %v156_v12, %v7577_v45  ;;  %v11301_v31 = vrot.slane %v7557_v38, 1  ;;  %v340_v34 = vand.u32 4294901760, %v7651_v14 }
  0x11   :  { %69 = vrot.lane.b32.xlu1 %v62_v25, %s7429_s12  ;;  %v11288_v25 = vand.u32 4294901760, %v7634_v5  ;;  %v7732_v11 = vpack.c.bf16 %v316_v53, %v313_v42  ;;  %v11299_v27 = vand.u32 4294901760, %v7703_v6  ;;  %v134_v42 = vsel %vm126_vm1, %v11295_v57, %v11292_v58  ;;  %v7812_v57 = vld [vmem:[%s11280_s1 + $0xd8] sm:$0xff] }
  0x12   :  { %v7735_v10 = vsub.f32 %v7651_v14, %v340_v34  ;;  %v36_v58 = vsel %vm29_vm0, %v7468_v2, %v35_v16  ;;  %v7795_v33 = vsel %vm29_vm0, %v35_v16, %v11301_v31  ;;  %v7821_v31 = vpack.c.bf16 %v322_v60, %v319_v59 }
  0x13   :  { %v7721_v37 = vsub.f32 %v7634_v5, %v11288_v25  ;;  %6090 = vmatpush1.bf16.msra.mxu0 %v7656_v17  ;;  %11688 = vst [vmem:[#allocation16_spill] sm:$0xff] %v7732_v11  ;;  %v11298_v25 = vand.u32 4294901760, %v7698_v26  ;;  %v11692_v16 = vrot.slane %v7557_v38, 6  ;;  %v11693_v2 = vrot.slane %v7544_v32, 6 }
  0x14   :  { %92 = vrot.lane.b32.xlu0 %v86_v20, %s7431_s11  ;;  %v7671_v20 = vld [vmem:[%s11280_s1 + $0x80] sm:$0xff]  ;;  %6091 = vmatprep.subr.bf16.mxu0 %v11296_v29  ;;  %v7790_v29 = vld [vmem:[%s11280_s1 + $0xc8] sm:$0xff]  ;;  %11689 = vst [vmem:[#allocation17_spill] sm:$0xff] %v7821_v31  ;;  %v11694_v44 = vmov 0.0|0.0   ;;  %v11695_v59 = vand.u32 4294901760, %v7742_v4  ;;  %v11699_v17 = vand.u32 4294901760, %v7772_v63 }
  0x15   :  { %94 = vrot.lane.b32.xlu1 %v88_v61, %s7431_s11  ;;  %v11293_v12 = vand.u32 4294901760, %v7671_v20  ;;  %v11294_v61 = vand.u32 4294901760, %v7676_v21  ;;  %v7837_v43 = vsel %vm154_vm2, %v11693_v2, %v11692_v16  ;;  %v11317_v16 = vand.u32 4294901760, %v7807_v15 }
  0x16   :  { %v7843_v60 = vsub.f32 %v7742_v4, %v11695_v59  ;;  %v7855_v2 = vsub.f32 %v7772_v63, %v11699_v17  ;;  %v11316_v46 = vand.u32 4294901760, %v7812_v57  ;;  %v11701_v0 = vand.u32 4294901760, %v7593_v50 }
  0x17   :  { %v7761_v53 = vsub.f32 %v7671_v20, %v11293_v12  ;;  %v7766_v14 = vsub.f32 %v7676_v21, %v11294_v61  ;;  %v7779_v12 = vsub.f32 %v7698_v26, %v11298_v25  ;;  %v7784_v61 = vsub.f32 %v7703_v6, %v11299_v27  ;;  %6093 = vmatpush1.bf16.msra.mxu0 %v7732_v11 }
  0x18   :  { %140 = vrot.lane.b32.xlu0 %v131_v22, %s7428_s22  ;;  %v7747_v22 = vld [vmem:[%s11280_s1 + $0xb8] sm:$0xff]  ;;  %6094 = vmatprep.subr.bf16.mxu0 %v11694_v44  ;;  %11696 = vst [vmem:[#allocation18_spill] sm:$0xff] %v7843_v60  ;;  %v11703_v11 = vand.u32 4294901760, %v7790_v29  ;;  %v11704_v17 = vrot.slane %v7473_v3, 3  ;;  %v11705_v59 = vand.u32 4294901760, %v7610_v55  ;;  %v11706_v39 = vand.u32 4294901760, %v7615_v56 }
  0x19   :  { %43 = vrot.lane.b32.xlu1 %v33_v7, %s7428_s22  ;;  %v11302_v7 = vand.u32 4294901760, %v7715_v35  ;;  %v7890_v50 = vsub.f32 %v7812_v57, %v11316_v46  ;;  %v11321_v56 = vand.u32 4294901760, %v7563_v41  ;;  %vm182_vm6 = vcmask 261120  }
  0x1a   :  { %vm189_vm7 = vcmask 523264   ;;  %vm196_vm8 = vcmask 785408  }
  0x1b   :  { %v7800_v25 = vsub.f32 %v7715_v35, %v11302_v7  ;;  %v11690_v7 = vand.u32 4294901760, %v7728_v1  ;;  %6096 = vmatpush1.bf16.msra.mxu0 %v7821_v31  ;;  %11709 = vst [vmem:[#allocation23_spill] sm:$0xff] %v7890_v50 }
  0x1c   :  { %168 = vrot.lane.b32.xlu0 %v159_v30, %s7429_s12  ;;  %v11691_v30 = vrot.slane %v7473_v3, 2  ;;  %6097 = vmatprep.subr.bf16.mxu0 %v11694_v44 }
  0x1d   :  { %v7826_v36 = vsub.f32 %v7728_v1, %v11690_v7  ;;  %v11697_v7 = vand.u32 4294901760, %v7747_v22 }
  0x1e   :  { %71 = vrot.lane.b32.xlu1 %v11691_v30, %s7429_s12 }
  0x1f   :  { %v7848_v27 = vsub.f32 %v7747_v22, %v11697_v7  ;;  %v11700_v7 = vand.u32 4294901760, %v7588_v49  ;;  %v7880_v49 = vpack.c.bf16 %v11706_v39, %v11705_v59  ;;  %v11711_v39 = vand.u32 4294901760, %v7634_v5 }
  0x20   :  { %96 = vrot.lane.b32.xlu0 %v11704_v17, %s7431_s11  ;;  %v11324_v59 = vand.u32 4294901760, %v7581_v47  ;;  %v11327_v17 = vand.u32 4294901760, %v7583_v48  ;;  %v458_v5 = vsub.f32 %v7563_v41, %v11321_v56  ;;  %v11713_v56 = vand.u32 4294901760, %v7601_v52 }
  0x21   :  { %11698 = vst [vmem:[#allocation19_spill] sm:$0xff] %v7848_v27  ;;  %v7865_v30 = vpack.c.bf16 %v11701_v0, %v11700_v7  ;;  %v7870_v27 = vsub.f32 %v7790_v29, %v11703_v11  ;;  %11707 = vst [vmem:[#allocation21_spill] sm:$0xff] %v7880_v49  ;;  %v7885_v0 = vsub.f32 %v7807_v15, %v11317_v16  ;;  %v11320_v11 = vand.u32 4294901760, %v7561_v40 }
  0x22   :  { %v11710_v7 = vrot.slane %v7544_v32, 5  ;;  %v7899_v55 = vpack.c.bf16 %v340_v34, %v11711_v39  ;;  %v11330_v16 = vand.u32 4294901760, %v7598_v51  ;;  %v465_v34 = vsub.f32 %v7581_v47, %v11324_v59 }
  0x23   :  { %11702 = vst [vmem:[#allocation20_spill] sm:$0xff] %v7865_v30  ;;  %11708 = vst [vmem:[#allocation22_spill] sm:$0xff] %v7885_v0  ;;  %v451_v46 = vsub.f32 %v7561_v40, %v11320_v11  ;;  %v472_v39 = vsub.f32 %v7583_v48, %v11327_v17  ;;  %6099 = vmatpush1.bf16.msra.mxu0 %v7865_v30  ;;  %v486_v3 = vsub.f32 %v7601_v52, %v11713_v56 }
  0x24   :  { %142 = vrot.lane.b32.xlu1 %v11710_v7, %s7428_s22  ;;  %11712 = vst [vmem:[#allocation24_spill] sm:$0xff] %v7899_v55  ;;  %144 = vrot.lane.b32.xlu0 %v134_v42, %s7428_s22  ;;  %v479_v31 = vsub.f32 %v7598_v51, %v11330_v16  ;;  %v11714_v59 = vand.u32 4294901760, %v7605_v54  ;;  %v459_v42 = vand.u32 4294901760, %v458_v5  ;;  %v466_v17 = vand.u32 4294901760, %v465_v34 }
  0x25   :  { %v452_v7 = vand.u32 4294901760, %v451_v46  ;;  %6100 = vmatprep.subr.bf16.mxu0 %v11694_v44  ;;  %v473_v11 = vand.u32 4294901760, %v472_v39  ;;  %v11715_v46 = vand.u32 4294901760, %v7627_v62  ;;  %v487_v51 = vand.u32 4294901760, %v486_v3 }
  0x26   :  { %v493_v47 = vsub.f32 %v7605_v54, %v11714_v59  ;;  %v480_v16 = vand.u32 4294901760, %v479_v31  ;;  %v11356_v56 = vand.u32 4294901760, %v7639_v8  ;;  %v11339_v31 = vand.u32 4294901760, %v7666_v19 }
  0x27   :  { %v500_v30 = vsub.f32 %v7627_v62, %v11715_v46  ;;  %v7937_v52 = vpack.c.bf16 %v459_v42, %v452_v7  ;;  %v7939_v41 = vpack.c.bf16 %v473_v11, %v466_v17  ;;  %6102 = vmatpush1.bf16.msra.mxu0 %v7880_v49  ;;  %v11717_v17 = vrot.slane %v7544_v32, 2 }
  0x28   :  { %45 = vrot.lane.b32.xlu1 %v36_v58, %s7428_s22  ;;  %v494_v48 = vand.u32 4294901760, %v493_v47  ;;  %v11343_v58 = vand.u32 4294901760, %v7644_v9  ;;  %47 = vrot.lane.b32.xlu0 %v7795_v33, %s7428_s22  ;;  %v7945_v5 = vpack.c.bf16 %v487_v51, %v480_v16  ;;  %v507_v3 = vsub.f32 %v7639_v8, %v11356_v56  ;;  %v11752_v56 = vld [vmem:[#allocation4_spill] sm:$0xff] }
  0x29   :  { %v501_v59 = vand.u32 4294901760, %v500_v30  ;;  %v11342_v47 = vand.u32 4294901760, %v7661_v18  ;;  %v11716_v30 = vrot.slane %v7544_v32, 6  ;;  %6103 = vmatprep.subr.bf16.mxu0 %v11694_v44  ;;  %v11340_v33 = vand.u32 4294901760, %v7687_v23 }
  0x2a   :  { %v514_v51 = vsub.f32 %v7644_v9, %v11343_v58  ;;  %v11341_v16 = vand.u32 4294901760, %v7692_v24  ;;  %v64_v7 = vsel %vm57_vm3, %v7492_v13, %v11717_v17  ;;  %v508_v34 = vand.u32 4294901760, %v507_v3 }
  0x2b   :  { %v7956_v11 = vpack.c.bf16 %v501_v59, %v494_v48  ;;  %v521_v39 = vsub.f32 %v7661_v18, %v11342_v47  ;;  %v528_v48 = vsub.f32 %v7666_v19, %v11339_v31  ;;  %v11718_v42 = vand.u32 4294901760, %v7671_v20  ;;  %6105 = vmatpush1.bf16.msra.mxu0 %v7899_v55 }
  0x2c   :  { %170 = vrot.lane.b32.xlu1 %v11716_v30, %s7429_s12  ;;  %v11719_v46 = vand.u32 4294901760, %v7676_v21  ;;  %v515_v30 = vand.u32 4294901760, %v514_v51  ;;  %v535_v17 = vsub.f32 %v7687_v23, %v11340_v33  ;;  %v542_v3 = vsub.f32 %v7692_v24, %v11341_v16  ;;  %172 = vrot.lane.b32.xlu0 %v7837_v43, %s7429_s12 }
  0x2d   :  { %v522_v31 = vand.u32 4294901760, %v521_v39  ;;  %v529_v20 = vand.u32 4294901760, %v528_v48  ;;  %v11355_v21 = vand.u32 4294901760, %v7721_v37  ;;  %v11721_v51 = vrot.slane %v7557_v38, 2  ;;  %6106 = vmatprep.subr.bf16.mxu0 %v11694_v44 }
  0x2e   :  { %v7977_v59 = vpack.c.bf16 %v11719_v46, %v11718_v42  ;;  %v11346_v42 = vand.u32 4294901760, %v7735_v10  ;;  %v11722_v46 = vrot.slane %v7544_v32, 2  ;;  %v7997_v16 = vpack.c.bf16 %v515_v30, %v508_v34 }
  0x2f   :  { %v536_v43 = vand.u32 4294901760, %v535_v17  ;;  %v543_v47 = vand.u32 4294901760, %v542_v3  ;;  %v7999_v39 = vpack.c.bf16 %v529_v20, %v522_v31  ;;  %v549_v48 = vsub.f32 %v7721_v37, %v11355_v21  ;;  %v11749_v21 = vld [vmem:[#allocation12_spill] sm:$0xff] }
  0x30   :  { %11720 = vst [vmem:[#allocation25_spill] sm:$0xff] %v7977_v59  ;;  %73 = vrot.lane.b32.xlu1 %v64_v7, %s7429_s12  ;;  %v66_v33 = vsel %vm57_vm3, %v11722_v46, %v11721_v51  ;;  %v556_v7 = vsub.f32 %v7735_v10, %v11346_v42  ;;  %v11344_v51 = vand.u32 4294901760, %v7761_v53  ;;  %v11345_v46 = vand.u32 4294901760, %v7766_v14  ;;  %6108 = vmatpush1.bf16.msra.mxu0 %v7977_v59 }
  0x31   :  { %v8007_v58 = vpack.c.bf16 %v543_v47, %v536_v43  ;;  %75 = vrot.lane.b32.xlu0 %v66_v33, %s7429_s12  ;;  %v11723_v31 = vand.u32 4294901760, %v7698_v26  ;;  %v11724_v34 = vand.u32 4294901760, %v7703_v6  ;;  %v550_v17 = vand.u32 4294901760, %v549_v48  ;;  %6109 = vmatprep.subr.bf16.mxu0 %v11694_v44 }
  0x32   :  { %v557_v3 = vand.u32 4294901760, %v556_v7  ;;  %v11726_v47 = vrot.slane %v7544_v32, 3  ;;  %v11727_v20 = vrot.slane %v7557_v38, 3  ;;  %v563_v26 = vsub.f32 %v7761_v53, %v11344_v51 }
  0x33   :  { %v8017_v30 = vpack.c.bf16 %v11724_v34, %v11723_v31  ;;  %v570_v6 = vsub.f32 %v7766_v14, %v11345_v46  ;;  %v11729_v48 = vrot.slane %v7557_v38, 5  ;;  %v11730_v51 = vand.u32 4294901760, %v7715_v35 }
  0x34   :  { %98 = vrot.lane.b32.xlu1 %v11726_v47, %s7431_s11  ;;  %v11728_v43 = vmov %v11726_v47  ;;  %v8038_v31 = vpack.c.bf16 %v557_v3, %v550_v17  ;;  %v564_v34 = vand.u32 4294901760, %v563_v26  ;;  %v11731_v46 = vand.u32 4294901760, %v7728_v1 }
  0x35   :  { %11725 = vst [vmem:[#allocation26_spill] sm:$0xff] %v8017_v30  ;;  %v91_v33 = vsel %vm85_vm4, %v11728_v43, %v11727_v20  ;;  %v135_v7 = vsel %vm126_vm1, %v11729_v48, %v7537_v28  ;;  %v571_v47 = vand.u32 4294901760, %v570_v6  ;;  %v11354_v20 = vand.u32 4294901760, %v7779_v12  ;;  %6111 = vmatpush1.bf16.msra.mxu0 %v8017_v30 }
  0x36   :  { %v11351_v43 = vand.u32 4294901760, %v7784_v61  ;;  %100 = vrot.lane.b32.xlu0 %v91_v33, %s7431_s11  ;;  %v8048_v42 = vpack.c.bf16 %v11731_v46, %v11730_v51  ;;  %6112 = vmatprep.subr.bf16.mxu0 %v11694_v44  ;;  %v11733_v35 = vrot.slane %v7557_v38, 6  ;;  %v11347_v26 = vand.u32 4294901760, %v7800_v25 }
  0x37   :  { %v8052_v17 = vpack.c.bf16 %v571_v47, %v564_v34  ;;  %v577_v3 = vsub.f32 %v7779_v12, %v11354_v20  ;;  %v11348_v6 = vand.u32 4294901760, %v7826_v36  ;;  %v11734_v48 = vrot.slane %v7557_v38, 1  ;;  %v11748_v20 = vld [vmem:[#allocation11_spill] sm:$0xff] }
  0x38   :  { %11732 = vst [vmem:[#allocation27_spill] sm:$0xff] %v8048_v42  ;;  %146 = vrot.lane.b32.xlu1 %v135_v7, %s7428_s22  ;;  %v584_v33 = vsub.f32 %v7784_v61, %v11351_v43  ;;  %v163_v1 = vsel %vm154_vm2, %v11733_v35, %v7577_v45  ;;  %v11735_v7 = vand.u32 4294901760, %v7742_v4  ;;  %v11736_v34 = vand.u32 4294901760, %v7747_v22 }
  0x39   :  { %v578_v51 = vand.u32 4294901760, %v577_v3  ;;  %6114 = vmatpush1.bf16.msra.mxu0 %v8048_v42  ;;  %v598_v35 = vsub.f32 %v7826_v36, %v11348_v6  ;;  %v11349_v22 = vand.u32 4294901760, %v7843_v60 }
  0x3a   :  { %v585_v46 = vand.u32 4294901760, %v584_v33  ;;  %49 = vrot.lane.b32.xlu0 %v11734_v48, %s7428_s22  ;;  %v8074_v47 = vpack.c.bf16 %v11736_v34, %v11735_v7  ;;  %6115 = vmatprep.subr.bf16.mxu0 %v11694_v44  ;;  %v591_v33 = vsub.f32 %v7800_v25, %v11347_v26  ;;  %v11738_v7 = vld [vmem:[#allocation19_spill] sm:$0xff] }
  0x3b   :  { %v599_v4 = vand.u32 4294901760, %v598_v35  ;;  %v11350_v34 = vand.u32 4294901760, %v11738_v7 }
  0x3c   :  { %11737 = vst [vmem:[#allocation28_spill] sm:$0xff] %v8074_v47  ;;  %174 = vrot.lane.b32.xlu1 %v163_v1, %s7429_s12  ;;  %v8078_v3 = vpack.c.bf16 %v585_v46, %v578_v51  ;;  %v592_v48 = vand.u32 4294901760, %v591_v33  ;;  %v11739_v1 = vrot.slane %v7557_v38, 2  ;;  %v11740_v51 = vand.u32 4294901760, %v7772_v63 }
  0x3d   :  { %6117 = vmatpush1.bf16.msra.mxu0 %v8074_v47  ;;  %v11741_v46 = vand.u32 4294901760, %v7790_v29  ;;  %v11743_v33 = vrot.slane %v7557_v38, 3  ;;  %v612_v63 = vsub.f32 %v11738_v7, %v11350_v34 }
  0x3e   :  { %77 = vrot.lane.b32.xlu0 %v11739_v1, %s7429_s12  ;;  %6118 = vmatprep.subr.bf16.mxu0 %v11694_v44  ;;  %v8102_v35 = vpack.c.bf16 %v599_v4, %v592_v48  ;;  %v605_v1 = vsub.f32 %v7843_v60, %v11349_v22  ;;  %v11745_v48 = vand.u32 4294901760, %v7812_v57  ;;  %v11362_v57 = vand.u32 4294901760, %v7890_v50 }
  0x3f   :  { %v8096_v26 = vpack.c.bf16 %v11741_v46, %v11740_v51  ;;  %v613_v29 = vand.u32 4294901760, %v612_v63  ;;  %v11353_v51 = vand.u32 4294901760, %v7855_v2  ;;  %v11352_v46 = vand.u32 4294901760, %v7870_v27 }
  0x40   :  { %102 = vrot.lane.b32.xlu1 %v11743_v33, %s7431_s11  ;;  %v606_v6 = vand.u32 4294901760, %v605_v1  ;;  %v11744_v33 = vand.u32 4294901760, %v7807_v15  ;;  %v11359_v15 = vand.u32 4294901760, %v7885_v0 }
  0x41   :  { %11742 = vst [vmem:[#allocation29_spill] sm:$0xff] %v8096_v26  ;;  %6120 = vmatpush1.bf16.msra.mxu0 %v8096_v26  ;;  %v619_v1 = vsub.f32 %v7855_v2, %v11353_v51  ;;  %v626_v63 = vsub.f32 %v7870_v27, %v11352_v46  ;;  %v11747_v46 = vld [vmem:[#allocation8_spill] sm:$0xff]  ;;  %v112_v51 = vrot.slane %v11752_v56, 4 }
  0x42   :  { %v8117_v4 = vpack.c.bf16 %v11745_v48, %v11744_v33  ;;  %6121 = vmatprep.subr.bf16.mxu0 %v11694_v44  ;;  %v8120_v22 = vpack.c.bf16 %v613_v29, %v606_v6  ;;  %v633_v29 = vsub.f32 %v7885_v0, %v11359_v15  ;;  %v640_v33 = vsub.f32 %v7890_v50, %v11362_v57 }
  0x43   :  { %v620_v34 = vand.u32 4294901760, %v619_v1  ;;  %v627_v43 = vand.u32 4294901760, %v626_v63 }
  0x44   :  { %11746 = vst [vmem:[#allocation30_spill] sm:$0xff] %v8117_v4  ;;  %v634_v48 = vand.u32 4294901760, %v633_v29  ;;  %v641_v1 = vand.u32 4294901760, %v640_v33  ;;  %v11753_v33 = vld [vmem:[#allocation2_spill] sm:$0xff] }
  0x45   :  { %6123 = vmatpush1.bf16.msra.mxu0 %v8117_v4  ;;  %v8132_v6 = vpack.c.bf16 %v627_v43, %v620_v34  ;;  %v11750_v43 = vld [vmem:[#allocation13_spill] sm:$0xff]  ;;  %v11751_v34 = vld [vmem:[#allocation14_spill] sm:$0xff]  ;;  %v111_v13 = vrot.slane %v11753_v33, 4 }
  0x46   :  { %6124 = vmatprep.subr.bf16.mxu0 %v11694_v44  ;;  %v8140_v63 = vpack.c.bf16 %v641_v1, %v634_v48 }
  0x47   :  { %v113_v1 = vsel %vm110_vm5, %v111_v13, %v112_v51 }
  0x76   :  { %v137_v45 = vpop.permute.xlu0 %136 }
  0x77   :  { %v40_v28 = vpop.permute.xlu1 %39  ;;  %v203_v15 = vsel %vm182_vm6, %v111_v13, %v137_v45 }
  0x78   :  { %v183_v45 = vsel %vm182_vm6, 0.0, %v40_v28 }
  0x7a   :  { %v139_v48 = vpop.permute.xlu0 %138 }
  0x7b   :  { %v42_v4 = vpop.permute.xlu1 %41  ;;  %v204_v47 = vsel %vm182_vm6, %v113_v1, %v139_v48  ;;  %v11754_v48 = vmov 0.0  }
  0x7c   :  { %v8181_v1 = vrot.slane %v11754_v48, 4 }
  0x7e   :  { %v165_v26 = vpop.permute.xlu0 %164  ;;  %11755 = vst [vmem:[#allocation8_spill] sm:$0xff] %v8181_v1  ;;  %v115_v0 = vsel %vm110_vm5, %v112_v51, %v8181_v1 }
  0x7f   :  { %v209_v42 = vsel %vm189_vm7, %v203_v15, %v165_v26  ;;  %v167_v29 = vpop.permute.xlu1 %166 }
  0x80   :  { %v230_v30 = vrot.slane %v209_v42, 5  ;;  %v210_v59 = vsel %vm189_vm7, %v204_v47, %v167_v29  ;;  %v184_v42 = vsel %vm182_vm6, %v11753_v33, %v42_v4 }
  0x81   :  { %v231_v49 = vrot.slane %v210_v59, 5 }
  0x82   :  { %v68_v60 = vpop.permute.xlu0 %67 }
  0x83   :  { %v232_v7 = vsel %vm126_vm1, %v230_v30, %v231_v49  ;;  %v70_v57 = vpop.permute.xlu1 %69  ;;  %v190_v47 = vsel %vm189_vm7, %v183_v45, %v68_v60 }
  0x84   :  { %v286_v13 = vsel %vm196_vm8, %v232_v7, 0  ;;  %v191_v15 = vsel %vm189_vm7, %v184_v42, %v70_v57 }
  0x85   :  { %v8183_v26 = vand.u32 4294901760, %v286_v13 }
  0x86   :  { %v93_v59 = vpop.permute.xlu0 %92 }
  0x87   :  { %v197_v30 = vsel %vm196_vm8, %v190_v47, %v93_v59  ;;  %v95_v29 = vpop.permute.xlu1 %94  ;;  %v8191_v7 = vsub.f32 %v286_v13, %v8183_v26 }
  0x88   :  { %v227_v28 = vrot.slane %v197_v30, 5  ;;  %v198_v48 = vsel %vm196_vm8, %v191_v15, %v95_v29 }
  0x89   :  { %v228_v55 = vrot.slane %v198_v48, 5  ;;  %v11386_v4 = vand.u32 4294901760, %v8191_v7 }
  0x8a   :  { %v141_v33 = vpop.permute.xlu0 %140 }
  0x8b   :  { %v229_v60 = vsel %vm126_vm1, %v227_v28, %v228_v55  ;;  %v44_v45 = vpop.permute.xlu1 %43  ;;  %v389_v57 = vsub.f32 %v8191_v7, %v11386_v4  ;;  %v205_v13 = vsel %vm182_vm6, %v115_v0, %v141_v33 }
  0x8c   :  { %v8201_v42 = vand.u32 4294901760, %v229_v60  ;;  %v185_v47 = vsel %vm182_vm6, %v11752_v56, %v44_v45 }
  0x8d   :  { %v390_v59 = vand.u32 4294901760, %v389_v57 }
  0x8e   :  { %v8207_v51 = vsub.f32 %v229_v60, %v8201_v42  ;;  %v169_v15 = vpop.permute.xlu0 %168 }
  0x8f   :  { %v211_v30 = vsel %vm189_vm7, %v205_v13, %v169_v15  ;;  %391 = vmatprep.mubr.f32.mxu0 %v390_v59  ;;  %v117_v15 = vrot.slane %v7557_v38, 4 }
  0x90   :  { %11756 = vst [vmem:[#allocation11_spill] sm:$0xff] %v8207_v51  ;;  %v72_v29 = vpop.permute.xlu1 %71  ;;  %v235_v28 = vrot.slane %v211_v30, 5  ;;  %v11389_v4 = vand.u32 4294901760, %v8207_v51 }
  0x91   :  { %v192_v48 = vsel %vm189_vm7, %v185_v47, %v72_v29  ;;  %v116_v47 = vrot.slane %v7544_v32, 4 }
  0x92   :  { %v236_v50 = vsel %vm126_vm1, %v231_v49, %v235_v28  ;;  %v97_v0 = vpop.permute.xlu0 %96  ;;  %v395_v56 = vsub.f32 %v8207_v51, %v11389_v4 }
  0x93   :  { %v288_v33 = vsel %vm196_vm8, %v236_v50, 0  ;;  %v199_v60 = vsel %vm196_vm8, %v192_v48, %v97_v0 }
  0x94   :  { %v8218_v57 = vand.u32 4294901760, %v288_v33  ;;  %v233_v13 = vrot.slane %v199_v60, 5  ;;  %v396_v59 = vand.u32 4294901760, %v395_v56 }
  0x96   :  { %v143_v45 = vpop.permute.xlu1 %142  ;;  %v8223_v49 = vsub.f32 %v288_v33, %v8218_v57  ;;  %v234_v30 = vsel %vm126_vm1, %v228_v55, %v233_v13  ;;  %v145_v29 = vpop.permute.xlu0 %144  ;;  %397 = vmatmul.mubr.f32.vlgmr.msra.gmra.mrb[0].mxu0 %v396_v59  ;;  %v118_v33 = vsel %vm110_vm5, %v116_v47, %v117_v15 }
  0x97   :  { %v8226_v28 = vand.u32 4294901760, %v234_v30  ;;  %6126 = vmatpush1.bf16.msra.mxu0 %v7937_v52  ;;  %v206_v56 = vsel %vm182_vm6, %v116_v47, %v143_v45  ;;  %v207_v59 = vsel %vm182_vm6, %v118_v33, %v145_v29 }
  0x98   :  { %11757 = vst [vmem:[#allocation12_spill] sm:$0xff] %v8223_v49  ;;  %6127 = vmatprep.subr.bf16.mxu0 %v11694_v44  ;;  %v11392_v48 = vand.u32 4294901760, %v8223_v49 }
  0x99   :  { %v8232_v0 = vsub.f32 %v234_v30, %v8226_v28 }
  0x9a   :  { %v46_v50 = vpop.permute.xlu1 %45  ;;  %v48_v60 = vpop.permute.xlu0 %47  ;;  %v404_v55 = vsub.f32 %v8223_v49, %v11392_v48 }
  0x9b   :  { %6129 = vmatpush1.bf16.msra.mxu0 %v7939_v41  ;;  %v11399_v13 = vand.u32 4294901760, %v8232_v0  ;;  %v186_v47 = vsel %vm182_vm6, 0.0, %v46_v50 }
  0x9c   :  { %6130 = vmatprep.subr.bf16.mxu0 %v11694_v44  ;;  %v405_v30 = vand.u32 4294901760, %v404_v55 }
  0x9d   :  { %v410_v45 = vsub.f32 %v8232_v0, %v11399_v13 }
  0x9e   :  { %v171_v52 = vpop.permute.xlu1 %170  ;;  %v173_v48 = vpop.permute.xlu0 %172  ;;  %406 = vmatprep.mubr.f32.mxu0 %v405_v30 }
  0x9f   :  { %v212_v4 = vsel %vm189_vm7, %v206_v56, %v171_v52  ;;  %v213_v41 = vsel %vm189_vm7, %v207_v59, %v173_v48  ;;  %6132 = vmatpush1.bf16.msra.mxu0 %v7945_v5  ;;  %v411_v29 = vand.u32 4294901760, %v410_v45  ;;  %v187_v56 = vsel %vm182_vm6, %v7544_v32, %v48_v60 }
  0xa0   :  { %v240_v51 = vrot.slane %v212_v4, 5  ;;  %v241_v33 = vrot.slane %v213_v41, 5  ;;  %6133 = vmatprep.subr.bf16.mxu0 %v11694_v44 }
  0xa1   :  { %412 = vmatmul.mubr.f32.gmra.mrb[2].mxu0 %v411_v29 }
  0xa2   :  { %v74_v49 = vpop.permute.xlu1 %73  ;;  %v242_v50 = vsel %vm126_vm1, %v240_v51, %v241_v33  ;;  %v119_v51 = vsel %vm110_vm5, %v117_v15, %v8181_v1  ;;  %v11797_v1 = vand.u32 4294901760, %v11748_v20 }
  0xa3   :  { %v193_v55 = vsel %vm189_vm7, %v186_v47, %v74_v49  ;;  %v76_v4 = vpop.permute.xlu0 %75  ;;  %v290_v52 = vsel %vm196_vm8, %v242_v50, 0  ;;  %6135 = vmatpush1.bf16.msra.mxu0 %v7956_v11 }
  0xa4   :  { %v8257_v5 = vand.u32 4294901760, %v290_v52  ;;  %v194_v59 = vsel %vm189_vm7, %v187_v56, %v76_v4  ;;  %6136 = vmatprep.subr.bf16.mxu0 %v11694_v44 }
  0xa6   :  { %v99_v48 = vpop.permute.xlu1 %98  ;;  %v8263_v32 = vsub.f32 %v290_v52, %v8257_v5 }
  0xa7   :  { %v200_v30 = vsel %vm196_vm8, %v193_v55, %v99_v48  ;;  %6138 = vmatpush1.bf16.msra.mxu0 %v7997_v16 }
  0xa8   :  { %v237_v49 = vrot.slane %v200_v30, 5  ;;  %v101_v60 = vpop.permute.xlu0 %100  ;;  %6139 = vmatprep.subr.bf16.mxu0 %v11694_v44  ;;  %v11398_v41 = vand.u32 4294901760, %v8263_v32 }
  0xa9   :  { %v201_v45 = vsel %vm196_vm8, %v194_v59, %v101_v60 }
  0xaa   :  { %v147_v11 = vpop.permute.xlu1 %146  ;;  %v238_v47 = vrot.slane %v201_v45, 5  ;;  %v419_v50 = vsub.f32 %v8263_v32, %v11398_v41 }
  0xab   :  { %v208_v29 = vsel %vm182_vm6, %v119_v51, %v147_v11  ;;  %6141 = vmatpush1.bf16.msra.mxu0 %v7999_v39 }
  0xac   :  { %v239_v56 = vsel %vm126_vm1, %v237_v49, %v238_v47  ;;  %v50_v55 = vpop.permute.xlu0 %49  ;;  %6142 = vmatprep.subr.bf16.mxu0 %v11694_v44  ;;  %v420_v48 = vand.u32 4294901760, %v419_v50 }
  0xad   :  { %v8276_v15 = vand.u32 4294901760, %v239_v56  ;;  %v188_v4 = vsel %vm182_vm6, %v7557_v38, %v50_v55 }
  0xae   :  { %v175_v16 = vpop.permute.xlu1 %174  ;;  %421 = vmatprep.mubr.f32.mxu0 %v420_v48 }
  0xaf   :  { %v214_v52 = vsel %vm189_vm7, %v208_v29, %v175_v16  ;;  %v8284_v59 = vsub.f32 %v239_v56, %v8276_v15  ;;  %6144 = vmatpush1.bf16.msra.mxu0 %v8007_v58 }
  0xb0   :  { %v245_v30 = vrot.slane %v214_v52, 5  ;;  %v78_v49 = vpop.permute.xlu0 %77  ;;  %6145 = vmatprep.subr.bf16.mxu0 %v11694_v44 }
  0xb1   :  { %v195_v51 = vsel %vm189_vm7, %v188_v4, %v78_v49  ;;  %v11397_v38 = vand.u32 4294901760, %v8284_v59 }
  0xb2   :  { %v246_v60 = vsel %vm126_vm1, %v241_v33, %v245_v30  ;;  %v103_v39 = vpop.permute.xlu1 %102 }
  0xb3   :  { %v292_v45 = vsel %vm196_vm8, %v246_v60, 0  ;;  %v202_v11 = vsel %vm196_vm8, %v195_v51, %v103_v39  ;;  %v425_v33 = vsub.f32 %v8284_v59, %v11397_v38  ;;  %6147 = vmatpush1.bf16.msra.mxu0 %v8038_v31  ;;  %v11764_v60 = vpack.c.bf16 %v7692_v24, %v7687_v23 }
  0xb4   :  { %v8293_v29 = vand.u32 4294901760, %v292_v45  ;;  %v243_v56 = vrot.slane %v202_v11, 5  ;;  %6148 = vmatprep.subr.bf16.mxu0 %v11694_v44  ;;  %v11765_v51 = vpack.c.bf16 %v7735_v10, %v7721_v37  ;;  %v11766_v39 = vpack.c.bf16 %v7766_v14, %v7761_v53 }
  0xb5   :  { %v426_v50 = vand.u32 4294901760, %v425_v33  ;;  %v11768_v11 = vpack.c.bf16 %v7826_v36, %v7800_v25  ;;  %v11770_v33 = vld [vmem:[#allocation18_spill] sm:$0xff] }
  0xb6   :  { %v8299_v55 = vsub.f32 %v292_v45, %v8293_v29  ;;  %v244_v58 = vsel %vm126_vm1, %v238_v47, %v243_v56  ;;  %v11767_v45 = vpack.c.bf16 %v7784_v61, %v7779_v12  ;;  %v11769_v56 = vld [vmem:[#allocation19_spill] sm:$0xff] }
  0xb7   :  { %v8303_v16 = vand.u32 4294901760, %v244_v58  ;;  %427 = vmatmul.mubr.f32.gmra.mrb[4].mxu0 %v426_v50  ;;  %v11772_v50 = vpack.c.bf16 %v7870_v27, %v7855_v2 }
  0xb8   :  { %v11396_v4 = vand.u32 4294901760, %v8299_v55  ;;  %6150 = vmatpush1.bf16.msra.mxu0 %v8052_v17  ;;  %v11758_v17 = vpack.c.bf16 %v11747_v46, %v7561_v40 }
  0xb9   :  { %v8308_v52 = vsub.f32 %v244_v58, %v8303_v16  ;;  %6151 = vmatprep.subr.bf16.mxu0 %v11694_v44  ;;  %v11771_v58 = vpack.c.bf16 %v11769_v56, %v11770_v33 }
  0xba   :  { %v434_v48 = vsub.f32 %v8299_v55, %v11396_v4  ;;  %v11794_v4 = vand.u32 4294901760, %v11747_v46  ;;  %v11800_v46 = vand.u32 4294901760, %v8263_v32 }
  0xbb   :  { %v11395_v31 = vand.u32 4294901760, %v8308_v52 }
  0xbc   :  { %v435_v47 = vand.u32 4294901760, %v434_v48  ;;  %6153 = vmatpush1.bf16.msra.mxu0 %v8078_v3  ;;  %v11759_v3 = vpack.c.bf16 %v11749_v21, %v11748_v20  ;;  %v11773_v48 = vld [vmem:[#allocation23_spill] sm:$0xff]  ;;  %v11803_v20 = vand.u32 4294901760, %v8284_v59 }
  0xbd   :  { %v440_v30 = vsub.f32 %v8308_v52, %v11395_v31  ;;  %6154 = vmatprep.subr.bf16.mxu0 %v11694_v44  ;;  %v11793_v31 = vand.u32 4294901760, %v7561_v40  ;;  %v11799_v40 = vand.u32 4294901760, %v8232_v0 }
  0xbe   :  { %436 = vmatprep.mubr.f32.mxu0 %v435_v47  ;;  %v11774_v47 = vld [vmem:[#allocation22_spill] sm:$0xff] }
  0xbf   :  { %v441_v49 = vand.u32 4294901760, %v440_v30  ;;  %v11775_v30 = vpack.c.bf16 %v11773_v48, %v11774_v47  ;;  %v6251_v38 = vpack.c.bf16 %v11794_v4, %v11793_v31  ;;  %v11802_v4 = vand.u32 4294901760, %v11751_v34 }
  0xc0   :  { %6156 = vmatpush1.bf16.msra.mxu0 %v8102_v35  ;;  %v11761_v35 = vpack.c.bf16 %v7627_v62, %v7605_v54  ;;  %v11813_v31 = vand.u32 4294901760, %v7692_v24  ;;  %v11819_v24 = vand.u32 4294901760, %v7784_v61  ;;  %v11825_v61 = vand.u32 4294901760, %v7870_v27  ;;  %v11828_v27 = vld [vmem:[#allocation28_spill] sm:$0xff] }
  0xc1   :  { %442 = vmatmul.mubr.f32.gmra.mrb[6].mxu0 %v441_v49  ;;  %6157 = vmatprep.subr.bf16.mxu0 %v11694_v44  ;;  %v11776_v49 = vld [vmem:[#allocation11_spill] sm:$0xff] }
  0xc2   :  { %652 = vmatprep.mubr.f32.mxu0 %v8183_v26  ;;  %v11795_v41 = vand.u32 4294901760, %v11776_v49 }
  0xc4   :  { %6159 = vmatpush1.bf16.msra.mxu0 %v8120_v22  ;;  %v11760_v22 = vpack.c.bf16 %v11751_v34, %v11750_v43  ;;  %v11808_v34 = vand.u32 4294901760, %v7639_v8 }
  0xc5   :  { %6160 = vmatprep.subr.bf16.mxu0 %v11694_v44 }
  0xc8   :  { %6162 = vmatpush1.bf16.msra.mxu0 %v8132_v6  ;;  %v11762_v6 = vpack.c.bf16 %v7644_v9, %v7639_v8  ;;  %v11814_v8 = vand.u32 4294901760, %v7721_v37  ;;  %v11821_v37 = vand.u32 4294901760, %v7826_v36  ;;  %v11827_v36 = vand.u32 4294901760, %v11773_v48 }
  0xc9   :  { %6163 = vmatprep.subr.bf16.mxu0 %v11694_v44 }
  0xcc   :  { %6165 = vmatpush1.bf16.msra.mxu0 %v8140_v63  ;;  %v11763_v63 = vpack.c.bf16 %v7666_v19, %v7661_v18 }
  0xcd   :  { %6166 = vmatprep.subr.bf16.mxu0 %v11694_v44 }
  0xcf   :  { %654 = vmatmul.mubr.f32.vlgmr.msra.gmra.mrb[0].mxu0 %v8201_v42 }
  0xd0   :  { %659 = vmatprep.mubr.f32.mxu0 %v8218_v57  ;;  %6168 = vmatpush1.bf16.msra.mxu0 %v11758_v17  ;;  %v11777_v17 = vld [vmem:[#allocation12_spill] sm:$0xff] }
  0xd1   :  { %6169 = vmatprep.subr.bf16.mxu0 %v11694_v44  ;;  %v11796_v13 = vand.u32 4294901760, %v11777_v17 }
  0xd3   :  { %661 = vmatmul.mubr.f32.gmra.mrb[2].mxu0 %v8226_v28 }
  0xd4   :  { %666 = vmatprep.mubr.f32.mxu0 %v8257_v5  ;;  %6171 = vmatpush1.bf16.msra.mxu0 %v11759_v3  ;;  %v11778_v3 = vld [vmem:[#allocation7_spill] sm:$0xff] }
  0xd5   :  { %6172 = vmatprep.subr.bf16.mxu0 %v11694_v44 }
  0xd7   :  { %668 = vmatmul.mubr.f32.gmra.mrb[4].mxu0 %v8276_v15 }
  0xd8   :  { %673 = vmatprep.mubr.f32.mxu0 %v8293_v29  ;;  %6174 = vmatpush1.bf16.msra.mxu0 %v11760_v22  ;;  %v11779_v22 = vld [vmem:[#allocation10_spill] sm:$0xff] }
  0xd9   :  { %6175 = vmatprep.subr.bf16.mxu0 %v11694_v44 }
  0xdb   :  { %675 = vmatmul.mubr.f32.gmra.mrb[6].mxu0 %v8303_v16 }
  0xdc   :  { %6177 = vmatpush1.bf16.msra.mxu0 %v11761_v35  ;;  %802 = vmatprep.mubr.f32.mxu0 %v8191_v7  ;;  %v11780_v35 = vld [vmem:[#allocation15_spill] sm:$0xff] }
  0xdd   :  { %6178 = vmatprep.subr.bf16.mxu0 %v11694_v44 }
  0xe0   :  { %6180 = vmatpush1.bf16.msra.mxu0 %v11762_v6  ;;  %v11781_v6 = vld [vmem:[#allocation16_spill] sm:$0xff] }
  0xe1   :  { %6181 = vmatprep.subr.bf16.mxu0 %v11694_v44 }
  0xe4   :  { %6183 = vmatpush1.bf16.msra.mxu0 %v11763_v63  ;;  %v11782_v63 = vand.u32 4294901760, %v8191_v7  ;;  %v11787_v7 = vld [vmem:[#allocation25_spill] sm:$0xff] }
  0xe5   :  { %6184 = vmatprep.subr.bf16.mxu0 %v11694_v44 }
  0xe8   :  { %6186 = vmatpush1.bf16.msra.mxu0 %v11764_v60  ;;  %v11783_v60 = vld [vmem:[#allocation17_spill] sm:$0xff] }
  0xe9   :  { %6187 = vmatprep.subr.bf16.mxu0 %v11694_v44 }
  0xec   :  { %6189 = vmatpush1.bf16.msra.mxu0 %v11765_v51  ;;  %v11784_v51 = vld [vmem:[#allocation20_spill] sm:$0xff] }
  0xed   :  { %6190 = vmatprep.subr.bf16.mxu0 %v11694_v44 }
  0xf0   :  { %6192 = vmatpush1.bf16.msra.mxu0 %v11766_v39  ;;  %v11785_v39 = vld [vmem:[#allocation21_spill] sm:$0xff] }
  0xf1   :  { %6193 = vmatprep.subr.bf16.mxu0 %v11694_v44 }
  0xf4   :  { %6195 = vmatpush1.bf16.msra.mxu0 %v11767_v45  ;;  %v11786_v45 = vld [vmem:[#allocation24_spill] sm:$0xff] }
  0xf5   :  { %6196 = vmatprep.subr.bf16.mxu0 %v11694_v44 }
  0xf8   :  { %6198 = vmatpush1.bf16.msra.mxu0 %v11768_v11  ;;  %v11788_v11 = vld [vmem:[#allocation26_spill] sm:$0xff] }
  0xf9   :  { %6199 = vmatprep.subr.bf16.mxu0 %v11694_v44 }
  0xfc   :  { %6201 = vmatpush1.bf16.msra.mxu0 %v11771_v58  ;;  %v11789_v58 = vld [vmem:[#allocation27_spill] sm:$0xff] }
  0xfd   :  { %6202 = vmatprep.subr.bf16.mxu0 %v11694_v44 }
 0x100   :  { %6204 = vmatpush1.bf16.msra.mxu0 %v11772_v50  ;;  %v11790_v50 = vld [vmem:[#allocation28_spill] sm:$0xff] }
 0x101   :  { %6205 = vmatprep.subr.bf16.mxu0 %v11694_v44 }
 0x104   :  { %6207 = vmatpush1.bf16.msra.mxu0 %v11775_v30  ;;  %v11791_v30 = vld [vmem:[#allocation29_spill] sm:$0xff] }
 0x105   :  { %6208 = vmatprep.subr.bf16.mxu0 %v11694_v44 }
 0x107   :  { %805 = vmatmul.mubr.f32.vlgmr.msra.gmra.mrb[0].mxu0 %v11776_v49 }
 0x108   :  { %811 = vmatprep.mubr.f32.mxu0 %v11777_v17  ;;  %6210 = vmatpush1.bf16.msra.mxu0 %v11778_v3 }
 0x109   :  { %6211 = vmatprep.subr.bf16.mxu0 %v11694_v44 }
 0x10b   :  { %814 = vmatmul.mubr.f32.gmra.mrb[2].mxu0 %v8232_v0  ;;  %v11806_v0 = vand.u32 4294901760, %v7627_v62  ;;  %v11811_v62 = vand.u32 4294901760, %v7666_v19  ;;  %v11817_v19 = vand.u32 4294901760, %v7766_v14  ;;  %v11823_v14 = vand.u32 4294901760, %v11769_v56 }
 0x10c   :  { %820 = vmatprep.mubr.f32.mxu0 %v8263_v32  ;;  %6213 = vmatpush1.bf16.msra.mxu0 %v11779_v22 }
 0x10d   :  { %6214 = vmatprep.subr.bf16.mxu0 %v11694_v44 }
 0x10f   :  { %823 = vmatmul.mubr.f32.gmra.mrb[4].mxu0 %v8284_v59  ;;  %v11809_v59 = vand.u32 4294901760, %v7644_v9  ;;  %v11815_v9 = vand.u32 4294901760, %v7735_v10  ;;  %v11820_v10 = vand.u32 4294901760, %v7800_v25  ;;  %v11826_v25 = vand.u32 4294901760, %v11774_v47 }
 0x110   :  { %829 = vmatprep.mubr.f32.mxu0 %v8299_v55  ;;  %6216 = vmatpush1.bf16.msra.mxu0 %v11780_v35 }
 0x111   :  { %6217 = vmatprep.subr.bf16.mxu0 %v11694_v44  ;;  %v6272_v17 = vpack.c.bf16 %v11815_v9, %v11814_v8  ;;  %v5849_v9 = vld [vmem:[%s11280_s1 + $0x110] sm:$0xff] }
 0x113   :  { %832 = vmatmul.mubr.f32.gmra.mrb[6].mxu0 %v8308_v52 }
 0x114   :  { %6219 = vmatpush1.bf16.msra.mxu0 %v11781_v6  ;;  %932 = vmatprep.mubr.f32.mxu0 %v11782_v63  ;;  %v11792_v63 = vld [vmem:[#allocation30_spill] sm:$0xff] }
 0x115   :  { %6220 = vmatprep.subr.bf16.mxu0 %v11694_v44 }
 0x118   :  { %6222 = vmatpush1.bf16.msra.mxu0 %v11783_v60 }
 0x119   :  { %6223 = vmatprep.subr.bf16.mxu0 %v11694_v44 }
 0x11c   :  { %6225 = vmatpush1.bf16.msra.mxu0 %v11784_v51 }
 0x11d   :  { %6226 = vmatprep.subr.bf16.mxu0 %v11694_v44 }
 0x120   :  { %6228 = vmatpush1.bf16.msra.mxu0 %v11785_v39 }
 0x121   :  { %6229 = vmatprep.subr.bf16.mxu0 %v11694_v44 }
 0x124   :  { %6231 = vmatpush1.bf16.msra.mxu0 %v11786_v45 }
 0x125   :  { %6232 = vmatprep.subr.bf16.mxu0 %v11694_v44 }
 0x128   :  { %6234 = vmatpush1.bf16.msra.mxu0 %v11787_v7 }
 0x129   :  { %6235 = vmatprep.subr.bf16.mxu0 %v11694_v44 }
 0x12c   :  { %6237 = vmatpush1.bf16.msra.mxu0 %v11788_v11 }
 0x12d   :  { %6238 = vmatprep.subr.bf16.mxu0 %v11694_v44 }
 0x130   :  { %6240 = vmatpush1.bf16.msra.mxu0 %v11789_v58 }
 0x131   :  { %6241 = vmatprep.subr.bf16.mxu0 %v11694_v44 }
 0x134   :  { %6243 = vmatpush1.bf16.msra.mxu0 %v11790_v50 }
 0x135   :  { %6244 = vmatprep.subr.bf16.mxu0 %v11694_v44 }
 0x138   :  { %6246 = vmatpush1.bf16.msra.mxu0 %v11791_v30  ;;  %v11798_v30 = vand.u32 4294901760, %v11749_v21  ;;  %v11804_v21 = vand.u32 4294901760, %v8299_v55 }
 0x139   :  { %6247 = vmatprep.subr.bf16.mxu0 %v11694_v44 }
 0x13a   :  { %v6254_v50 = vpack.c.bf16 %v11798_v30, %v11797_v1  ;;  %v11805_v1 = vand.u32 4294901760, %v7605_v54  ;;  %v11810_v54 = vand.u32 4294901760, %v7661_v18  ;;  %v11816_v18 = vand.u32 4294901760, %v7761_v53 }
 0x13b   :  { %v11822_v53 = vand.u32 4294901760, %v11770_v33 }
 0x13c   :  { %6249 = vmatpush1.bf16.msra.mxu0 %v11792_v63  ;;  %v6260_v32 = vpack.c.bf16 %v11806_v0, %v11805_v1  ;;  %v6266_v55 = vpack.c.bf16 %v11811_v62, %v11810_v54  ;;  %v5846_v54 = vld [vmem:[%s11280_s1 + $0xf8] sm:$0xff] }
 0x13d   :  { %6250 = vmatprep.subr.bf16.mxu0 %v11694_v44 }
 0x13f   :  { %936 = vmatmul.mubr.f32.vlgmr.msra.gmra.mrb[0].mxu0 %v11795_v41  ;;  %v11801_v41 = vand.u32 4294901760, %v11750_v43  ;;  %v11807_v43 = vand.u32 4294901760, %v8308_v52  ;;  %v11812_v52 = vand.u32 4294901760, %v7687_v23  ;;  %v11818_v23 = vand.u32 4294901760, %v7779_v12 }
 0x140   :  { %943 = vmatprep.mubr.f32.mxu0 %v11796_v13  ;;  %6252 = vmatpush1.bf16.msra.mxu0 %v6251_v38  ;;  %v6263_v38 = vpack.c.bf16 %v11809_v59, %v11808_v34  ;;  %v11824_v12 = vand.u32 4294901760, %v7855_v2  ;;  %v11829_v2 = vld [vmem:[#allocation29_spill] sm:$0xff]  ;;  %v5845_v34 = vld [vmem:[%s11280_s1 + $0xf0] sm:$0xff] }
 0x141   :  { %6253 = vmatprep.subr.bf16.mxu0 %v11694_v44  ;;  %v6257_v13 = vpack.c.bf16 %v11802_v4, %v11801_v41  ;;  %v6269_v49 = vpack.c.bf16 %v11813_v31, %v11812_v52  ;;  %v6278_v30 = vpack.c.bf16 %v11819_v24, %v11818_v23  ;;  %v6290_v4 = vpack.c.bf16 %v11827_v36, %v11826_v25  ;;  %v5848_v52 = vld [vmem:[%s11280_s1 + $0x108] sm:$0xff] }
 0x142   :  { %v6287_v41 = vpack.c.bf16 %v11825_v61, %v11824_v12  ;;  %v1584_v62 = vand.u32 4294901760, %v5845_v34  ;;  %v1587_v31 = vand.u32 4294901760, %v5846_v54  ;;  %v1593_v8 = vand.u32 4294901760, %v5848_v52 }
 0x143   :  { %947 = vmatmul.mubr.f32.gmra.mrb[2].mxu0 %v11799_v40  ;;  %v6281_v40 = vpack.c.bf16 %v11821_v37, %v11820_v10  ;;  %v5853_v10 = vld [vmem:[%s11280_s1 + $0x130] sm:$0xff]  ;;  %v1596_v12 = vand.u32 4294901760, %v5849_v9 }
 0x144   :  { %954 = vmatprep.mubr.f32.mxu0 %v11800_v46  ;;  %6255 = vmatpush1.bf16.msra.mxu0 %v6254_v50  ;;  %v6275_v50 = vpack.c.bf16 %v11817_v19, %v11816_v18  ;;  %v6284_v46 = vpack.c.bf16 %v11823_v14, %v11822_v53  ;;  %v5851_v18 = vld [vmem:[%s11280_s1 + $0x120] sm:$0xff]  ;;  %v8611_v24 = vsub.f32 %v5845_v34, %v1584_v62  ;;  %v5854_v14 = vld [vmem:[%s11280_s1 + $0x138] sm:$0xff]  ;;  %v1608_v36 = vand.u32 4294901760, %v5853_v10 }
 0x145   :  { %6256 = vmatprep.subr.bf16.mxu0 %v11694_v44  ;;  %v8619_v37 = vpack.c.bf16 %v1587_v31, %v1584_v62 }
 0x147   :  { %958 = vmatmul.mubr.f32.gmra.mrb[4].mxu0 %v11803_v20  ;;  %11831 = vst [vmem:[#allocation14_spill] sm:$0xff] %v8619_v37 }
 0x148   :  { %965 = vmatprep.mubr.f32.mxu0 %v11804_v21  ;;  %6258 = vmatpush1.bf16.msra.mxu0 %v6257_v13 }
 0x149   :  { %6259 = vmatprep.subr.bf16.mxu0 %v11694_v44 }
 0x14b   :  { %969 = vmatmul.mubr.f32.gmra.mrb[6].mxu0 %v11807_v43  ;;  %v5844_v43 = vld [vmem:[%s11280_s1 + $0xe8] sm:$0xff] }
 0x14c   :  { %6261 = vmatpush1.bf16.msra.mxu0 %v6260_v32  ;;  %1123 = vmatprep.mubr.f32.mxu0 %v8183_v26  ;;  %v5843_v32 = vld [vmem:[%s11280_s1 + $0xe0] sm:$0xff] }
 0x14d   :  { %6262 = vmatprep.subr.bf16.mxu0 %v11694_v44  ;;  %v1578_v59 = vand.u32 4294901760, %v5843_v32 }
 0x150   :  { %6264 = vmatpush1.bf16.msra.mxu0 %v6263_v38  ;;  %v1581_v38 = vand.u32 4294901760, %v5844_v43 }
 0x151   :  { %6265 = vmatprep.subr.bf16.mxu0 %v11694_v44 }
 0x152   :  { %v8605_v19 = vpack.c.bf16 %v1581_v38, %v1578_v59  ;;  %v8609_v23 = vsub.f32 %v5844_v43, %v1581_v38  ;;  %v5859_v43 = vld [vmem:[%s11280_s1 + $0x160] sm:$0xff] }
 0x154   :  { %6267 = vmatpush1.bf16.msra.mxu0 %v6266_v55  ;;  %v5847_v55 = vld [vmem:[%s11280_s1 + $0x100] sm:$0xff]  ;;  %11830 = vst [vmem:[#allocation13_spill] sm:$0xff] %v8605_v19  ;;  %6336 = vmatpush1.bf16.msra.mxu1 %v8605_v19 }
 0x155   :  { %6268 = vmatprep.subr.bf16.mxu0 %v11694_v44  ;;  %6337 = vmatprep.subr.bf16.mxu1 %v11694_v44 }
 0x158   :  { %6270 = vmatpush1.bf16.msra.mxu0 %v6269_v49  ;;  %v1590_v49 = vand.u32 4294901760, %v5847_v55  ;;  %6339 = vmatpush1.bf16.msra.mxu1 %v8619_v37 }
 0x159   :  { %6271 = vmatprep.subr.bf16.mxu0 %v11694_v44  ;;  %6340 = vmatprep.subr.bf16.mxu1 %v11694_v44 }
 0x15a   :  { %v8623_v53 = vsub.f32 %v5847_v55, %v1590_v49 }
 0x15c   :  { %6273 = vmatpush1.bf16.msra.mxu0 %v6272_v17  ;;  %v5850_v17 = vld [vmem:[%s11280_s1 + $0x118] sm:$0xff] }
 0x15d   :  { %6274 = vmatprep.subr.bf16.mxu0 %v11694_v44  ;;  %v1599_v61 = vand.u32 4294901760, %v5850_v17 }
 0x160   :  { %6276 = vmatpush1.bf16.msra.mxu0 %v6275_v50  ;;  %v8607_v50 = vsub.f32 %v5843_v32, %v1578_v59  ;;  %v1626_v59 = vand.u32 4294901760, %v5859_v43 }
 0x161   :  { %6277 = vmatprep.subr.bf16.mxu0 %v11694_v44 }
 0x164   :  { %6279 = vmatpush1.bf16.msra.mxu0 %v6278_v30  ;;  %v5852_v30 = vld [vmem:[%s11280_s1 + $0x128] sm:$0xff] }
 0x165   :  { %6280 = vmatprep.subr.bf16.mxu0 %v11694_v44  ;;  %v1605_v25 = vand.u32 4294901760, %v5852_v30 }
 0x168   :  { %6282 = vmatpush1.bf16.msra.mxu0 %v6281_v40  ;;  %v8621_v40 = vsub.f32 %v5846_v54, %v1587_v31 }
 0x169   :  { %6283 = vmatprep.subr.bf16.mxu0 %v11694_v44 }
 0x16c   :  { %6285 = vmatpush1.bf16.msra.mxu0 %v6284_v46  ;;  %v8629_v46 = vsub.f32 %v5848_v52, %v1593_v8  ;;  %v7424_v52 = vld [vmem:[%s11279_s0 + $0x8] sm:$0xff] }
 0x16d   :  { %6286 = vmatprep.subr.bf16.mxu0 %v11694_v44 }
 0x170   :  { %6288 = vmatpush1.bf16.msra.mxu0 %v6287_v41  ;;  %v1602_v41 = vand.u32 4294901760, %v5851_v18 }
 0x171   :  { %6289 = vmatprep.subr.bf16.mxu0 %v11694_v44 }
 0x174   :  { %6291 = vmatpush1.bf16.msra.mxu0 %v6290_v4  ;;  %v8632_v4 = vsub.f32 %v5849_v9, %v1596_v12  ;;  %v5862_v9 = vld [vmem:[%s11280_s1 + $0x178] sm:$0xff] }
 0x175   :  { %6292 = vmatprep.subr.bf16.mxu0 %v11694_v44 }
 0x177   :  { %1125 = vmatmul.mubr.f32.vlgmr.msra.gmra.mrb[0].mxu0 %v8201_v42 }
 0x178   :  { %1130 = vmatprep.mubr.f32.mxu0 %v8218_v57  ;;  %6294 = vmatpush1.bf16.msra.mxu0 %v11778_v3 }
 0x179   :  { %6295 = vmatprep.subr.bf16.mxu0 %v11694_v44 }
 0x17b   :  { %1132 = vmatmul.mubr.f32.gmra.mrb[2].mxu0 %v8226_v28 }
 0x17c   :  { %1137 = vmatprep.mubr.f32.mxu0 %v8257_v5  ;;  %6297 = vmatpush1.bf16.msra.mxu0 %v11779_v22 }
 0x17d   :  { %6298 = vmatprep.subr.bf16.mxu0 %v11694_v44 }
 0x17f   :  { %1139 = vmatmul.mubr.f32.gmra.mrb[4].mxu0 %v8276_v15 }
 0x180   :  { %1144 = vmatprep.mubr.f32.mxu0 %v8293_v29  ;;  %6300 = vmatpush1.bf16.msra.mxu0 %v11780_v35 }
 0x181   :  { %6301 = vmatprep.subr.bf16.mxu0 %v11694_v44 }
 0x183   :  { %1146 = vmatmul.mubr.f32.gmra.mrb[6].mxu0 %v8303_v16 }
 0x184   :  { %6303 = vmatpush1.bf16.msra.mxu0 %v11781_v6  ;;  %1244 = vmatprep.mubr.f32.mxu0 %v8183_v26  ;;  %v5838_v26 = vld [vmem:[%s11281_s2] ss:$0 sm:$0xff] }
 0x185   :  { %6304 = vmatprep.subr.bf16.mxu0 %v11694_v44 }
 0x188   :  { %6306 = vmatpush1.bf16.msra.mxu0 %v11783_v60 }
 0x189   :  { %6307 = vmatprep.subr.bf16.mxu0 %v11694_v44 }
 0x18c   :  { %6309 = vmatpush1.bf16.msra.mxu0 %v11784_v51 }
 0x18d   :  { %6310 = vmatprep.subr.bf16.mxu0 %v11694_v44 }
 0x190   :  { %6312 = vmatpush1.bf16.msra.mxu0 %v11785_v39 }
 0x191   :  { %6313 = vmatprep.subr.bf16.mxu0 %v11694_v44 }
 0x194   :  { %6315 = vmatpush1.bf16.msra.mxu0 %v11786_v45 }
 0x195   :  { %6316 = vmatprep.subr.bf16.mxu0 %v11694_v44 }
 0x198   :  { %6318 = vmatpush1.bf16.msra.mxu0 %v11787_v7 }
 0x199   :  { %6319 = vmatprep.subr.bf16.mxu0 %v11694_v44 }
 0x19c   :  { %6321 = vmatpush1.bf16.msra.mxu0 %v11788_v11 }
 0x19d   :  { %6322 = vmatprep.subr.bf16.mxu0 %v11694_v44 }
 0x1a0   :  { %6324 = vmatpush1.bf16.msra.mxu0 %v11789_v58 }
 0x1a1   :  { %6325 = vmatprep.subr.bf16.mxu0 %v11694_v44 }
 0x1a4   :  { %6327 = vmatpush1.bf16.msra.mxu0 %v11828_v27  ;;  %v8634_v27 = vsub.f32 %v5850_v17, %v1599_v61 }
 0x1a5   :  { %6328 = vmatprep.subr.bf16.mxu0 %v11694_v44 }
 0x1a8   :  { %6330 = vmatpush1.bf16.msra.mxu0 %v11829_v2  ;;  %v8636_v2 = vsub.f32 %v5851_v18, %v1602_v41  ;;  %v1635_v18 = vand.u32 4294901760, %v5862_v9 }
 0x1a9   :  { %6331 = vmatprep.subr.bf16.mxu0 %v11694_v44 }
 0x1ac   :  { %6333 = vmatpush1.bf16.msra.mxu0 %v11792_v63 }
 0x1ad   :  { %6586 = vmatprep.subr.bf16.mxu0 %v11694_v44 }
 0x1af   :  { %1246 = vmatmul.mubr.f32.vlgmr.msra.gmra.mrb[0].mxu0 %v8201_v42 }
 0x1b0   :  { %1251 = vmatprep.mubr.f32.mxu0 %v8218_v57 }
 0x1b3   :  { %1253 = vmatmul.mubr.f32.gmra.mrb[2].mxu0 %v8226_v28 }
 0x1b4   :  { %1258 = vmatprep.mubr.f32.mxu0 %v8257_v5 }
 0x1b7   :  { %1260 = vmatmul.mubr.f32.gmra.mrb[4].mxu0 %v8276_v15 }
 0x1b8   :  { %1265 = vmatprep.mubr.f32.mxu0 %v8293_v29 }
 0x1bb   :  { %1267 = vmatmul.mubr.f32.gmra.mrb[6].mxu0 %v8303_v16 }
 0x282   :  { %v1247_v56 = vpop.f32.mrb[0].mxu0 }
 0x283   :  { %v8562_v33 = vadd.f32 %v5838_v26, %v1247_v56  ;;  %v1249_v42 = vpop.f32.mrb[1].mxu0  ;;  %v8638_v56 = vsub.f32 %v5852_v30, %v1605_v25 }
 0x284   :  { %v8640_v42 = vsub.f32 %v5853_v10, %v1608_v36 }
 0x285   :  { %v5839_v57 = vmul.f32 -1.442695, %v8562_v33 }
 0x286   :  { %v1254_v48 = vpop.f32.mrb[2].mxu0 }
 0x287   :  { %7343 = vpow2.f32 %v5839_v57  ;;  %v8565_v28 = vadd.f32 %v5838_v26, %v1254_v48  ;;  %v1256_v5 = vpop.f32.mrb[3].mxu0  ;;  %v8643_v57 = vpack.c.bf16 %v1593_v8, %v1590_v49  ;;  %v8712_v49 = vsub.f32 %v5859_v43, %v1626_v59 }
 0x288   :  { %v8649_v5 = vpack.c.bf16 %v1599_v61, %v1596_v12 }
 0x289   :  { %v5840_v15 = vmul.f32 -1.442695, %v8565_v28  ;;  %11832 = vst [vmem:[#allocation4_spill] sm:$0xff] %v8643_v57  ;;  %6342 = vmatpush1.bf16.msra.mxu1 %v8643_v57 }
 0x28a   :  { %v1261_v29 = vpop.f32.mrb[4].mxu0  ;;  %11833 = vst [vmem:[#allocation2_spill] sm:$0xff] %v8649_v5  ;;  %6343 = vmatprep.subr.bf16.mxu1 %v11694_v44 }
 0x28b   :  { %7345 = vpow2.f32 %v5840_v15  ;;  %v8568_v16 = vadd.f32 %v5838_v26, %v1261_v29  ;;  %v1263_v47 = vpop.f32.mrb[5].mxu0  ;;  %v8653_v15 = vpack.c.bf16 %v1605_v25, %v1602_v41  ;;  %v5863_v25 = vld [vmem:[%s11280_s1 + $0x180] sm:$0xff] }
 0x28c   :  { %v5855_v47 = vld [vmem:[%s11280_s1 + $0x140] sm:$0xff] }
 0x28d   :  { %v5841_v3 = vmul.f32 -1.442695, %v8568_v16  ;;  %6345 = vmatpush1.bf16.msra.mxu1 %v8649_v5  ;;  %11834 = vst [vmem:[#allocation19_spill] sm:$0xff] %v8653_v15 }
 0x28e   :  { %v1268_v22 = vpop.f32.mrb[6].mxu0  ;;  %6346 = vmatprep.subr.bf16.mxu1 %v11694_v44 }
 0x28f   :  { %7347 = vpow2.f32 %v5841_v3  ;;  %v8571_v35 = vadd.f32 %v5838_v26, %v1268_v22  ;;  %v1270_v6 = vpop.f32.mrb[7].mxu0  ;;  %v1611_v26 = vand.u32 4294901760, %v5854_v14  ;;  %v5856_v3 = vld [vmem:[%s11280_s1 + $0x148] sm:$0xff]  ;;  %v1614_v22 = vand.u32 4294901760, %v5855_v47 }
 0x290   :  { %v1617_v6 = vand.u32 4294901760, %v5856_v3 }
 0x291   :  { %v7344_v60 = vpop.eup %7343  ;;  %v5842_v51 = vmul.f32 -1.442695, %v8571_v35  ;;  %v8645_v48 = vsub.f32 %v5854_v14, %v1611_v26  ;;  %6348 = vmatpush1.bf16.msra.mxu1 %v8653_v15  ;;  %v8657_v29 = vpack.c.bf16 %v1611_v26, %v1608_v36  ;;  %v5864_v36 = vld [vmem:[%s11280_s1 + $0x188] sm:$0xff] }
 0x292   :  { %v1284_v39 = vadd.f32 1.0, %v7344_v60  ;;  %6349 = vmatprep.subr.bf16.mxu1 %v11694_v44  ;;  %v8668_v60 = vpack.c.bf16 %v1617_v6, %v1614_v22  ;;  %v11842_v26 = vld [vmem:[#allocation3_spill] sm:$0xff] }
 0x293   :  { %7349 = vpow2.f32 %v5842_v51  ;;  %11835 = vst [vmem:[#allocation18_spill] sm:$0xff] %v8657_v29  ;;  %v8670_v51 = vsub.f32 %v5855_v47, %v1614_v22 }
 0x294   :  { %7351 = vrcp.f32 %v1284_v39  ;;  %11836 = vst [vmem:[#allocation23_spill] sm:$0xff] %v8668_v60  ;;  %v8672_v39 = vsub.f32 %v5856_v3, %v1617_v6 }
 0x295   :  { %v7346_v45 = vpop.eup %7345  ;;  %6351 = vmatpush1.bf16.msra.mxu1 %v8657_v29 }
 0x296   :  { %v1285_v7 = vadd.f32 1.0, %v7346_v45  ;;  %6352 = vmatprep.subr.bf16.mxu1 %v11694_v44  ;;  %v5857_v45 = vld [vmem:[%s11280_s1 + $0x150] sm:$0xff] }
 0x298   :  { %7353 = vrcp.f32 %v1285_v7  ;;  %v5858_v7 = vld [vmem:[%s11280_s1 + $0x158] sm:$0xff] }
 0x299   :  { %v7348_v11 = vpop.eup %7347  ;;  %6354 = vmatpush1.bf16.msra.mxu1 %v8668_v60 }
 0x29a   :  { %v1286_v58 = vadd.f32 1.0, %v7348_v11  ;;  %6355 = vmatprep.subr.bf16.mxu1 %v11694_v44 }
 0x29c   :  { %7355 = vrcp.f32 %v1286_v58  ;;  %v1620_v58 = vand.u32 4294901760, %v5857_v45 }
 0x29d   :  { %v7350_v63 = vpop.eup %7349 }
 0x29e   :  { %v7352_v13 = vpop.eup %7351  ;;  %v1287_v20 = vadd.f32 1.0, %v7350_v63  ;;  %v1623_v63 = vand.u32 4294901760, %v5858_v7 }
 0x29f   :  { %1300 = vrot.lane.b32.xlu0 %v7352_v13, %s7431_s11 }
 0x2a0   :  { %7357 = vrcp.f32 %v1287_v20  ;;  %v8683_v20 = vpack.c.bf16 %v1623_v63, %v1620_v58 }
 0x2a2   :  { %v7354_v21 = vpop.eup %7353  ;;  %11837 = vst [vmem:[#allocation22_spill] sm:$0xff] %v8683_v20  ;;  %6357 = vmatpush1.bf16.msra.mxu1 %v8683_v20 }
 0x2a3   :  { %1302 = vrot.lane.b32.xlu1 %v7354_v21, %s7431_s11  ;;  %v8685_v21 = vsub.f32 %v5857_v45, %v1620_v58  ;;  %6358 = vmatprep.subr.bf16.mxu1 %v11694_v44  ;;  %v5865_v58 = vld [vmem:[%s11280_s1 + $0x190] sm:$0xff] }
 0x2a6   :  { %v7356_v1 = vpop.eup %7355 }
 0x2a7   :  { %1304 = vrot.lane.b32.xlu0 %v7356_v1, %s7431_s11  ;;  %v8687_v1 = vsub.f32 %v5858_v7, %v1623_v63  ;;  %v8753_v7 = vsub.f32 %v5862_v9, %v1635_v18  ;;  %v5866_v63 = vld [vmem:[%s11280_s1 + $0x198] sm:$0xff] }
 0x2a8   :  { %v1647_v43 = vand.u32 4294901760, %v5866_v63 }
 0x2aa   :  { %v7358_v0 = vpop.eup %7357 }
 0x2ab   :  { %1306 = vrot.lane.b32.xlu1 %v7358_v0, %s7431_s11  ;;  %v7423_v0 = vld [vmem:[%s11279_s0] sm:$0xff] }
 0x311   :  { %v1301_v11 = vpop.permute.xlu0 %1300 }
 0x312   :  { %v1312_v13 = vmul.f32 %v8562_v33, %v1301_v11  ;;  %v5860_v33 = vld [vmem:[%s11280_s1 + $0x168] sm:$0xff]  ;;  %v1638_v11 = vand.u32 4294901760, %v5863_v25 }
 0x313   :  { %v1629_v38 = vand.u32 4294901760, %v5860_v33 }
 0x314   :  { %v8692_v32 = vadd.f32 %v7423_v0, %v1312_v13  ;;  %v1641_v13 = vand.u32 4294901760, %v5864_v36  ;;  %v1644_v0 = vand.u32 4294901760, %v5865_v58 }
 0x315   :  { %v1303_v34 = vpop.permute.xlu1 %1302  ;;  %v8704_v55 = vpack.c.bf16 %v1629_v38, %v1626_v59  ;;  %v8714_v8 = vsub.f32 %v5860_v33, %v1629_v38  ;;  %v11843_v33 = vld [vmem:[#allocation5_spill] sm:$0xff]  ;;  %v8766_v38 = vsub.f32 %v5863_v25, %v1638_v11 }
 0x316   :  { %11838 = vst [vmem:[#allocation11_spill] sm:$0xff] %v8692_v32  ;;  %v1313_v54 = vmul.f32 %v8565_v28, %v1303_v34  ;;  %v1414_v62 = vrot.slane %v8692_v32, 5  ;;  %v5861_v28 = vld [vmem:[%s11280_s1 + $0x170] sm:$0xff]  ;;  %v1440_v30 = vrot.slane %v8692_v32, 6  ;;  %v1324_v14 = vrot.slane %v8692_v32, 1 }
 0x317   :  { %11839 = vst [vmem:[#allocation12_spill] sm:$0xff] %v8704_v55  ;;  %6360 = vmatpush1.bf16.msra.mxu1 %v8704_v55  ;;  %v1632_v17 = vand.u32 4294901760, %v5861_v28  ;;  %v1350_v3 = vrot.slane %v8692_v32, 2  ;;  %v8764_v59 = vpack.c.bf16 %v1641_v13, %v1638_v11  ;;  %v8779_v9 = vpack.c.bf16 %v1647_v43, %v1644_v0 }
 0x318   :  { %v8709_v31 = vadd.f32 %v7424_v52, %v1313_v54  ;;  %1422 = vrot.lane.b32.xlu0 %v1414_v62, %s7428_s22  ;;  %6361 = vmatprep.subr.bf16.mxu1 %v11694_v44  ;;  %v1325_v47 = vsel %vm29_vm0, %v11842_v26, %v1324_v14  ;;  %v8768_v54 = vsub.f32 %v5864_v36, %v1641_v13 }
 0x319   :  { %v8727_v12 = vpack.c.bf16 %v1635_v18, %v1632_v17  ;;  %v8745_v22 = vsub.f32 %v5861_v28, %v1632_v17  ;;  %v1351_v34 = vsel %vm57_vm3, %v11843_v33, %v1350_v3  ;;  %11844 = vst [vmem:[#allocation15_spill] sm:$0xff] %v8764_v59  ;;  %v1376_v28 = vrot.slane %v8692_v32, 3  ;;  %11845 = vst [vmem:[#allocation16_spill] sm:$0xff] %v8779_v9  ;;  %v1305_v13 = vpop.permute.xlu0 %1304 }
 0x31a   :  { %11840 = vst [vmem:[#allocation7_spill] sm:$0xff] %v8709_v31  ;;  %v1415_v10 = vrot.slane %v8709_v31, 5  ;;  %v1326_v41 = vrot.slane %v8709_v31, 1  ;;  %v11404_v45 = vrot.slane %v8709_v31, 6  ;;  %v1352_v52 = vrot.slane %v8709_v31, 2 }
 0x31b   :  { %11841 = vst [vmem:[#allocation10_spill] sm:$0xff] %v8727_v12  ;;  %6363 = vmatpush1.bf16.msra.mxu1 %v8727_v12  ;;  %v8781_v17 = vsub.f32 %v5865_v58, %v1644_v0  ;;  %v8783_v18 = vsub.f32 %v5866_v63, %v1647_v43  ;;  %v5869_v43 = vld [vmem:[%s11280_s1 + $0x1b0] sm:$0xff] }
 0x31c   :  { %1448 = vrot.lane.b32.xlu0 %v1440_v30, %s7429_s12  ;;  %v1416_v61 = vsel %vm126_vm1, %v1414_v62, %v1415_v10  ;;  %6364 = vmatprep.subr.bf16.mxu1 %v11694_v44  ;;  %v1327_v6 = vsel %vm29_vm0, %v1324_v14, %v1326_v41  ;;  %v1442_v62 = vsel %vm154_vm2, %v1440_v30, %v11404_v45  ;;  %v5867_v30 = vld [vmem:[%s11280_s1 + $0x1a0] sm:$0xff]  ;;  %v5868_v14 = vld [vmem:[%s11280_s1 + $0x1a8] sm:$0xff]  ;;  %v11408_v45 = vand.u32 4294901760, %v8621_v40 }
 0x31d   :  { %1424 = vrot.lane.b32.xlu1 %v1416_v61, %s7428_s22  ;;  %11846 = vst [vmem:[#allocation17_spill] sm:$0xff] %v8781_v17  ;;  %11847 = vst [vmem:[#allocation20_spill] sm:$0xff] %v8783_v18  ;;  %v1650_v61 = vand.u32 4294901760, %v5867_v30  ;;  %v1653_v25 = vand.u32 4294901760, %v5868_v14  ;;  %v1353_v36 = vsel %vm57_vm3, %v1350_v3, %v1352_v52  ;;  %v1307_v63 = vpop.permute.xlu1 %1306 }
 0x31e   :  { %v1315_v0 = vmul.f32 %v8571_v35, %v1307_v63 }
 0x31f   :  { %6366 = vmatpush1.bf16.msra.mxu1 %v8764_v59  ;;  %v8798_v11 = vsub.f32 %v5867_v30, %v1650_v61  ;;  %v8800_v58 = vsub.f32 %v5868_v14, %v1653_v25  ;;  %v1314_v30 = vmul.f32 %v8568_v16, %v1305_v13  ;;  %v11851_v14 = vld [vmem:[#allocation6_spill] sm:$0xff]  ;;  %v11405_v13 = vand.u32 4294901760, %v8611_v24 }
 0x320   :  { %1332 = vrot.lane.b32.xlu0 %v1325_v47, %s7428_s22  ;;  %6367 = vmatprep.subr.bf16.mxu1 %v11694_v44  ;;  %v1377_v47 = vrot.slane %v8709_v31, 3  ;;  %v1417_v35 = vsel %vm126_vm1, %v1415_v10, %v11851_v14 }
 0x321   :  { %1334 = vrot.lane.b32.xlu1 %v1327_v6, %s7428_s22  ;;  %v8796_v6 = vpack.c.bf16 %v1653_v25, %v1650_v61  ;;  %11849 = vst [vmem:[#allocation24_spill] sm:$0xff] %v8798_v11  ;;  %11850 = vst [vmem:[#allocation25_spill] sm:$0xff] %v8800_v58  ;;  %v1656_v61 = vand.u32 4294901760, %v5869_v43 }
 0x322   :  { %v1378_v3 = vsel %vm85_vm4, %v1376_v28, %v1377_v47 }
 0x323   :  { %6369 = vmatpush1.bf16.msra.mxu1 %v8779_v9  ;;  %11848 = vst [vmem:[#allocation21_spill] sm:$0xff] %v8796_v6  ;;  %v8834_v63 = vsub.f32 %v5869_v43, %v1656_v61 }
 0x324   :  { %1358 = vrot.lane.b32.xlu0 %v1351_v34, %s7429_s12  ;;  %6370 = vmatprep.subr.bf16.mxu1 %v11694_v44  ;;  %v5870_v34 = vld [vmem:[%s11280_s1 + $0x1b8] sm:$0xff] }
 0x325   :  { %1450 = vrot.lane.b32.xlu1 %v1442_v62, %s7429_s12  ;;  %v11402_v62 = vand.u32 4294901760, %v8607_v50  ;;  %v1659_v25 = vand.u32 4294901760, %v5870_v34  ;;  %11853 = vst [vmem:[#allocation27_spill] sm:$0xff] %v8834_v63 }
 0x327   :  { %6372 = vmatpush1.bf16.msra.mxu1 %v8796_v6  ;;  %v8832_v16 = vpack.c.bf16 %v1659_v25, %v1656_v61  ;;  %v8836_v10 = vsub.f32 %v5870_v34, %v1659_v25  ;;  %v11857_v34 = vld [vmem:[#allocation9_spill] sm:$0xff]  ;;  %v11858_v61 = vrot.slane %v8709_v31, 6 }
 0x328   :  { %1382 = vrot.lane.b32.xlu0 %v1376_v28, %s7431_s11  ;;  %6373 = vmatprep.subr.bf16.mxu1 %v11694_v44  ;;  %v11403_v28 = vand.u32 4294901760, %v8609_v23 }
 0x329   :  { %1360 = vrot.lane.b32.xlu1 %v1353_v36, %s7429_s12  ;;  %v1734_v36 = vsub.f32 %v8607_v50, %v11402_v62  ;;  %11852 = vst [vmem:[#allocation26_spill] sm:$0xff] %v8832_v16  ;;  %11854 = vst [vmem:[#allocation30_spill] sm:$0xff] %v8836_v10  ;;  %v1443_v25 = vsel %vm154_vm2, %v11858_v61, %v11857_v34  ;;  %v11411_v61 = vand.u32 4294901760, %v8623_v53 }
 0x32b   :  { %v1735_v62 = vand.u32 4294901760, %v1734_v36  ;;  %6375 = vmatpush1.bf16.msra.mxu1 %v8832_v16 }
 0x32c   :  { %1386 = vrot.lane.b32.xlu0 %v1377_v47, %s7431_s11  ;;  %v1741_v47 = vsub.f32 %v8609_v23, %v11403_v28  ;;  %6376 = vmatprep.subr.bf16.mxu1 %v11694_v44 }
 0x32d   :  { %1384 = vrot.lane.b32.xlu1 %v1378_v3, %s7431_s11  ;;  %v7425_v3 = vld [vmem:[%s11279_s0 + $0x18] sm:$0xff] }
 0x32e   :  { %v1742_v28 = vand.u32 4294901760, %v1741_v47 }
 0x330   :  { %1426 = vrot.lane.b32.xlu0 %v1417_v35, %s7428_s22  ;;  %v8842_v35 = vadd.f32 %v7425_v3, %v1315_v0  ;;  %v1748_v0 = vsub.f32 %v8611_v24, %v11405_v13  ;;  %v8860_v36 = vpack.c.bf16 %v1742_v28, %v1735_v62  ;;  %v11412_v13 = vand.u32 4294901760, %v8629_v46 }
 0x331   :  { %1336 = vrot.lane.b32.xlu1 %v1326_v41, %s7428_s22  ;;  %v7426_v41 = vld [vmem:[%s11279_s0 + $0x10] sm:$0xff] }
 0x332   :  { %11855 = vst [vmem:[#allocation28_spill] sm:$0xff] %v8842_v35  ;;  %v8848_v43 = vadd.f32 %v7426_v41, %v1314_v30  ;;  %v1755_v30 = vsub.f32 %v8621_v40, %v11408_v45  ;;  %v1749_v47 = vand.u32 4294901760, %v1748_v0  ;;  %v1330_v3 = vrot.slane %v8842_v35, 1 }
 0x333   :  { %v1419_v16 = vrot.slane %v8842_v35, 5  ;;  %v1769_v28 = vsub.f32 %v8629_v46, %v11412_v13  ;;  %v1445_v9 = vrot.slane %v8842_v35, 6 }
 0x334   :  { %11856 = vst [vmem:[#allocation29_spill] sm:$0xff] %v8848_v43  ;;  %1452 = vrot.lane.b32.xlu0 %v1443_v25, %s7429_s12  ;;  %v1756_v41 = vand.u32 4294901760, %v1755_v30  ;;  %v1418_v25 = vrot.slane %v8848_v43, 5  ;;  %v1444_v6 = vrot.slane %v8848_v43, 6  ;;  %v1328_v13 = vrot.slane %v8848_v43, 1 }
 0x335   :  { %1362 = vrot.lane.b32.xlu1 %v1352_v52, %s7429_s12  ;;  %v1762_v52 = vsub.f32 %v8623_v53, %v11411_v61  ;;  %v1770_v30 = vand.u32 4294901760, %v1769_v28  ;;  %v11420_v61 = vand.u32 4294901760, %v8634_v27  ;;  %v11428_v28 = vand.u32 4294901760, %v8638_v56 }
 0x336   :  { %v8872_v62 = vpack.c.bf16 %v1756_v41, %v1749_v47  ;;  %v1420_v45 = vsel %vm126_vm1, %v1418_v25, %v1419_v16  ;;  %v11419_v41 = vand.u32 4294901760, %v8632_v4  ;;  %v1446_v60 = vsel %vm154_vm2, %v1444_v6, %v1445_v9 }
 0x337   :  { %v1763_v0 = vand.u32 4294901760, %v1762_v52 }
 0x338   :  { %1342 = vrot.lane.b32.xlu0 %v1330_v3, %s7428_s22  ;;  %v1776_v52 = vsub.f32 %v8632_v4, %v11419_v41 }
 0x339   :  { %1428 = vrot.lane.b32.xlu1 %v1418_v25, %s7428_s22  ;;  %v8884_v47 = vpack.c.bf16 %v1770_v30, %v1763_v0  ;;  %v1783_v25 = vsub.f32 %v8634_v27, %v11420_v61  ;;  %v1331_v0 = vsel %vm29_vm0, %v1328_v13, %v1330_v3  ;;  %v1379_v30 = vrot.slane %v8848_v43, 3 }
 0x33a   :  { %v1777_v59 = vand.u32 4294901760, %v1776_v52  ;;  %v1797_v61 = vsub.f32 %v8638_v56, %v11428_v28  ;;  %v1356_v52 = vrot.slane %v8842_v35, 2  ;;  %v11429_v28 = vand.u32 4294901760, %v8640_v42 }
 0x33b   :  { %v1784_v12 = vand.u32 4294901760, %v1783_v25  ;;  %v1329_v25 = vsel %vm29_vm0, %v11842_v26, %v1328_v13  ;;  %v1380_v13 = vrot.slane %v8842_v35, 3 }
 0x33c   :  { %1430 = vrot.lane.b32.xlu0 %v1420_v45, %s7428_s22  ;;  %v11427_v45 = vand.u32 4294901760, %v8636_v2  ;;  %v1798_v20 = vand.u32 4294901760, %v1797_v61 }
 0x33d   :  { %1454 = vrot.lane.b32.xlu1 %v1444_v6, %s7429_s12  ;;  %v8909_v55 = vpack.c.bf16 %v1784_v12, %v1777_v59  ;;  %v11430_v12 = vand.u32 4294901760, %v8645_v48  ;;  %v1804_v59 = vsub.f32 %v8640_v42, %v11429_v28 }
 0x33e   :  { %v1790_v41 = vsub.f32 %v8636_v2, %v11427_v45 }
 0x33f   :  { %v1811_v6 = vsub.f32 %v8645_v48, %v11430_v12  ;;  %v1805_v61 = vand.u32 4294901760, %v1804_v59  ;;  %v1421_v59 = vsel %vm126_vm1, %v1419_v16, %v11851_v14 }
 0x340   :  { %1340 = vrot.lane.b32.xlu0 %v1331_v0, %s7428_s22  ;;  %v1791_v3 = vand.u32 4294901760, %v1790_v41  ;;  %v1354_v0 = vrot.slane %v8848_v43, 2 }
 0x341   :  { %1388 = vrot.lane.b32.xlu1 %v1379_v30, %s7431_s11  ;;  %v1812_v41 = vand.u32 4294901760, %v1811_v6 }
 0x342   :  { %v8917_v45 = vpack.c.bf16 %v1798_v20, %v1791_v3  ;;  %v1355_v20 = vsel %vm57_vm3, %v11843_v33, %v1354_v0  ;;  %v11435_v3 = vand.u32 4294901760, %v8670_v51 }
 0x343   :  { %v8936_v28 = vpack.c.bf16 %v1812_v41, %v1805_v61  ;;  %v11433_v61 = vand.u32 4294901760, %v8687_v1 }
 0x344   :  { %1456 = vrot.lane.b32.xlu0 %v1446_v60, %s7429_s12  ;;  %v1357_v60 = vsel %vm57_vm3, %v1354_v0, %v1356_v52  ;;  %v1818_v12 = vsub.f32 %v8670_v51, %v11435_v3 }
 0x345   :  { %1338 = vrot.lane.b32.xlu1 %v1329_v25, %s7428_s22  ;;  %v11432_v25 = vand.u32 4294901760, %v8672_v39  ;;  %v1839_v16 = vsub.f32 %v8687_v1, %v11433_v61 }
 0x346   :  { %v1819_v6 = vand.u32 4294901760, %v1818_v12  ;;  %v1447_v12 = vsel %vm154_vm2, %v1445_v9, %v11857_v34  ;;  %v11440_v9 = vand.u32 4294901760, %v8753_v7  ;;  %v11439_v34 = vand.u32 4294901760, %v8766_v38 }
 0x347   :  { %v1825_v0 = vsub.f32 %v8672_v39, %v11432_v25 }
 0x348   :  { %1366 = vrot.lane.b32.xlu0 %v1357_v60, %s7429_s12  ;;  %v1381_v60 = vsel %vm85_vm4, %v1379_v30, %v1380_v13  ;;  %v11436_v30 = vand.u32 4294901760, %v8712_v49 }
 0x349   :  { %1364 = vrot.lane.b32.xlu1 %v1355_v20, %s7429_s12  ;;  %v1826_v33 = vand.u32 4294901760, %v1825_v0  ;;  %v11434_v20 = vand.u32 4294901760, %v8685_v21  ;;  %v11437_v0 = vand.u32 4294901760, %v8714_v8 }
 0x34b   :  { %v8951_v41 = vpack.c.bf16 %v1826_v33, %v1819_v6  ;;  %v1832_v25 = vsub.f32 %v8685_v21, %v11434_v20  ;;  %v1840_v33 = vand.u32 4294901760, %v1839_v16  ;;  %v11442_v6 = vand.u32 4294901760, %v8745_v22 }
 0x34c   :  { %1390 = vrot.lane.b32.xlu0 %v1381_v60, %s7431_s11  ;;  %v1853_v61 = vsub.f32 %v8714_v8, %v11437_v0  ;;  %v1867_v16 = vsub.f32 %v8753_v7, %v11440_v9 }
 0x34d   :  { %1432 = vrot.lane.b32.xlu1 %v1421_v59, %s7428_s22  ;;  %v1833_v60 = vand.u32 4294901760, %v1832_v25  ;;  %v1846_v59 = vsub.f32 %v8712_v49, %v11436_v30 }
 0x34e   :  { %v1854_v25 = vand.u32 4294901760, %v1853_v61  ;;  %v1868_v0 = vand.u32 4294901760, %v1867_v16  ;;  %v1874_v61 = vsub.f32 %v8766_v38, %v11439_v34 }
 0x34f   :  { %v8973_v20 = vpack.c.bf16 %v1840_v33, %v1833_v60  ;;  %v1847_v3 = vand.u32 4294901760, %v1846_v59  ;;  %v11441_v60 = vand.u32 4294901760, %v8768_v54 }
 0x350   :  { %1368 = vrot.lane.b32.xlu0 %v1356_v52, %s7429_s12  ;;  %v1860_v52 = vsub.f32 %v8745_v22, %v11442_v6  ;;  %v11448_v6 = vand.u32 4294901760, %v8800_v58 }
 0x351   :  { %1458 = vrot.lane.b32.xlu1 %v1447_v12, %s7429_s12  ;;  %v8982_v12 = vpack.c.bf16 %v1854_v25, %v1847_v3  ;;  %v1881_v59 = vsub.f32 %v8768_v54, %v11441_v60  ;;  %v1875_v3 = vand.u32 4294901760, %v1874_v61  ;;  %v11445_v60 = vand.u32 4294901760, %v8798_v11 }
 0x352   :  { %v1861_v30 = vand.u32 4294901760, %v1860_v52  ;;  %v11444_v52 = vand.u32 4294901760, %v8781_v17 }
 0x353   :  { %v1882_v25 = vand.u32 4294901760, %v1881_v59  ;;  %v1902_v61 = vsub.f32 %v8798_v11, %v11445_v60  ;;  %v1909_v59 = vsub.f32 %v8800_v58, %v11448_v6 }
 0x354   :  { %v8986_v33 = vpack.c.bf16 %v1868_v0, %v1861_v30  ;;  %v1888_v16 = vsub.f32 %v8781_v17, %v11444_v52 }
 0x355   :  { %1392 = vrot.lane.b32.xlu1 %v1380_v13, %s7431_s11  ;;  %v11446_v13 = vand.u32 4294901760, %v8783_v18  ;;  %v9002_v0 = vpack.c.bf16 %v1882_v25, %v1875_v3  ;;  %v1903_v52 = vand.u32 4294901760, %v1902_v61  ;;  %v11449_v3 = vand.u32 4294901760, %v8834_v63 }
 0x356   :  { %v1889_v34 = vand.u32 4294901760, %v1888_v16  ;;  %v11450_v25 = vand.u32 4294901760, %v8836_v10  ;;  %v1910_v16 = vand.u32 4294901760, %v1909_v59 }
 0x357   :  { %v1895_v30 = vsub.f32 %v8783_v18, %v11446_v13 }
 0x359   :  { %v1896_v9 = vand.u32 4294901760, %v1895_v30  ;;  %v1916_v30 = vsub.f32 %v8834_v63, %v11449_v3 }
 0x35b   :  { %v9006_v14 = vpack.c.bf16 %v1896_v9, %v1889_v34  ;;  %v1923_v34 = vsub.f32 %v8836_v10, %v11450_v25  ;;  %v9022_v9 = vpack.c.bf16 %v1910_v16, %v1903_v52  ;;  %v1917_v60 = vand.u32 4294901760, %v1916_v30 }
 0x35d   :  { %v1924_v13 = vand.u32 4294901760, %v1923_v34 }
 0x35f   :  { %v9024_v26 = vpack.c.bf16 %v1924_v13, %v1917_v60  ;;  %v1401_v60 = vrot.slane %v8709_v31, 4  ;;  %v1400_v13 = vrot.slane %v8692_v32, 4 }
 0x361   :  { %v1402_v3 = vsel %vm110_vm5, %v1400_v13, %v1401_v60 }
 0x38a   :  { %v1423_v25 = vpop.permute.xlu0 %1422 }
 0x38b   :  { %v1484_v34 = vsel %vm182_vm6, %v1400_v13, %v1423_v25 }
 0x38e   :  { %v1449_v52 = vpop.permute.xlu0 %1448 }
 0x38f   :  { %v1425_v6 = vpop.permute.xlu1 %1424  ;;  %v1490_v29 = vsel %vm189_vm7, %v1484_v34, %v1449_v52 }
 0x390   :  { %v1485_v5 = vsel %vm182_vm6, %v1402_v3, %v1425_v6  ;;  %v1511_v19 = vrot.slane %v1490_v29, 5 }
 0x392   :  { %v1333_v59 = vpop.permute.xlu0 %1332 }
 0x393   :  { %v1335_v61 = vpop.permute.xlu1 %1334  ;;  %v1466_v25 = vsel %vm182_vm6, 0.0, %v1333_v59 }
 0x396   :  { %v1359_v15 = vpop.permute.xlu0 %1358 }
 0x397   :  { %v1451_v57 = vpop.permute.xlu1 %1450  ;;  %v1472_v13 = vsel %vm189_vm7, %v1466_v25, %v1359_v15 }
 0x398   :  { %v1491_v16 = vsel %vm189_vm7, %v1485_v5, %v1451_v57  ;;  %v1467_v57 = vsel %vm182_vm6, %v8692_v32, %v1335_v61 }
 0x399   :  { %v1512_v17 = vrot.slane %v1491_v16, 5 }
 0x39a   :  { %v1383_v18 = vpop.permute.xlu0 %1382 }
 0x39b   :  { %v1513_v30 = vsel %vm126_vm1, %v1511_v19, %v1512_v17  ;;  %v1361_v11 = vpop.permute.xlu1 %1360  ;;  %v1478_v5 = vsel %vm196_vm8, %v1472_v13, %v1383_v18 }
 0x39c   :  { %v1569_v52 = vsel %vm196_vm8, %v1513_v30, 0  ;;  %v1473_v29 = vsel %vm189_vm7, %v1467_v57, %v1361_v11  ;;  %v1508_v16 = vrot.slane %v1478_v5, 5  ;;  %v11859_v11 = vld [vmem:[#allocation8_spill] sm:$0xff] }
 0x39d   :  { %v9065_v34 = vand.u32 4294901760, %v1569_v52 }
 0x39e   :  { %v1387_v6 = vpop.permute.xlu0 %1386 }
 0x39f   :  { %v1385_v3 = vpop.permute.xlu1 %1384  ;;  %v9072_v19 = vsub.f32 %v1569_v52, %v9065_v34  ;;  %v1403_v52 = vsel %vm110_vm5, %v1401_v60, %v11859_v11 }
 0x3a0   :  { %v1479_v59 = vsel %vm196_vm8, %v1473_v29, %v1385_v3 }
 0x3a1   :  { %v1509_v30 = vrot.slane %v1479_v59, 5  ;;  %v11471_v15 = vand.u32 4294901760, %v9072_v19 }
 0x3a2   :  { %v1427_v25 = vpop.permute.xlu0 %1426 }
 0x3a3   :  { %v1510_v37 = vsel %vm126_vm1, %v1508_v16, %v1509_v30  ;;  %v1337_v63 = vpop.permute.xlu1 %1336  ;;  %v1672_v18 = vsub.f32 %v9072_v19, %v11471_v15  ;;  %v1486_v5 = vsel %vm182_vm6, %v1403_v52, %v1427_v25 }
 0x3a4   :  { %v9080_v61 = vand.u32 4294901760, %v1510_v37  ;;  %v1468_v3 = vsel %vm182_vm6, %v8709_v31, %v1337_v63 }
 0x3a5   :  { %v1673_v13 = vand.u32 4294901760, %v1672_v18 }
 0x3a6   :  { %v9085_v57 = vsub.f32 %v1510_v37, %v9080_v61  ;;  %v1453_v29 = vpop.permute.xlu0 %1452 }
 0x3a7   :  { %v1492_v59 = vsel %vm189_vm7, %v1486_v5, %v1453_v29  ;;  %v1363_v16 = vpop.permute.xlu1 %1362  ;;  %1674 = vmatprep.mubr.f32.mxu1 %v1673_v13 }
 0x3a8   :  { %11860 = vst [vmem:[#allocation31_spill] sm:$0xff] %v9085_v57  ;;  %v1516_v15 = vrot.slane %v1492_v59, 5  ;;  %v1474_v32 = vsel %vm189_vm7, %v1468_v3, %v1363_v16  ;;  %v11477_v10 = vand.u32 4294901760, %v9085_v57 }
 0x3a9   :  { %v1480_v60 = vsel %vm196_vm8, %v1474_v32, %v1387_v6 }
 0x3aa   :  { %v1517_v37 = vsel %vm126_vm1, %v1512_v17, %v1516_v15  ;;  %v1514_v18 = vrot.slane %v1480_v60, 5  ;;  %v9095_v58 = vpop.permute.xlu0 %1342  ;;  %v1678_v63 = vsub.f32 %v9085_v57, %v11477_v10  ;;  %v1404_v60 = vrot.slane %v8848_v43, 4 }
 0x3ab   :  { %v1571_v25 = vsel %vm196_vm8, %v1517_v37, 0  ;;  %v1429_v52 = vpop.permute.xlu1 %1428 }
 0x3ac   :  { %v9101_v13 = vand.u32 4294901760, %v1571_v25  ;;  %v1515_v5 = vsel %vm126_vm1, %v1509_v30, %v1514_v18  ;;  %v1679_v29 = vand.u32 4294901760, %v1678_v63  ;;  %v1405_v30 = vrot.slane %v8842_v35, 4 }
 0x3ad   :  { %v9104_v3 = vand.u32 4294901760, %v1515_v5 }
 0x3ae   :  { %v9107_v32 = vsub.f32 %v1571_v25, %v9101_v13  ;;  %1680 = vmatmul.mubr.f32.vlgmr.msra.gmra.mrb[0].mxu1 %v1679_v29  ;;  %v1431_v17 = vpop.permute.xlu0 %1430  ;;  %v1487_v25 = vsel %vm182_vm6, %v1404_v60, %v1429_v52  ;;  %v1406_v29 = vsel %vm110_vm5, %v1404_v60, %v1405_v30 }
 0x3af   :  { %6378 = vmatpush1.bf16.msra.mxu1 %v8860_v36  ;;  %v1455_v6 = vpop.permute.xlu1 %1454  ;;  %v9111_v15 = vsub.f32 %v1515_v5, %v9104_v3  ;;  %v1488_v57 = vsel %vm182_vm6, %v1406_v29, %v1431_v17 }
 0x3b0   :  { %11861 = vst [vmem:[#allocation32_spill] sm:$0xff] %v9107_v32  ;;  %6379 = vmatprep.subr.bf16.mxu1 %v11694_v44  ;;  %v11481_v59 = vand.u32 4294901760, %v9107_v32  ;;  %v1493_v10 = vsel %vm189_vm7, %v1487_v25, %v1455_v6 }
 0x3b1   :  { %11862 = vst [vmem:[#allocation33_spill] sm:$0xff] %v9111_v15  ;;  %v11484_v16 = vand.u32 4294901760, %v9111_v15 }
 0x3b2   :  { %v1341_v37 = vpop.permute.xlu0 %1340  ;;  %v1687_v18 = vsub.f32 %v9107_v32, %v11481_v59 }
 0x3b3   :  { %6381 = vmatpush1.bf16.msra.mxu1 %v8872_v62  ;;  %v1389_v36 = vpop.permute.xlu1 %1388  ;;  %v1693_v63 = vsub.f32 %v9111_v15, %v11484_v16  ;;  %v1521_v16 = vrot.slane %v1493_v10, 5 }
 0x3b4   :  { %6382 = vmatprep.subr.bf16.mxu1 %v11694_v44  ;;  %v1688_v5 = vand.u32 4294901760, %v1687_v18 }
 0x3b5   :  { %v1694_v31 = vand.u32 4294901760, %v1693_v63 }
 0x3b6   :  { %1689 = vmatprep.mubr.f32.mxu1 %v1688_v5  ;;  %v1457_v59 = vpop.permute.xlu0 %1456 }
 0x3b7   :  { %6384 = vmatpush1.bf16.msra.mxu1 %v8884_v47  ;;  %v1494_v62 = vsel %vm189_vm7, %v1488_v57, %v1457_v59  ;;  %v1339_v32 = vpop.permute.xlu1 %1338 }
 0x3b8   :  { %v1522_v15 = vrot.slane %v1494_v62, 5  ;;  %1695 = vmatmul.mubr.f32.gmra.mrb[2].mxu1 %v1694_v31  ;;  %6385 = vmatprep.subr.bf16.mxu1 %v11694_v44  ;;  %v1469_v18 = vsel %vm182_vm6, 0.0, %v1339_v32  ;;  %v1470_v31 = vsel %vm182_vm6, %v8848_v43, %v1341_v37 }
 0x3ba   :  { %v1523_v52 = vsel %vm126_vm1, %v1521_v16, %v1522_v15  ;;  %v1367_v60 = vpop.permute.xlu0 %1366 }
 0x3bb   :  { %v1573_v6 = vsel %vm196_vm8, %v1523_v52, 0  ;;  %6387 = vmatpush1.bf16.msra.mxu1 %v8909_v55  ;;  %v1365_v17 = vpop.permute.xlu1 %1364  ;;  %v1476_v59 = vsel %vm189_vm7, %v1470_v31, %v1367_v60  ;;  %v1471_v31 = vsel %vm182_vm6, %v8842_v35, %v9095_v58  ;;  %v11905_v35 = vand.u32 4294901760, %v8611_v24 }
 0x3bc   :  { %v9137_v63 = vand.u32 4294901760, %v1573_v6  ;;  %v1475_v47 = vsel %vm189_vm7, %v1469_v18, %v1365_v17  ;;  %6388 = vmatprep.subr.bf16.mxu1 %v11694_v44 }
 0x3bd   :  { %v1481_v10 = vsel %vm196_vm8, %v1475_v47, %v1389_v36  ;;  %v1407_v36 = vsel %vm110_vm5, %v1405_v30, %v11859_v11 }
 0x3be   :  { %v9145_v57 = vsub.f32 %v1573_v6, %v9137_v63  ;;  %v1391_v32 = vpop.permute.xlu0 %1390  ;;  %v1518_v25 = vrot.slane %v1481_v10, 5 }
 0x3bf   :  { %6390 = vmatpush1.bf16.msra.mxu1 %v8917_v45  ;;  %v1482_v55 = vsel %vm196_vm8, %v1476_v59, %v1391_v32  ;;  %v1433_v16 = vpop.permute.xlu1 %1432 }
 0x3c0   :  { %v1519_v5 = vrot.slane %v1482_v55, 5  ;;  %6391 = vmatprep.subr.bf16.mxu1 %v11694_v44  ;;  %v11490_v29 = vand.u32 4294901760, %v9145_v57  ;;  %v1489_v45 = vsel %vm182_vm6, %v1407_v36, %v1433_v16 }
 0x3c2   :  { %v1520_v37 = vsel %vm126_vm1, %v1518_v25, %v1519_v5  ;;  %v1702_v62 = vsub.f32 %v9145_v57, %v11490_v29  ;;  %v1369_v6 = vpop.permute.xlu0 %1368 }
 0x3c3   :  { %v9158_v52 = vand.u32 4294901760, %v1520_v37  ;;  %6393 = vmatpush1.bf16.msra.mxu1 %v8936_v28  ;;  %v1459_v60 = vpop.permute.xlu1 %1458  ;;  %v1477_v10 = vsel %vm189_vm7, %v1471_v31, %v1369_v6  ;;  %v11870_v31 = vpack.c.bf16 %v8687_v1, %v8685_v21 }
 0x3c4   :  { %v1495_v18 = vsel %vm189_vm7, %v1489_v45, %v1459_v60  ;;  %6394 = vmatprep.subr.bf16.mxu1 %v11694_v44  ;;  %v1703_v17 = vand.u32 4294901760, %v1702_v62 }
 0x3c5   :  { %v9165_v47 = vsub.f32 %v1520_v37, %v9158_v52  ;;  %v1526_v30 = vrot.slane %v1495_v18, 5 }
 0x3c6   :  { %1704 = vmatprep.mubr.f32.mxu1 %v1703_v17 }
 0x3c7   :  { %v1527_v28 = vsel %vm126_vm1, %v1522_v15, %v1526_v30  ;;  %6396 = vmatpush1.bf16.msra.mxu1 %v8951_v41  ;;  %v1393_v59 = vpop.permute.xlu1 %1392  ;;  %v11489_v32 = vand.u32 4294901760, %v9165_v47  ;;  %v11869_v30 = vpack.c.bf16 %v8672_v39, %v8670_v51 }
 0x3c8   :  { %v1575_v55 = vsel %vm196_vm8, %v1527_v28, 0  ;;  %v1483_v16 = vsel %vm196_vm8, %v1477_v10, %v1393_v59  ;;  %6397 = vmatprep.subr.bf16.mxu1 %v11694_v44  ;;  %v11871_v10 = vpack.c.bf16 %v8714_v8, %v8712_v49  ;;  %v11872_v28 = vpack.c.bf16 %v8753_v7, %v8745_v22 }
 0x3c9   :  { %v9177_v25 = vand.u32 4294901760, %v1575_v55  ;;  %v1524_v37 = vrot.slane %v1483_v16, 5  ;;  %v1708_v58 = vsub.f32 %v9165_v47, %v11489_v32  ;;  %v11873_v59 = vpack.c.bf16 %v8768_v54, %v8766_v38  ;;  %v11875_v16 = vld [vmem:[#allocation17_spill] sm:$0xff] }
 0x3ca   :  { %v11902_v32 = vand.u32 4294901760, %v8609_v23 }
 0x3cb   :  { %v9183_v15 = vsub.f32 %v1575_v55, %v9177_v25  ;;  %v1525_v41 = vsel %vm126_vm1, %v1519_v5, %v1524_v37  ;;  %6399 = vmatpush1.bf16.msra.mxu1 %v8973_v20  ;;  %v1709_v36 = vand.u32 4294901760, %v1708_v58  ;;  %v11874_v55 = vld [vmem:[#allocation20_spill] sm:$0xff]  ;;  %v11877_v58 = vld [vmem:[#allocation25_spill] sm:$0xff] }
 0x3cc   :  { %v9187_v62 = vand.u32 4294901760, %v1525_v41  ;;  %6400 = vmatprep.subr.bf16.mxu1 %v11694_v44  ;;  %v11876_v37 = vpack.c.bf16 %v11874_v55, %v11875_v16 }
 0x3cd   :  { %1710 = vmatmul.mubr.f32.gmra.mrb[4].mxu1 %v1709_v36  ;;  %v11488_v45 = vand.u32 4294901760, %v9183_v15 }
 0x3ce   :  { %v9192_v60 = vsub.f32 %v1525_v41, %v9187_v62  ;;  %v11878_v41 = vld [vmem:[#allocation24_spill] sm:$0xff] }
 0x3cf   :  { %6402 = vmatpush1.bf16.msra.mxu1 %v8982_v12  ;;  %v1717_v6 = vsub.f32 %v9183_v15, %v11488_v45  ;;  %v11863_v12 = vpack.c.bf16 %v8609_v23, %v8607_v50  ;;  %v11879_v36 = vpack.c.bf16 %v11877_v58, %v11878_v41  ;;  %v11901_v45 = vand.u32 4294901760, %v8607_v50 }
 0x3d0   :  { %6403 = vmatprep.subr.bf16.mxu1 %v11694_v44  ;;  %v11487_v20 = vand.u32 4294901760, %v9192_v60  ;;  %v11908_v23 = vand.u32 4294901760, %v9145_v57 }
 0x3d1   :  { %v1718_v5 = vand.u32 4294901760, %v1717_v6  ;;  %v11880_v6 = vld [vmem:[#allocation30_spill] sm:$0xff]  ;;  %v6503_v29 = vpack.c.bf16 %v11902_v32, %v11901_v45  ;;  %v11910_v32 = vand.u32 4294901760, %v8629_v46 }
 0x3d2   :  { %v1723_v18 = vsub.f32 %v9192_v60, %v11487_v20  ;;  %v11900_v20 = vld [vmem:[#allocation26_spill] sm:$0xff] }
 0x3d3   :  { %6405 = vmatpush1.bf16.msra.mxu1 %v8986_v33  ;;  %1719 = vmatprep.mubr.f32.mxu1 %v1718_v5  ;;  %v11866_v33 = vpack.c.bf16 %v8634_v27, %v8632_v4  ;;  %v11881_v5 = vld [vmem:[#allocation27_spill] sm:$0xff] }
 0x3d4   :  { %6406 = vmatprep.subr.bf16.mxu1 %v11694_v44  ;;  %v1724_v17 = vand.u32 4294901760, %v1723_v18  ;;  %v11882_v18 = vpack.c.bf16 %v11880_v6, %v11881_v5 }
 0x3d6   :  { %1725 = vmatmul.mubr.f32.gmra.mrb[6].mxu1 %v1724_v17  ;;  %v11883_v17 = vld [vmem:[#allocation31_spill] sm:$0xff] }
 0x3d7   :  { %6408 = vmatpush1.bf16.msra.mxu1 %v9002_v0  ;;  %1935 = vmatprep.mubr.f32.mxu1 %v9065_v34  ;;  %v11867_v0 = vpack.c.bf16 %v8638_v56, %v8636_v2  ;;  %v11903_v11 = vand.u32 4294901760, %v11883_v17 }
 0x3d8   :  { %6409 = vmatprep.subr.bf16.mxu1 %v11694_v44 }
 0x3db   :  { %6411 = vmatpush1.bf16.msra.mxu1 %v9006_v14  ;;  %v11864_v14 = vpack.c.bf16 %v8621_v40, %v8611_v24  ;;  %v11911_v24 = vand.u32 4294901760, %v9165_v47 }
 0x3dc   :  { %6412 = vmatprep.subr.bf16.mxu1 %v11694_v44 }
 0x3df   :  { %6414 = vmatpush1.bf16.msra.mxu1 %v9022_v9  ;;  %v11868_v9 = vpack.c.bf16 %v8645_v48, %v8640_v42 }
 0x3e0   :  { %6415 = vmatprep.subr.bf16.mxu1 %v11694_v44 }
 0x3e3   :  { %6417 = vmatpush1.bf16.msra.mxu1 %v9024_v26  ;;  %v11865_v26 = vpack.c.bf16 %v8629_v46, %v8623_v53  ;;  %v11916_v46 = vand.u32 4294901760, %v8636_v2  ;;  %v11922_v2 = vand.u32 4294901760, %v8685_v21  ;;  %v11928_v21 = vand.u32 4294901760, %v8766_v38 }
 0x3e4   :  { %6418 = vmatprep.subr.bf16.mxu1 %v11694_v44  ;;  %v11934_v38 = vand.u32 4294901760, %v11881_v5 }
 0x3e6   :  { %1937 = vmatmul.mubr.f32.vlgmr.msra.gmra.mrb[0].mxu1 %v9080_v61 }
 0x3e7   :  { %1942 = vmatprep.mubr.f32.mxu1 %v9101_v13  ;;  %6420 = vmatpush1.bf16.msra.mxu1 %v11863_v12  ;;  %v11884_v12 = vld [vmem:[#allocation32_spill] sm:$0xff] }
 0x3e8   :  { %6421 = vmatprep.subr.bf16.mxu1 %v11694_v44  ;;  %v11904_v43 = vand.u32 4294901760, %v11884_v12 }
 0x3ea   :  { %1944 = vmatmul.mubr.f32.gmra.mrb[2].mxu1 %v9104_v3 }
 0x3eb   :  { %1949 = vmatprep.mubr.f32.mxu1 %v9137_v63  ;;  %6423 = vmatpush1.bf16.msra.mxu1 %v11864_v14  ;;  %v11885_v14 = vld [vmem:[#allocation13_spill] sm:$0xff] }
 0x3ec   :  { %6424 = vmatprep.subr.bf16.mxu1 %v11694_v44 }
 0x3ee   :  { %1951 = vmatmul.mubr.f32.gmra.mrb[4].mxu1 %v9158_v52 }
 0x3ef   :  { %1956 = vmatprep.mubr.f32.mxu1 %v9177_v25  ;;  %6426 = vmatpush1.bf16.msra.mxu1 %v11865_v26  ;;  %v11886_v26 = vld [vmem:[#allocation33_spill] sm:$0xff] }
 0x3f0   :  { %6427 = vmatprep.subr.bf16.mxu1 %v11694_v44  ;;  %v11907_v50 = vand.u32 4294901760, %v11886_v26 }
 0x3f2   :  { %1958 = vmatmul.mubr.f32.gmra.mrb[6].mxu1 %v9187_v62 }
 0x3f3   :  { %6429 = vmatpush1.bf16.msra.mxu1 %v11866_v33  ;;  %2085 = vmatprep.mubr.f32.mxu1 %v9072_v19  ;;  %v11887_v33 = vld [vmem:[#allocation14_spill] sm:$0xff] }
 0x3f4   :  { %6430 = vmatprep.subr.bf16.mxu1 %v11694_v44 }
 0x3f7   :  { %6432 = vmatpush1.bf16.msra.mxu1 %v11867_v0  ;;  %v11888_v0 = vld [vmem:[#allocation4_spill] sm:$0xff] }
 0x3f8   :  { %6433 = vmatprep.subr.bf16.mxu1 %v11694_v44 }
 0x3fb   :  { %6435 = vmatpush1.bf16.msra.mxu1 %v11868_v9  ;;  %v11889_v9 = vld [vmem:[#allocation2_spill] sm:$0xff] }
 0x3fc   :  { %6436 = vmatprep.subr.bf16.mxu1 %v11694_v44 }
 0x3ff   :  { %6438 = vmatpush1.bf16.msra.mxu1 %v11869_v30  ;;  %v11890_v30 = vand.u32 4294901760, %v9072_v19  ;;  %v11895_v19 = vld [vmem:[#allocation12_spill] sm:$0xff] }
 0x400   :  { %6439 = vmatprep.subr.bf16.mxu1 %v11694_v44 }
 0x403   :  { %6441 = vmatpush1.bf16.msra.mxu1 %v11870_v31  ;;  %v11891_v31 = vld [vmem:[#allocation19_spill] sm:$0xff] }
 0x404   :  { %6442 = vmatprep.subr.bf16.mxu1 %v11694_v44 }
 0x407   :  { %6444 = vmatpush1.bf16.msra.mxu1 %v11871_v10  ;;  %v11892_v10 = vld [vmem:[#allocation18_spill] sm:$0xff] }
 0x408   :  { %6445 = vmatprep.subr.bf16.mxu1 %v11694_v44 }
 0x40b   :  { %6447 = vmatpush1.bf16.msra.mxu1 %v11872_v28  ;;  %v11893_v28 = vld [vmem:[#allocation23_spill] sm:$0xff] }
 0x40c   :  { %6448 = vmatprep.subr.bf16.mxu1 %v11694_v44 }
 0x40f   :  { %6450 = vmatpush1.bf16.msra.mxu1 %v11873_v59  ;;  %v11894_v59 = vld [vmem:[#allocation22_spill] sm:$0xff] }
 0x410   :  { %6451 = vmatprep.subr.bf16.mxu1 %v11694_v44 }
 0x413   :  { %6453 = vmatpush1.bf16.msra.mxu1 %v11876_v37  ;;  %v11896_v37 = vld [vmem:[#allocation10_spill] sm:$0xff] }
 0x414   :  { %6454 = vmatprep.subr.bf16.mxu1 %v11694_v44 }
 0x417   :  { %6456 = vmatpush1.bf16.msra.mxu1 %v11879_v36  ;;  %v11897_v36 = vld [vmem:[#allocation15_spill] sm:$0xff] }
 0x418   :  { %6457 = vmatprep.subr.bf16.mxu1 %v11694_v44 }
 0x41b   :  { %6459 = vmatpush1.bf16.msra.mxu1 %v11882_v18  ;;  %v11898_v18 = vld [vmem:[#allocation16_spill] sm:$0xff] }
 0x41c   :  { %6460 = vmatprep.subr.bf16.mxu1 %v11694_v44 }
 0x41e   :  { %2088 = vmatmul.mubr.f32.vlgmr.msra.gmra.mrb[0].mxu1 %v11883_v17  ;;  %v11921_v17 = vand.u32 4294901760, %v8672_v39  ;;  %v11927_v39 = vand.u32 4294901760, %v8753_v7  ;;  %v11933_v7 = vand.u32 4294901760, %v11877_v58 }
 0x41f   :  { %2094 = vmatprep.mubr.f32.mxu1 %v11884_v12  ;;  %6462 = vmatpush1.bf16.msra.mxu1 %v11885_v14 }
 0x420   :  { %6463 = vmatprep.subr.bf16.mxu1 %v11694_v44 }
 0x422   :  { %2097 = vmatmul.mubr.f32.gmra.mrb[2].mxu1 %v11886_v26 }
 0x423   :  { %2103 = vmatprep.mubr.f32.mxu1 %v9145_v57  ;;  %6465 = vmatpush1.bf16.msra.mxu1 %v11887_v33  ;;  %v11914_v57 = vand.u32 4294901760, %v8634_v27  ;;  %v11919_v27 = vand.u32 4294901760, %v8645_v48  ;;  %v11925_v48 = vand.u32 4294901760, %v8714_v8  ;;  %v11931_v8 = vand.u32 4294901760, %v11874_v55  ;;  %v11937_v55 = vld [vmem:[#allocation21_spill] sm:$0xff] }
 0x424   :  { %6466 = vmatprep.subr.bf16.mxu1 %v11694_v44 }
 0x426   :  { %2106 = vmatmul.mubr.f32.gmra.mrb[4].mxu1 %v9165_v47  ;;  %v11917_v47 = vand.u32 4294901760, %v8638_v56  ;;  %v11923_v56 = vand.u32 4294901760, %v8687_v1  ;;  %v11929_v1 = vand.u32 4294901760, %v8768_v54  ;;  %v11935_v54 = vand.u32 4294901760, %v11880_v6 }
 0x427   :  { %2112 = vmatprep.mubr.f32.mxu1 %v9183_v15  ;;  %6468 = vmatpush1.bf16.msra.mxu1 %v11888_v0 }
 0x428   :  { %6469 = vmatprep.subr.bf16.mxu1 %v11694_v44  ;;  %v6524_v26 = vpack.c.bf16 %v11923_v56, %v11922_v2  ;;  %v5883_v56 = vld [vmem:[%s11280_s1 + $0x1f0] sm:$0xff] }
 0x42a   :  { %2115 = vmatmul.mubr.f32.gmra.mrb[6].mxu1 %v9192_v60 }
 0x42b   :  { %6471 = vmatpush1.bf16.msra.mxu1 %v11889_v9  ;;  %2215 = vmatprep.mubr.f32.mxu1 %v11890_v30  ;;  %v11899_v30 = vld [vmem:[#allocation21_spill] sm:$0xff] }
 0x42c   :  { %6472 = vmatprep.subr.bf16.mxu1 %v11694_v44 }
 0x42f   :  { %6474 = vmatpush1.bf16.msra.mxu1 %v11891_v31 }
 0x430   :  { %6475 = vmatprep.subr.bf16.mxu1 %v11694_v44 }
 0x433   :  { %6477 = vmatpush1.bf16.msra.mxu1 %v11892_v10 }
 0x434   :  { %6478 = vmatprep.subr.bf16.mxu1 %v11694_v44 }
 0x437   :  { %6480 = vmatpush1.bf16.msra.mxu1 %v11893_v28 }
 0x438   :  { %6481 = vmatprep.subr.bf16.mxu1 %v11694_v44 }
 0x43b   :  { %6483 = vmatpush1.bf16.msra.mxu1 %v11894_v59 }
 0x43c   :  { %6484 = vmatprep.subr.bf16.mxu1 %v11694_v44 }
 0x43f   :  { %6486 = vmatpush1.bf16.msra.mxu1 %v11895_v19 }
 0x440   :  { %6487 = vmatprep.subr.bf16.mxu1 %v11694_v44 }
 0x443   :  { %6489 = vmatpush1.bf16.msra.mxu1 %v11896_v37 }
 0x444   :  { %6490 = vmatprep.subr.bf16.mxu1 %v11694_v44 }
 0x447   :  { %6492 = vmatpush1.bf16.msra.mxu1 %v11897_v36 }
 0x448   :  { %6493 = vmatprep.subr.bf16.mxu1 %v11694_v44 }
 0x44b   :  { %6495 = vmatpush1.bf16.msra.mxu1 %v11898_v18 }
 0x44c   :  { %6496 = vmatprep.subr.bf16.mxu1 %v11694_v44 }
 0x44f   :  { %6498 = vmatpush1.bf16.msra.mxu1 %v11899_v30  ;;  %v11906_v30 = vand.u32 4294901760, %v8621_v40  ;;  %v11912_v40 = vand.u32 4294901760, %v9183_v15  ;;  %v6515_v15 = vpack.c.bf16 %v11917_v47, %v11916_v46  ;;  %v5879_v46 = vld [vmem:[%s11280_s1 + $0x1d0] sm:$0xff] }
 0x450   :  { %6499 = vmatprep.subr.bf16.mxu1 %v11694_v44 }
 0x451   :  { %v6506_v18 = vpack.c.bf16 %v11906_v30, %v11905_v35  ;;  %v11913_v35 = vand.u32 4294901760, %v8632_v4  ;;  %v11918_v4 = vand.u32 4294901760, %v8640_v42  ;;  %v11924_v42 = vand.u32 4294901760, %v8712_v49 }
 0x452   :  { %v11930_v49 = vand.u32 4294901760, %v11875_v16 }
 0x453   :  { %6501 = vmatpush1.bf16.msra.mxu1 %v11900_v20  ;;  %v6518_v45 = vpack.c.bf16 %v11919_v27, %v11918_v4  ;;  %v5880_v4 = vld [vmem:[%s11280_s1 + $0x1d8] sm:$0xff]  ;;  %v2867_v27 = vand.u32 4294901760, %v5879_v46 }
 0x454   :  { %6502 = vmatprep.subr.bf16.mxu1 %v11694_v44 }
 0x456   :  { %2219 = vmatmul.mubr.f32.vlgmr.msra.gmra.mrb[0].mxu1 %v11903_v11  ;;  %v11909_v11 = vand.u32 4294901760, %v8623_v53  ;;  %v11915_v53 = vand.u32 4294901760, %v9192_v60  ;;  %v11920_v60 = vand.u32 4294901760, %v8670_v51  ;;  %v11926_v51 = vand.u32 4294901760, %v8745_v22 }
 0x457   :  { %2226 = vmatprep.mubr.f32.mxu1 %v11904_v43  ;;  %6504 = vmatpush1.bf16.msra.mxu1 %v6503_v29  ;;  %v6512_v29 = vpack.c.bf16 %v11914_v57, %v11913_v35  ;;  %v11932_v22 = vand.u32 4294901760, %v11878_v41 }
 0x458   :  { %6505 = vmatprep.subr.bf16.mxu1 %v11694_v44  ;;  %v6509_v43 = vpack.c.bf16 %v11910_v32, %v11909_v11  ;;  %v6521_v12 = vpack.c.bf16 %v11921_v17, %v11920_v60  ;;  %v6530_v30 = vpack.c.bf16 %v11927_v39, %v11926_v51  ;;  %v6542_v32 = vpack.c.bf16 %v11935_v54, %v11934_v38  ;;  %v5882_v60 = vld [vmem:[%s11280_s1 + $0x1e8] sm:$0xff] }
 0x459   :  { %v6539_v11 = vpack.c.bf16 %v11933_v7, %v11932_v22  ;;  %v2870_v17 = vand.u32 4294901760, %v5880_v4  ;;  %v2876_v2 = vand.u32 4294901760, %v5882_v60  ;;  %v9495_v39 = vsub.f32 %v5879_v46, %v2867_v27  ;;  %v5894_v46 = vld [vmem:[%s11280_s1 + $0x248] sm:$0xff] }
 0x45a   :  { %2230 = vmatmul.mubr.f32.gmra.mrb[2].mxu1 %v11907_v50  ;;  %v6533_v50 = vpack.c.bf16 %v11929_v1, %v11928_v21  ;;  %v5887_v21 = vld [vmem:[%s11280_s1 + $0x210] sm:$0xff]  ;;  %v2879_v22 = vand.u32 4294901760, %v5883_v56 }
 0x45b   :  { %2237 = vmatprep.mubr.f32.mxu1 %v11908_v23  ;;  %6507 = vmatpush1.bf16.msra.mxu1 %v6506_v18  ;;  %v6527_v18 = vpack.c.bf16 %v11925_v48, %v11924_v42  ;;  %v6536_v23 = vpack.c.bf16 %v11931_v8, %v11930_v49  ;;  %v5885_v42 = vld [vmem:[%s11280_s1 + $0x200] sm:$0xff]  ;;  %v9503_v1 = vpack.c.bf16 %v2870_v17, %v2867_v27  ;;  %v5888_v8 = vld [vmem:[%s11280_s1 + $0x218] sm:$0xff]  ;;  %v2891_v54 = vand.u32 4294901760, %v5887_v21 }
 0x45c   :  { %6508 = vmatprep.subr.bf16.mxu1 %v11694_v44 }
 0x45d   :  { %11939 = vst [vmem:[#allocation17_spill] sm:$0xff] %v9503_v1 }
 0x45e   :  { %2241 = vmatmul.mubr.f32.gmra.mrb[4].mxu1 %v11911_v24 }
 0x45f   :  { %2248 = vmatprep.mubr.f32.mxu1 %v11912_v40  ;;  %6510 = vmatpush1.bf16.msra.mxu1 %v6509_v43 }
 0x460   :  { %6511 = vmatprep.subr.bf16.mxu1 %v11694_v44 }
 0x462   :  { %2252 = vmatmul.mubr.f32.gmra.mrb[6].mxu1 %v11915_v53  ;;  %v5878_v53 = vld [vmem:[%s11280_s1 + $0x1c8] sm:$0xff] }
 0x463   :  { %6513 = vmatpush1.bf16.msra.mxu1 %v6512_v29  ;;  %2406 = vmatprep.mubr.f32.mxu1 %v9065_v34  ;;  %v5877_v29 = vld [vmem:[%s11280_s1 + $0x1c0] sm:$0xff] }
 0x464   :  { %6514 = vmatprep.subr.bf16.mxu1 %v11694_v44  ;;  %v2861_v47 = vand.u32 4294901760, %v5877_v29 }
 0x467   :  { %6516 = vmatpush1.bf16.msra.mxu1 %v6515_v15  ;;  %v2864_v15 = vand.u32 4294901760, %v5878_v53 }
 0x468   :  { %6517 = vmatprep.subr.bf16.mxu1 %v11694_v44 }
 0x469   :  { %v9489_v48 = vpack.c.bf16 %v2864_v15, %v2861_v47  ;;  %v9493_v51 = vsub.f32 %v5878_v53, %v2864_v15  ;;  %v5893_v53 = vld [vmem:[%s11280_s1 + $0x240] sm:$0xff]  ;;  %v2912_v15 = vand.u32 4294901760, %v5894_v46 }
 0x46b   :  { %6519 = vmatpush1.bf16.msra.mxu1 %v6518_v45  ;;  %v5881_v45 = vld [vmem:[%s11280_s1 + $0x1e0] sm:$0xff]  ;;  %11938 = vst [vmem:[#allocation20_spill] sm:$0xff] %v9489_v48  ;;  %6588 = vmatpush1.bf16.msra.mxu0 %v9489_v48 }
 0x46c   :  { %6520 = vmatprep.subr.bf16.mxu1 %v11694_v44  ;;  %6589 = vmatprep.subr.bf16.mxu0 %v11694_v44 }
 0x46f   :  { %6522 = vmatpush1.bf16.msra.mxu1 %v6521_v12  ;;  %v2873_v12 = vand.u32 4294901760, %v5881_v45  ;;  %6591 = vmatpush1.bf16.msra.mxu0 %v9503_v1 }
 0x470   :  { %6523 = vmatprep.subr.bf16.mxu1 %v11694_v44  ;;  %6592 = vmatprep.subr.bf16.mxu0 %v11694_v44 }
 0x471   :  { %v9507_v49 = vsub.f32 %v5881_v45, %v2873_v12 }
 0x473   :  { %6525 = vmatpush1.bf16.msra.mxu1 %v6524_v26  ;;  %v5884_v26 = vld [vmem:[%s11280_s1 + $0x1f8] sm:$0xff] }
 0x474   :  { %6526 = vmatprep.subr.bf16.mxu1 %v11694_v44  ;;  %v2882_v7 = vand.u32 4294901760, %v5884_v26 }
 0x477   :  { %6528 = vmatpush1.bf16.msra.mxu1 %v6527_v18  ;;  %v9491_v18 = vsub.f32 %v5877_v29, %v2861_v47 }
 0x478   :  { %6529 = vmatprep.subr.bf16.mxu1 %v11694_v44 }
 0x47b   :  { %6531 = vmatpush1.bf16.msra.mxu1 %v6530_v30  ;;  %v5886_v30 = vld [vmem:[%s11280_s1 + $0x208] sm:$0xff] }
 0x47c   :  { %6532 = vmatprep.subr.bf16.mxu1 %v11694_v44  ;;  %v2888_v38 = vand.u32 4294901760, %v5886_v30 }
 0x47f   :  { %6534 = vmatpush1.bf16.msra.mxu1 %v6533_v50  ;;  %v9505_v50 = vsub.f32 %v5880_v4, %v2870_v17 }
 0x480   :  { %6535 = vmatprep.subr.bf16.mxu1 %v11694_v44 }
 0x483   :  { %6537 = vmatpush1.bf16.msra.mxu1 %v6536_v23  ;;  %v9513_v23 = vsub.f32 %v5882_v60, %v2876_v2  ;;  %v11949_v60 = vld [vmem:[#allocation7_spill] sm:$0xff] }
 0x484   :  { %6538 = vmatprep.subr.bf16.mxu1 %v11694_v44 }
 0x487   :  { %6540 = vmatpush1.bf16.msra.mxu1 %v6539_v11  ;;  %v2885_v11 = vand.u32 4294901760, %v5885_v42 }
 0x488   :  { %6541 = vmatprep.subr.bf16.mxu1 %v11694_v44 }
 0x48b   :  { %6543 = vmatpush1.bf16.msra.mxu1 %v6542_v32  ;;  %v9516_v32 = vsub.f32 %v5883_v56, %v2879_v22 }
 0x48c   :  { %6544 = vmatprep.subr.bf16.mxu1 %v11694_v44 }
 0x48e   :  { %2408 = vmatmul.mubr.f32.vlgmr.msra.gmra.mrb[0].mxu1 %v9080_v61 }
 0x48f   :  { %2413 = vmatprep.mubr.f32.mxu1 %v9101_v13  ;;  %6546 = vmatpush1.bf16.msra.mxu1 %v11885_v14 }
 0x490   :  { %6547 = vmatprep.subr.bf16.mxu1 %v11694_v44 }
 0x492   :  { %2415 = vmatmul.mubr.f32.gmra.mrb[2].mxu1 %v9104_v3 }
 0x493   :  { %2420 = vmatprep.mubr.f32.mxu1 %v9137_v63  ;;  %6549 = vmatpush1.bf16.msra.mxu1 %v11887_v33 }
 0x494   :  { %6550 = vmatprep.subr.bf16.mxu1 %v11694_v44 }
 0x496   :  { %2422 = vmatmul.mubr.f32.gmra.mrb[4].mxu1 %v9158_v52 }
 0x497   :  { %2427 = vmatprep.mubr.f32.mxu1 %v9177_v25  ;;  %6552 = vmatpush1.bf16.msra.mxu1 %v11888_v0 }
 0x498   :  { %6553 = vmatprep.subr.bf16.mxu1 %v11694_v44 }
 0x49a   :  { %2429 = vmatmul.mubr.f32.gmra.mrb[6].mxu1 %v9187_v62 }
 0x49b   :  { %6555 = vmatpush1.bf16.msra.mxu1 %v11889_v9  ;;  %2527 = vmatprep.mubr.f32.mxu1 %v9065_v34  ;;  %v11936_v34 = vld [vmem:[#allocation16_spill] sm:$0xff] }
 0x49c   :  { %6556 = vmatprep.subr.bf16.mxu1 %v11694_v44 }
 0x49f   :  { %6558 = vmatpush1.bf16.msra.mxu1 %v11891_v31 }
 0x4a0   :  { %6559 = vmatprep.subr.bf16.mxu1 %v11694_v44 }
 0x4a3   :  { %6561 = vmatpush1.bf16.msra.mxu1 %v11892_v10 }
 0x4a4   :  { %6562 = vmatprep.subr.bf16.mxu1 %v11694_v44 }
 0x4a7   :  { %6564 = vmatpush1.bf16.msra.mxu1 %v11893_v28 }
 0x4a8   :  { %6565 = vmatprep.subr.bf16.mxu1 %v11694_v44 }
 0x4ab   :  { %6567 = vmatpush1.bf16.msra.mxu1 %v11894_v59 }
 0x4ac   :  { %6568 = vmatprep.subr.bf16.mxu1 %v11694_v44 }
 0x4af   :  { %6570 = vmatpush1.bf16.msra.mxu1 %v11895_v19 }
 0x4b0   :  { %6571 = vmatprep.subr.bf16.mxu1 %v11694_v44 }
 0x4b3   :  { %6573 = vmatpush1.bf16.msra.mxu1 %v11896_v37 }
 0x4b4   :  { %6574 = vmatprep.subr.bf16.mxu1 %v11694_v44 }
 0x4b7   :  { %6576 = vmatpush1.bf16.msra.mxu1 %v11897_v36 }
 0x4b8   :  { %6577 = vmatprep.subr.bf16.mxu1 %v11694_v44 }
 0x4bb   :  { %6579 = vmatpush1.bf16.msra.mxu1 %v11936_v34  ;;  %v9518_v34 = vsub.f32 %v5884_v26, %v2882_v7 }
 0x4bc   :  { %6580 = vmatprep.subr.bf16.mxu1 %v11694_v44 }
 0x4bf   :  { %6582 = vmatpush1.bf16.msra.mxu1 %v11937_v55  ;;  %v9520_v55 = vsub.f32 %v5885_v42, %v2885_v11 }
 0x4c0   :  { %6583 = vmatprep.subr.bf16.mxu1 %v11694_v44 }
 0x4c3   :  { %6585 = vmatpush1.bf16.msra.mxu1 %v11900_v20  ;;  %v5872_v20 = vld [vmem:[%s11281_s2 + $0x1] ss:$0 sm:$0xff] }
 0x4c4   :  { %6838 = vmatprep.subr.bf16.mxu1 %v11694_v44 }
 0x4c6   :  { %2529 = vmatmul.mubr.f32.vlgmr.msra.gmra.mrb[0].mxu1 %v9080_v61 }
 0x4c7   :  { %2534 = vmatprep.mubr.f32.mxu1 %v9101_v13 }
 0x4ca   :  { %2536 = vmatmul.mubr.f32.gmra.mrb[2].mxu1 %v9104_v3 }
 0x4cb   :  { %2541 = vmatprep.mubr.f32.mxu1 %v9137_v63 }
 0x4ce   :  { %2543 = vmatmul.mubr.f32.gmra.mrb[4].mxu1 %v9158_v52 }
 0x4cf   :  { %2548 = vmatprep.mubr.f32.mxu1 %v9177_v25 }
 0x4d2   :  { %2550 = vmatmul.mubr.f32.gmra.mrb[6].mxu1 %v9187_v62 }
 0x599   :  { %v2530_v16 = vpop.f32.mrb[0].mxu1 }
 0x59a   :  { %v9446_v58 = vadd.f32 %v5872_v20, %v2530_v16  ;;  %v2532_v61 = vpop.f32.mrb[1].mxu1  ;;  %v9522_v16 = vsub.f32 %v5886_v30, %v2888_v38 }
 0x59b   :  { %v9524_v61 = vsub.f32 %v5887_v21, %v2891_v54  ;;  %v5895_v21 = vld [vmem:[%s11280_s1 + $0x250] sm:$0xff] }
 0x59c   :  { %v5873_v13 = vmul.f32 -1.442695, %v9446_v58 }
 0x59d   :  { %v2537_v41 = vpop.f32.mrb[2].mxu1 }
 0x59e   :  { %7359 = vpow2.f32 %v5873_v13  ;;  %v9449_v3 = vadd.f32 %v5872_v20, %v2537_v41  ;;  %v2539_v63 = vpop.f32.mrb[3].mxu1  ;;  %v9527_v13 = vpack.c.bf16 %v2876_v2, %v2873_v12  ;;  %v9594_v2 = vsub.f32 %v5894_v46, %v2912_v15 }
 0x59f   :  { %v9533_v63 = vpack.c.bf16 %v2882_v7, %v2879_v22  ;;  %v11951_v22 = vld [vmem:[#allocation3_spill] sm:$0xff] }
 0x5a0   :  { %v5874_v52 = vmul.f32 -1.442695, %v9449_v3  ;;  %11940 = vst [vmem:[#allocation25_spill] sm:$0xff] %v9527_v13  ;;  %6594 = vmatpush1.bf16.msra.mxu0 %v9527_v13 }
 0x5a1   :  { %v2544_v25 = vpop.f32.mrb[4].mxu1  ;;  %11941 = vst [vmem:[#allocation24_spill] sm:$0xff] %v9533_v63  ;;  %6595 = vmatprep.subr.bf16.mxu0 %v11694_v44 }
 0x5a2   :  { %7361 = vpow2.f32 %v5874_v52  ;;  %v9452_v62 = vadd.f32 %v5872_v20, %v2544_v25  ;;  %v2546_v6 = vpop.f32.mrb[5].mxu1  ;;  %v9537_v52 = vpack.c.bf16 %v2888_v38, %v2885_v11  ;;  %v2915_v38 = vand.u32 4294901760, %v5895_v21 }
 0x5a3   :  { %v5889_v6 = vld [vmem:[%s11280_s1 + $0x220] sm:$0xff] }
 0x5a4   :  { %v5875_v5 = vmul.f32 -1.442695, %v9452_v62  ;;  %6597 = vmatpush1.bf16.msra.mxu0 %v9533_v63  ;;  %11942 = vst [vmem:[#allocation30_spill] sm:$0xff] %v9537_v52 }
 0x5a5   :  { %v2551_v14 = vpop.f32.mrb[6].mxu1  ;;  %6598 = vmatprep.subr.bf16.mxu0 %v11694_v44 }
 0x5a6   :  { %7363 = vpow2.f32 %v5875_v5  ;;  %v9455_v33 = vadd.f32 %v5872_v20, %v2551_v14  ;;  %v2553_v0 = vpop.f32.mrb[7].mxu1  ;;  %v2894_v20 = vand.u32 4294901760, %v5888_v8  ;;  %v5890_v5 = vld [vmem:[%s11280_s1 + $0x228] sm:$0xff]  ;;  %v2897_v14 = vand.u32 4294901760, %v5889_v6 }
 0x5a7   :  { %v2900_v0 = vand.u32 4294901760, %v5890_v5 }
 0x5a8   :  { %v7360_v9 = vpop.eup %7359  ;;  %v5876_v31 = vmul.f32 -1.442695, %v9455_v33  ;;  %v9529_v41 = vsub.f32 %v5888_v8, %v2894_v20  ;;  %6600 = vmatpush1.bf16.msra.mxu0 %v9537_v52  ;;  %v9541_v25 = vpack.c.bf16 %v2894_v20, %v2891_v54  ;;  %v5896_v8 = vld [vmem:[%s11280_s1 + $0x258] sm:$0xff]  ;;  %v5897_v54 = vld [vmem:[%s11280_s1 + $0x260] sm:$0xff]  ;;  %v5898_v20 = vld [vmem:[%s11280_s1 + $0x268] sm:$0xff] }
 0x5a9   :  { %v2567_v10 = vadd.f32 1.0, %v7360_v9  ;;  %6601 = vmatprep.subr.bf16.mxu0 %v11694_v44  ;;  %v9552_v9 = vpack.c.bf16 %v2900_v0, %v2897_v14 }
 0x5aa   :  { %7365 = vpow2.f32 %v5876_v31  ;;  %11943 = vst [vmem:[#allocation27_spill] sm:$0xff] %v9541_v25  ;;  %v9554_v31 = vsub.f32 %v5889_v6, %v2897_v14  ;;  %v2918_v14 = vand.u32 4294901760, %v5896_v8 }
 0x5ab   :  { %7367 = vrcp.f32 %v2567_v10  ;;  %11944 = vst [vmem:[#allocation31_spill] sm:$0xff] %v9552_v9  ;;  %v9556_v10 = vsub.f32 %v5890_v5, %v2900_v0  ;;  %v9628_v0 = vsub.f32 %v5895_v21, %v2915_v38 }
 0x5ac   :  { %v7362_v28 = vpop.eup %7361  ;;  %6603 = vmatpush1.bf16.msra.mxu0 %v9541_v25 }
 0x5ad   :  { %v2568_v59 = vadd.f32 1.0, %v7362_v28  ;;  %6604 = vmatprep.subr.bf16.mxu0 %v11694_v44  ;;  %v5891_v28 = vld [vmem:[%s11280_s1 + $0x230] sm:$0xff] }
 0x5af   :  { %7369 = vrcp.f32 %v2568_v59  ;;  %v5892_v59 = vld [vmem:[%s11280_s1 + $0x238] sm:$0xff] }
 0x5b0   :  { %v7364_v19 = vpop.eup %7363  ;;  %6606 = vmatpush1.bf16.msra.mxu0 %v9552_v9 }
 0x5b1   :  { %v2569_v37 = vadd.f32 1.0, %v7364_v19  ;;  %6607 = vmatprep.subr.bf16.mxu0 %v11694_v44 }
 0x5b3   :  { %7371 = vrcp.f32 %v2569_v37  ;;  %v2903_v37 = vand.u32 4294901760, %v5891_v28 }
 0x5b4   :  { %v7366_v36 = vpop.eup %7365 }
 0x5b5   :  { %v7368_v43 = vpop.eup %7367  ;;  %v2570_v24 = vadd.f32 1.0, %v7366_v36  ;;  %v2906_v36 = vand.u32 4294901760, %v5892_v59 }
 0x5b6   :  { %2583 = vrot.lane.b32.xlu0 %v7368_v43, %s7431_s11 }
 0x5b7   :  { %7373 = vrcp.f32 %v2570_v24  ;;  %v9567_v24 = vpack.c.bf16 %v2906_v36, %v2903_v37 }
 0x5b9   :  { %v7370_v40 = vpop.eup %7369  ;;  %11945 = vst [vmem:[#allocation32_spill] sm:$0xff] %v9567_v24  ;;  %6609 = vmatpush1.bf16.msra.mxu0 %v9567_v24 }
 0x5ba   :  { %2585 = vrot.lane.b32.xlu1 %v7370_v40, %s7431_s11  ;;  %v9569_v40 = vsub.f32 %v5891_v28, %v2903_v37  ;;  %6610 = vmatprep.subr.bf16.mxu0 %v11694_v44  ;;  %v2921_v28 = vand.u32 4294901760, %v5897_v54 }
 0x5bd   :  { %v7372_v35 = vpop.eup %7371 }
 0x5be   :  { %2587 = vrot.lane.b32.xlu0 %v7372_v35, %s7431_s11  ;;  %v9571_v35 = vsub.f32 %v5892_v59, %v2906_v36  ;;  %v2924_v59 = vand.u32 4294901760, %v5898_v20  ;;  %v9632_v36 = vpack.c.bf16 %v2918_v14, %v2915_v38  ;;  %v5901_v38 = vld [vmem:[%s11280_s1 + $0x280] sm:$0xff] }
 0x5c0   :  { %11953 = vst [vmem:[#allocation4_spill] sm:$0xff] %v9632_v36  ;;  %v9643_v46 = vpack.c.bf16 %v2924_v59, %v2921_v28 }
 0x5c1   :  { %v7374_v57 = vpop.eup %7373 }
 0x5c2   :  { %2589 = vrot.lane.b32.xlu1 %v7374_v57, %s7431_s11  ;;  %v11946_v57 = vld [vmem:[#allocation11_spill] sm:$0xff]  ;;  %11954 = vst [vmem:[#allocation2_spill] sm:$0xff] %v9643_v46 }
 0x628   :  { %v2584_v19 = vpop.permute.xlu0 %2583 }
 0x629   :  { %v2595_v43 = vmul.f32 %v9446_v58, %v2584_v19  ;;  %v2909_v58 = vand.u32 4294901760, %v5893_v53  ;;  %v11952_v19 = vld [vmem:[#allocation5_spill] sm:$0xff] }
 0x62b   :  { %v9574_v29 = vadd.f32 %v2595_v43, %v11946_v57  ;;  %v9586_v45 = vpack.c.bf16 %v2912_v15, %v2909_v58  ;;  %v9592_v12 = vsub.f32 %v5893_v53, %v2909_v58  ;;  %v9634_v43 = vsub.f32 %v5896_v8, %v2918_v14 }
 0x62c   :  { %v2586_v47 = vpop.permute.xlu1 %2585  ;;  %v9647_v58 = vsub.f32 %v5897_v54, %v2921_v28  ;;  %v9649_v15 = vsub.f32 %v5898_v20, %v2924_v59  ;;  %v2933_v20 = vand.u32 4294901760, %v5901_v38 }
 0x62d   :  { %11947 = vst [vmem:[#allocation13_spill] sm:$0xff] %v9574_v29  ;;  %v2596_v4 = vmul.f32 %v9449_v3, %v2586_v47  ;;  %v2697_v27 = vrot.slane %v9574_v29, 5  ;;  %11948 = vst [vmem:[#allocation33_spill] sm:$0xff] %v9586_v45  ;;  %6612 = vmatpush1.bf16.msra.mxu0 %v9586_v45  ;;  %v2723_v56 = vrot.slane %v9574_v29, 6  ;;  %v2607_v26 = vrot.slane %v9574_v29, 1 }
 0x62e   :  { %6613 = vmatprep.subr.bf16.mxu0 %v11694_v44  ;;  %v2633_v11 = vrot.slane %v9574_v29, 2  ;;  %v2659_v47 = vrot.slane %v9574_v29, 3 }
 0x62f   :  { %v9589_v17 = vadd.f32 %v2596_v4, %v11949_v60  ;;  %2705 = vrot.lane.b32.xlu0 %v2697_v27, %s7428_s22  ;;  %v2608_v7 = vsel %vm29_vm0, %v11951_v22, %v2607_v26  ;;  %v5899_v4 = vld [vmem:[%s11280_s1 + $0x270] sm:$0xff] }
 0x630   :  { %v2634_v37 = vsel %vm57_vm3, %v11952_v19, %v2633_v11  ;;  %v2927_v60 = vand.u32 4294901760, %v5899_v4  ;;  %v2588_v14 = vpop.permute.xlu0 %2587 }
 0x631   :  { %11950 = vst [vmem:[#allocation14_spill] sm:$0xff] %v9589_v17  ;;  %v2698_v3 = vrot.slane %v9589_v17, 5  ;;  %v2609_v30 = vrot.slane %v9589_v17, 1  ;;  %v11497_v5 = vrot.slane %v9589_v17, 6  ;;  %v11496_v53 = vrot.slane %v9589_v17, 2  ;;  %6615 = vmatpush1.bf16.msra.mxu0 %v9632_v36 }
 0x632   :  { %6616 = vmatprep.subr.bf16.mxu0 %v11694_v44  ;;  %v9667_v8 = vsub.f32 %v5899_v4, %v2927_v60 }
 0x633   :  { %2731 = vrot.lane.b32.xlu0 %v2723_v56, %s7429_s12  ;;  %v2699_v42 = vsel %vm126_vm1, %v2697_v27, %v2698_v3  ;;  %v2610_v6 = vsel %vm29_vm0, %v2607_v26, %v2609_v30  ;;  %v2725_v57 = vsel %vm154_vm2, %v2723_v56, %v11497_v5  ;;  %v5900_v27 = vld [vmem:[%s11280_s1 + $0x278] sm:$0xff]  ;;  %v2636_v26 = vsel %vm57_vm3, %v2633_v11, %v11496_v53  ;;  %v5902_v11 = vld [vmem:[%s11280_s1 + $0x288] sm:$0xff] }
 0x634   :  { %2707 = vrot.lane.b32.xlu1 %v2699_v42, %s7428_s22  ;;  %v2930_v56 = vand.u32 4294901760, %v5900_v27  ;;  %v2660_v42 = vrot.slane %v9589_v17, 3  ;;  %11956 = vst [vmem:[#allocation18_spill] sm:$0xff] %v9667_v8  ;;  %v2590_v54 = vpop.permute.xlu1 %2589  ;;  %v11500_v53 = vand.u32 4294901760, %v9505_v50 }
 0x635   :  { %6618 = vmatpush1.bf16.msra.mxu0 %v9643_v46  ;;  %v2598_v4 = vmul.f32 %v9455_v33, %v2590_v54 }
 0x636   :  { %v9664_v21 = vpack.c.bf16 %v2930_v56, %v2927_v60  ;;  %6619 = vmatprep.subr.bf16.mxu0 %v11694_v44  ;;  %v2661_v28 = vsel %vm85_vm4, %v2659_v47, %v2660_v42  ;;  %v11495_v60 = vand.u32 4294901760, %v9491_v18 }
 0x637   :  { %2615 = vrot.lane.b32.xlu0 %v2608_v7, %s7428_s22  ;;  %v9669_v7 = vsub.f32 %v5900_v27, %v2930_v56  ;;  %v5903_v27 = vld [vmem:[%s11280_s1 + $0x290] sm:$0xff]  ;;  %v11494_v56 = vand.u32 4294901760, %v9493_v51 }
 0x638   :  { %2617 = vrot.lane.b32.xlu1 %v2610_v6, %s7428_s22  ;;  %11955 = vst [vmem:[#allocation19_spill] sm:$0xff] %v9664_v21  ;;  %v2936_v6 = vand.u32 4294901760, %v5902_v11  ;;  %v3017_v54 = vsub.f32 %v9491_v18, %v11495_v60 }
 0x639   :  { %11957 = vst [vmem:[#allocation23_spill] sm:$0xff] %v9669_v7  ;;  %6621 = vmatpush1.bf16.msra.mxu0 %v9664_v21  ;;  %v11512_v21 = vand.u32 4294901760, %v9516_v32 }
 0x63a   :  { %v9681_v59 = vpack.c.bf16 %v2936_v6, %v2933_v20  ;;  %6622 = vmatprep.subr.bf16.mxu0 %v11694_v44 }
 0x63b   :  { %2641 = vrot.lane.b32.xlu0 %v2634_v37, %s7429_s12  ;;  %v9683_v37 = vsub.f32 %v5901_v38, %v2933_v20  ;;  %v2939_v38 = vand.u32 4294901760, %v5903_v27  ;;  %v3024_v20 = vsub.f32 %v9493_v51, %v11494_v56  ;;  %v3018_v56 = vand.u32 4294901760, %v3017_v54 }
 0x63c   :  { %2733 = vrot.lane.b32.xlu1 %v2725_v57, %s7429_s12  ;;  %11958 = vst [vmem:[#allocation22_spill] sm:$0xff] %v9681_v59  ;;  %v9685_v57 = vsub.f32 %v5902_v11, %v2936_v6 }
 0x63d   :  { %11959 = vst [vmem:[#allocation12_spill] sm:$0xff] %v9683_v37  ;;  %6624 = vmatpush1.bf16.msra.mxu0 %v9681_v59  ;;  %v3025_v60 = vand.u32 4294901760, %v3024_v20  ;;  %v11969_v59 = vld [vmem:[#allocation9_spill] sm:$0xff] }
 0x63e   :  { %11960 = vst [vmem:[#allocation10_spill] sm:$0xff] %v9685_v57  ;;  %6625 = vmatprep.subr.bf16.mxu0 %v11694_v44 }
 0x63f   :  { %2665 = vrot.lane.b32.xlu0 %v2659_v47, %s7431_s11  ;;  %v5904_v47 = vld [vmem:[%s11280_s1 + $0x298] sm:$0xff] }
 0x640   :  { %2643 = vrot.lane.b32.xlu1 %v2636_v26, %s7429_s12  ;;  %v2597_v26 = vmul.f32 %v9452_v62, %v2588_v14  ;;  %v2942_v11 = vand.u32 4294901760, %v5904_v47  ;;  %v11501_v14 = vand.u32 4294901760, %v9495_v39 }
 0x642   :  { %v9713_v62 = vpack.c.bf16 %v2942_v11, %v2939_v38  ;;  %v9717_v6 = vsub.f32 %v5904_v47, %v2942_v11  ;;  %v3038_v11 = vsub.f32 %v9505_v50, %v11500_v53 }
 0x643   :  { %2669 = vrot.lane.b32.xlu0 %v2660_v42, %s7431_s11  ;;  %v11961_v42 = vld [vmem:[#allocation6_spill] sm:$0xff] }
 0x644   :  { %2667 = vrot.lane.b32.xlu1 %v2661_v28, %s7431_s11  ;;  %v2700_v33 = vsel %vm126_vm1, %v2698_v3, %v11961_v42  ;;  %11962 = vst [vmem:[#allocation15_spill] sm:$0xff] %v9713_v62  ;;  %v9715_v3 = vsub.f32 %v5903_v27, %v2939_v38  ;;  %11964 = vst [vmem:[#allocation16_spill] sm:$0xff] %v9717_v6  ;;  %v11965_v28 = vld [vmem:[#allocation28_spill] sm:$0xff]  ;;  %v11970_v27 = vrot.slane %v9589_v17, 6  ;;  %6627 = vmatpush1.bf16.msra.mxu0 %v9713_v62 }
 0x645   :  { %v3031_v38 = vsub.f32 %v9495_v39, %v11501_v14  ;;  %6628 = vmatprep.subr.bf16.mxu0 %v11694_v44 }
 0x646   :  { %11963 = vst [vmem:[#allocation26_spill] sm:$0xff] %v9715_v3  ;;  %v2726_v47 = vsel %vm154_vm2, %v11970_v27, %v11969_v59 }
 0x647   :  { %2709 = vrot.lane.b32.xlu0 %v2700_v33, %s7428_s22  ;;  %v9721_v33 = vadd.f32 %v2598_v4, %v11965_v28  ;;  %v9736_v4 = vpack.c.bf16 %v3025_v60, %v3018_v56  ;;  %v3032_v54 = vand.u32 4294901760, %v3031_v38  ;;  %v3039_v28 = vand.u32 4294901760, %v3038_v11 }
 0x648   :  { %2619 = vrot.lane.b32.xlu1 %v2609_v30, %s7428_s22  ;;  %v11967_v30 = vld [vmem:[#allocation29_spill] sm:$0xff]  ;;  %v11506_v60 = vand.u32 4294901760, %v9513_v23 }
 0x649   :  { %11966 = vst [vmem:[#allocation21_spill] sm:$0xff] %v9721_v33  ;;  %v9726_v5 = vadd.f32 %v2597_v26, %v11967_v30  ;;  %v11971_v26 = vrot.slane %v9589_v17, 2  ;;  %v2613_v20 = vrot.slane %v9721_v33, 1  ;;  %v11507_v30 = vand.u32 4294901760, %v9507_v49 }
 0x64a   :  { %v2702_v27 = vrot.slane %v9721_v33, 5  ;;  %v3052_v11 = vsub.f32 %v9513_v23, %v11506_v60 }
 0x64b   :  { %11968 = vst [vmem:[#allocation11_spill] sm:$0xff] %v9726_v5  ;;  %2735 = vrot.lane.b32.xlu0 %v2726_v47, %s7429_s12  ;;  %v2701_v56 = vrot.slane %v9726_v5, 5  ;;  %v9752_v47 = vpack.c.bf16 %v3039_v28, %v3032_v54  ;;  %v3045_v38 = vsub.f32 %v9507_v49, %v11507_v30  ;;  %v2727_v62 = vrot.slane %v9726_v5, 6 }
 0x64c   :  { %2645 = vrot.lane.b32.xlu1 %v11971_v26, %s7429_s12  ;;  %v3053_v53 = vand.u32 4294901760, %v3052_v11  ;;  %v11513_v54 = vand.u32 4294901760, %v9518_v34  ;;  %v2611_v60 = vrot.slane %v9726_v5, 1  ;;  %v2662_v11 = vrot.slane %v9726_v5, 3 }
 0x64d   :  { %v3046_v26 = vand.u32 4294901760, %v3045_v38  ;;  %v2703_v14 = vsel %vm126_vm1, %v2701_v56, %v2702_v27  ;;  %v3059_v38 = vsub.f32 %v9516_v32, %v11512_v21  ;;  %v11520_v30 = vand.u32 4294901760, %v9520_v55 }
 0x64f   :  { %2625 = vrot.lane.b32.xlu0 %v2613_v20, %s7428_s22  ;;  %v9766_v28 = vpack.c.bf16 %v3053_v53, %v3046_v26  ;;  %v2614_v53 = vsel %vm29_vm0, %v2611_v60, %v2613_v20  ;;  %v2728_v26 = vrot.slane %v9721_v33, 6  ;;  %v3060_v46 = vand.u32 4294901760, %v3059_v38 }
 0x650   :  { %2711 = vrot.lane.b32.xlu1 %v2701_v56, %s7428_s22  ;;  %v3066_v56 = vsub.f32 %v9518_v34, %v11513_v54  ;;  %v3073_v21 = vsub.f32 %v9520_v55, %v11520_v30  ;;  %v2639_v20 = vrot.slane %v9721_v33, 2  ;;  %v2612_v30 = vsel %vm29_vm0, %v11951_v22, %v2611_v60 }
 0x651   :  { %v2729_v38 = vsel %vm154_vm2, %v2727_v62, %v2728_v26 }
 0x652   :  { %v3067_v36 = vand.u32 4294901760, %v3066_v56  ;;  %v3074_v24 = vand.u32 4294901760, %v3073_v21  ;;  %v11525_v56 = vand.u32 4294901760, %v9524_v61 }
 0x653   :  { %2713 = vrot.lane.b32.xlu0 %v2703_v14, %s7428_s22  ;;  %v11521_v14 = vand.u32 4294901760, %v9522_v16 }
 0x654   :  { %2737 = vrot.lane.b32.xlu1 %v2727_v62, %s7429_s12  ;;  %v9789_v45 = vpack.c.bf16 %v3067_v36, %v3060_v46  ;;  %v3087_v36 = vsub.f32 %v9524_v61, %v11525_v56  ;;  %v2663_v62 = vrot.slane %v9721_v33, 3 }
 0x655   :  { %v3080_v54 = vsub.f32 %v9522_v16, %v11521_v14  ;;  %v2637_v14 = vrot.slane %v9726_v5, 2 }
 0x657   :  { %2623 = vrot.lane.b32.xlu0 %v2614_v53, %s7428_s22  ;;  %v3081_v9 = vand.u32 4294901760, %v3080_v54  ;;  %v11524_v53 = vand.u32 4294901760, %v9529_v41  ;;  %v2640_v21 = vsel %vm57_vm3, %v2637_v14, %v2639_v20  ;;  %v3088_v54 = vand.u32 4294901760, %v3087_v36 }
 0x658   :  { %2671 = vrot.lane.b32.xlu1 %v2662_v11, %s7431_s11 }
 0x659   :  { %v9799_v25 = vpack.c.bf16 %v3081_v9, %v3074_v24  ;;  %v3094_v46 = vsub.f32 %v9529_v41, %v11524_v53  ;;  %v11527_v9 = vand.u32 4294901760, %v9556_v10  ;;  %v2638_v24 = vsel %vm57_vm3, %v11952_v19, %v2637_v14 }
 0x65a   :  { %v11528_v14 = vand.u32 4294901760, %v9571_v35 }
 0x65b   :  { %2739 = vrot.lane.b32.xlu0 %v2729_v38, %s7429_s12  ;;  %v3095_v60 = vand.u32 4294901760, %v3094_v46  ;;  %v11532_v38 = vand.u32 4294901760, %v9554_v31  ;;  %v3108_v36 = vsub.f32 %v9556_v10, %v11527_v9  ;;  %v2664_v46 = vsel %vm85_vm4, %v2662_v11, %v2663_v62 }
 0x65c   :  { %2621 = vrot.lane.b32.xlu1 %v2612_v30, %s7428_s22  ;;  %v3122_v11 = vsub.f32 %v9571_v35, %v11528_v14  ;;  %v11536_v14 = vand.u32 4294901760, %v9634_v43 }
 0x65d   :  { %v9816_v30 = vpack.c.bf16 %v3095_v60, %v3088_v54  ;;  %v3101_v53 = vsub.f32 %v9554_v31, %v11532_v38  ;;  %v3109_v22 = vand.u32 4294901760, %v3108_v36  ;;  %v2704_v54 = vsel %vm126_vm1, %v2702_v27, %v11961_v42 }
 0x65e   :  { %v11531_v36 = vand.u32 4294901760, %v9594_v2  ;;  %v3123_v9 = vand.u32 4294901760, %v3122_v11  ;;  %v3150_v11 = vsub.f32 %v9634_v43, %v11536_v14  ;;  %v11542_v14 = vand.u32 4294901760, %v9685_v57 }
 0x65f   :  { %2649 = vrot.lane.b32.xlu0 %v2640_v21, %s7429_s12  ;;  %v3102_v56 = vand.u32 4294901760, %v3101_v53  ;;  %v11529_v21 = vand.u32 4294901760, %v9569_v40  ;;  %v11530_v53 = vand.u32 4294901760, %v9592_v12 }
 0x660   :  { %2647 = vrot.lane.b32.xlu1 %v2638_v24, %s7429_s12  ;;  %v3151_v38 = vand.u32 4294901760, %v3150_v11 }
 0x661   :  { %v9831_v60 = vpack.c.bf16 %v3109_v22, %v3102_v56  ;;  %v3115_v24 = vsub.f32 %v9569_v40, %v11529_v21  ;;  %v3129_v22 = vsub.f32 %v9592_v12, %v11530_v53  ;;  %v3136_v56 = vsub.f32 %v9594_v2, %v11531_v36 }
 0x663   :  { %2673 = vrot.lane.b32.xlu0 %v2664_v46, %s7431_s11  ;;  %v2730_v46 = vsel %vm154_vm2, %v2728_v26, %v11969_v59  ;;  %v3116_v27 = vand.u32 4294901760, %v3115_v24  ;;  %v3130_v26 = vand.u32 4294901760, %v3129_v22  ;;  %v3137_v24 = vand.u32 4294901760, %v3136_v56 }
 0x664   :  { %2715 = vrot.lane.b32.xlu1 %v2704_v54, %s7428_s22  ;;  %v11537_v54 = vand.u32 4294901760, %v9628_v0  ;;  %v11538_v56 = vand.u32 4294901760, %v9667_v8 }
 0x665   :  { %v9853_v21 = vpack.c.bf16 %v3123_v9, %v3116_v27  ;;  %v9861_v53 = vpack.c.bf16 %v3137_v24, %v3130_v26  ;;  %v11534_v9 = vand.u32 4294901760, %v9647_v58  ;;  %v11540_v26 = vand.u32 4294901760, %v9669_v7 }
 0x667   :  { %2651 = vrot.lane.b32.xlu0 %v2639_v20, %s7429_s12  ;;  %v3143_v20 = vsub.f32 %v9628_v0, %v11537_v54  ;;  %v3157_v27 = vsub.f32 %v9647_v58, %v11534_v9 }
 0x668   :  { %2741 = vrot.lane.b32.xlu1 %v2730_v46, %s7429_s12  ;;  %v11535_v46 = vand.u32 4294901760, %v9649_v15 }
 0x669   :  { %v3144_v36 = vand.u32 4294901760, %v3143_v20  ;;  %v3158_v24 = vand.u32 4294901760, %v3157_v27 }
 0x66a   :  { %v3164_v22 = vsub.f32 %v9649_v15, %v11535_v46  ;;  %v11539_v46 = vand.u32 4294901760, %v9683_v37 }
 0x66b   :  { %v9864_v59 = vpack.c.bf16 %v3151_v38, %v3144_v36  ;;  %v3171_v38 = vsub.f32 %v9667_v8, %v11538_v56  ;;  %v3178_v36 = vsub.f32 %v9669_v7, %v11540_v26 }
 0x66c   :  { %2675 = vrot.lane.b32.xlu1 %v2663_v62, %s7431_s11  ;;  %v3165_v62 = vand.u32 4294901760, %v3164_v22  ;;  %v3185_v27 = vsub.f32 %v9683_v37, %v11539_v46  ;;  %v3192_v22 = vsub.f32 %v9685_v57, %v11542_v14 }
 0x66d   :  { %v3172_v11 = vand.u32 4294901760, %v3171_v38  ;;  %v3179_v9 = vand.u32 4294901760, %v3178_v36 }
 0x66e   :  { %v9882_v20 = vpack.c.bf16 %v3165_v62, %v3158_v24  ;;  %v3186_v56 = vand.u32 4294901760, %v3185_v27  ;;  %v11543_v24 = vand.u32 4294901760, %v9715_v3  ;;  %v11544_v62 = vand.u32 4294901760, %v9717_v6 }
 0x66f   :  { %v9886_v54 = vpack.c.bf16 %v3179_v9, %v3172_v11  ;;  %v3193_v38 = vand.u32 4294901760, %v3192_v22 }
 0x670   :  { %v3199_v36 = vsub.f32 %v9715_v3, %v11543_v24  ;;  %v3206_v9 = vsub.f32 %v9717_v6, %v11544_v62 }
 0x671   :  { %v9902_v11 = vpack.c.bf16 %v3193_v38, %v3186_v56 }
 0x672   :  { %v3200_v46 = vand.u32 4294901760, %v3199_v36  ;;  %v3207_v26 = vand.u32 4294901760, %v3206_v9 }
 0x674   :  { %v9904_v42 = vpack.c.bf16 %v3207_v26, %v3200_v46  ;;  %v2684_v46 = vrot.slane %v9589_v17, 4  ;;  %v2683_v26 = vrot.slane %v9574_v29, 4 }
 0x676   :  { %v2685_v24 = vsel %vm110_vm5, %v2683_v26, %v2684_v46 }
 0x6a1   :  { %v2706_v62 = vpop.permute.xlu0 %2705 }
 0x6a2   :  { %v2767_v9 = vsel %vm182_vm6, %v2683_v26, %v2706_v62 }
 0x6a5   :  { %v2732_v56 = vpop.permute.xlu0 %2731 }
 0x6a6   :  { %v2708_v14 = vpop.permute.xlu1 %2707  ;;  %v2773_v19 = vsel %vm189_vm7, %v2767_v9, %v2732_v56 }
 0x6a7   :  { %v2768_v63 = vsel %vm182_vm6, %v2685_v24, %v2708_v14  ;;  %v2794_v48 = vrot.slane %v2773_v19, 5 }
 0x6a9   :  { %v2616_v22 = vpop.permute.xlu0 %2615 }
 0x6aa   :  { %v2618_v27 = vpop.permute.xlu1 %2617  ;;  %v2749_v62 = vsel %vm182_vm6, 0.0, %v2616_v22 }
 0x6ad   :  { %v2642_v52 = vpop.permute.xlu0 %2641 }
 0x6ae   :  { %v2734_v13 = vpop.permute.xlu1 %2733  ;;  %v2755_v26 = vsel %vm189_vm7, %v2749_v62, %v2642_v52 }
 0x6af   :  { %v2774_v38 = vsel %vm189_vm7, %v2768_v63, %v2734_v13  ;;  %v2750_v13 = vsel %vm182_vm6, %v9574_v29, %v2618_v27 }
 0x6b0   :  { %v2795_v8 = vrot.slane %v2774_v38, 5 }
 0x6b1   :  { %v2666_v7 = vpop.permute.xlu0 %2665 }
 0x6b2   :  { %v2796_v36 = vsel %vm126_vm1, %v2794_v48, %v2795_v8  ;;  %v2644_v37 = vpop.permute.xlu1 %2643  ;;  %v2761_v63 = vsel %vm196_vm8, %v2755_v26, %v2666_v7 }
 0x6b3   :  { %v2852_v56 = vsel %vm196_vm8, %v2796_v36, 0  ;;  %v2756_v48 = vsel %vm189_vm7, %v2750_v13, %v2644_v37  ;;  %v2791_v38 = vrot.slane %v2761_v63, 5 }
 0x6b4   :  { %v9945_v9 = vand.u32 4294901760, %v2852_v56 }
 0x6b5   :  { %v2670_v14 = vpop.permute.xlu0 %2669 }
 0x6b6   :  { %v9951_v19 = vsub.f32 %v2852_v56, %v9945_v9  ;;  %v2668_v24 = vpop.permute.xlu1 %2667  ;;  %v11972_v56 = vld [vmem:[#allocation8_spill] sm:$0xff] }
 0x6b7   :  { %v2762_v22 = vsel %vm196_vm8, %v2756_v48, %v2668_v24  ;;  %v2686_v37 = vsel %vm110_vm5, %v2684_v46, %v11972_v56 }
 0x6b8   :  { %v2792_v36 = vrot.slane %v2762_v22, 5  ;;  %v11564_v52 = vand.u32 4294901760, %v9951_v19 }
 0x6b9   :  { %v2710_v62 = vpop.permute.xlu0 %2709 }
 0x6ba   :  { %v2793_v1 = vsel %vm126_vm1, %v2791_v38, %v2792_v36  ;;  %v2620_v3 = vpop.permute.xlu1 %2619  ;;  %v2955_v7 = vsub.f32 %v9951_v19, %v11564_v52  ;;  %v2769_v63 = vsel %vm182_vm6, %v2686_v37, %v2710_v62 }
 0x6bb   :  { %v9960_v27 = vand.u32 4294901760, %v2793_v1  ;;  %v2751_v24 = vsel %vm182_vm6, %v9589_v17, %v2620_v3 }
 0x6bc   :  { %v2956_v26 = vand.u32 4294901760, %v2955_v7 }
 0x6bd   :  { %v9965_v13 = vsub.f32 %v2793_v1, %v9960_v27  ;;  %v2736_v48 = vpop.permute.xlu0 %2735 }
 0x6be   :  { %v2775_v22 = vsel %vm189_vm7, %v2769_v63, %v2736_v48  ;;  %v2646_v38 = vpop.permute.xlu1 %2645  ;;  %2957 = vmatprep.mubr.f32.mxu0 %v2956_v26 }
 0x6bf   :  { %11973 = vst [vmem:[#allocation7_spill] sm:$0xff] %v9965_v13  ;;  %v11568_v52 = vand.u32 4294901760, %v9965_v13  ;;  %v2799_v29 = vrot.slane %v2775_v22, 5  ;;  %v2757_v6 = vsel %vm189_vm7, %v2751_v24, %v2646_v38 }
 0x6c0   :  { %v2763_v46 = vsel %vm196_vm8, %v2757_v6, %v2670_v14 }
 0x6c1   :  { %v2961_v1 = vsub.f32 %v9965_v13, %v11568_v52  ;;  %v2800_v62 = vsel %vm126_vm1, %v2795_v8, %v2799_v29  ;;  %v2797_v7 = vrot.slane %v2763_v46, 5  ;;  %v9978_v37 = vpop.permute.xlu0 %2625 }
 0x6c2   :  { %v2854_v3 = vsel %vm196_vm8, %v2800_v62, 0  ;;  %v2712_v63 = vpop.permute.xlu1 %2711 }
 0x6c3   :  { %v9981_v26 = vand.u32 4294901760, %v2854_v3  ;;  %v2798_v48 = vsel %vm126_vm1, %v2792_v36, %v2797_v7  ;;  %v2962_v22 = vand.u32 4294901760, %v2961_v1  ;;  %v2688_v36 = vrot.slane %v9721_v33, 4 }
 0x6c4   :  { %v9984_v24 = vand.u32 4294901760, %v2798_v48  ;;  %v2687_v1 = vrot.slane %v9726_v5, 4 }
 0x6c5   :  { %v9987_v6 = vsub.f32 %v2854_v3, %v9981_v26  ;;  %2963 = vmatmul.mubr.f32.vlgmr.msra.gmra.mrb[8].mxu0 %v2962_v22  ;;  %v2714_v14 = vpop.permute.xlu0 %2713 }
 0x6c6   :  { %6630 = vmatpush1.bf16.msra.mxu0 %v9736_v4  ;;  %v2738_v29 = vpop.permute.xlu1 %2737  ;;  %v9991_v8 = vsub.f32 %v2798_v48, %v9984_v24  ;;  %v2770_v48 = vsel %vm182_vm6, %v2687_v1, %v2712_v63  ;;  %v2689_v52 = vsel %vm110_vm5, %v2687_v1, %v2688_v36 }
 0x6c7   :  { %11974 = vst [vmem:[#allocation28_spill] sm:$0xff] %v9987_v6  ;;  %6631 = vmatprep.subr.bf16.mxu0 %v11694_v44  ;;  %v11574_v38 = vand.u32 4294901760, %v9987_v6  ;;  %v2776_v17 = vsel %vm189_vm7, %v2770_v48, %v2738_v29  ;;  %v2771_v57 = vsel %vm182_vm6, %v2689_v52, %v2714_v14 }
 0x6c8   :  { %11975 = vst [vmem:[#allocation29_spill] sm:$0xff] %v9991_v8  ;;  %v11577_v46 = vand.u32 4294901760, %v9991_v8 }
 0x6c9   :  { %v2624_v62 = vpop.permute.xlu0 %2623  ;;  %v2970_v7 = vsub.f32 %v9987_v6, %v11574_v38 }
 0x6ca   :  { %6633 = vmatpush1.bf16.msra.mxu0 %v9752_v47  ;;  %v2672_v4 = vpop.permute.xlu1 %2671  ;;  %v2976_v3 = vsub.f32 %v9991_v8, %v11577_v46  ;;  %v2804_v46 = vrot.slane %v2776_v17, 5  ;;  %v2753_v17 = vsel %vm182_vm6, %v9726_v5, %v2624_v62  ;;  %v12018_v5 = vand.u32 4294901760, %v9495_v39 }
 0x6cb   :  { %6634 = vmatprep.subr.bf16.mxu0 %v11694_v44  ;;  %v2971_v22 = vand.u32 4294901760, %v2970_v7 }
 0x6cc   :  { %v2977_v13 = vand.u32 4294901760, %v2976_v3 }
 0x6cd   :  { %2972 = vmatprep.mubr.f32.mxu0 %v2971_v22  ;;  %v2740_v38 = vpop.permute.xlu0 %2739 }
 0x6ce   :  { %6636 = vmatpush1.bf16.msra.mxu0 %v9766_v28  ;;  %v2777_v47 = vsel %vm189_vm7, %v2771_v57, %v2740_v38  ;;  %v2622_v6 = vpop.permute.xlu1 %2621 }
 0x6cf   :  { %v2805_v8 = vrot.slane %v2777_v47, 5  ;;  %2978 = vmatmul.mubr.f32.gmra.mrb[10].mxu0 %v2977_v13  ;;  %6637 = vmatprep.subr.bf16.mxu0 %v11694_v44  ;;  %v2752_v7 = vsel %vm182_vm6, 0.0, %v2622_v6 }
 0x6d1   :  { %v2806_v63 = vsel %vm126_vm1, %v2804_v46, %v2805_v8  ;;  %v2650_v1 = vpop.permute.xlu0 %2649 }
 0x6d2   :  { %v2856_v29 = vsel %vm196_vm8, %v2806_v63, 0  ;;  %6639 = vmatpush1.bf16.msra.mxu0 %v9789_v45  ;;  %v2648_v52 = vpop.permute.xlu1 %2647  ;;  %v2759_v38 = vsel %vm189_vm7, %v2753_v17, %v2650_v1  ;;  %v2754_v17 = vsel %vm182_vm6, %v9721_v33, %v9978_v37 }
 0x6d3   :  { %v10017_v14 = vand.u32 4294901760, %v2856_v29  ;;  %v2758_v57 = vsel %vm189_vm7, %v2752_v7, %v2648_v52  ;;  %6640 = vmatprep.subr.bf16.mxu0 %v11694_v44 }
 0x6d4   :  { %v2764_v28 = vsel %vm196_vm8, %v2758_v57, %v2672_v4  ;;  %v2690_v4 = vsel %vm110_vm5, %v2688_v36, %v11972_v56 }
 0x6d5   :  { %v10025_v13 = vsub.f32 %v2856_v29, %v10017_v14  ;;  %v2674_v6 = vpop.permute.xlu0 %2673  ;;  %v2801_v3 = vrot.slane %v2764_v28, 5 }
 0x6d6   :  { %6642 = vmatpush1.bf16.msra.mxu0 %v9799_v25  ;;  %v2765_v45 = vsel %vm196_vm8, %v2759_v38, %v2674_v6  ;;  %v2716_v46 = vpop.permute.xlu1 %2715 }
 0x6d7   :  { %v2802_v48 = vrot.slane %v2765_v45, 5  ;;  %6643 = vmatprep.subr.bf16.mxu0 %v11694_v44  ;;  %v11583_v22 = vand.u32 4294901760, %v10025_v13  ;;  %v2772_v25 = vsel %vm182_vm6, %v2690_v4, %v2716_v46 }
 0x6d9   :  { %v2803_v62 = vsel %vm126_vm1, %v2801_v3, %v2802_v48  ;;  %v2985_v47 = vsub.f32 %v10025_v13, %v11583_v22  ;;  %v2652_v29 = vpop.permute.xlu0 %2651 }
 0x6da   :  { %v10038_v63 = vand.u32 4294901760, %v2803_v62  ;;  %6645 = vmatpush1.bf16.msra.mxu0 %v9816_v30  ;;  %v2742_v1 = vpop.permute.xlu1 %2741  ;;  %v2760_v28 = vsel %vm189_vm7, %v2754_v17, %v2652_v29  ;;  %v11983_v17 = vpack.c.bf16 %v9571_v35, %v9569_v40 }
 0x6db   :  { %v2778_v7 = vsel %vm189_vm7, %v2772_v25, %v2742_v1  ;;  %6646 = vmatprep.subr.bf16.mxu0 %v11694_v44  ;;  %v2986_v52 = vand.u32 4294901760, %v2985_v47 }
 0x6dc   :  { %v10045_v57 = vsub.f32 %v2803_v62, %v10038_v63  ;;  %v2809_v36 = vrot.slane %v2778_v7, 5 }
 0x6dd   :  { %2987 = vmatprep.mubr.f32.mxu0 %v2986_v52 }
 0x6de   :  { %v2810_v30 = vsel %vm126_vm1, %v2805_v8, %v2809_v36  ;;  %6648 = vmatpush1.bf16.msra.mxu0 %v9831_v60  ;;  %v2676_v38 = vpop.permute.xlu1 %2675  ;;  %v11582_v6 = vand.u32 4294901760, %v10045_v57  ;;  %v11982_v36 = vpack.c.bf16 %v9556_v10, %v9554_v31 }
 0x6df   :  { %v2858_v45 = vsel %vm196_vm8, %v2810_v30, 0  ;;  %v2766_v46 = vsel %vm196_vm8, %v2760_v28, %v2676_v38  ;;  %6649 = vmatprep.subr.bf16.mxu0 %v11694_v44  ;;  %v11984_v28 = vpack.c.bf16 %v9594_v2, %v9592_v12  ;;  %v11985_v30 = vpack.c.bf16 %v9634_v43, %v9628_v0 }
 0x6e0   :  { %v10057_v3 = vand.u32 4294901760, %v2858_v45  ;;  %v2807_v62 = vrot.slane %v2766_v46, 5  ;;  %v2991_v37 = vsub.f32 %v10045_v57, %v11582_v6  ;;  %v11986_v38 = vpack.c.bf16 %v9649_v15, %v9647_v58  ;;  %v11988_v46 = vld [vmem:[#allocation18_spill] sm:$0xff] }
 0x6e1   :  { %v12015_v6 = vand.u32 4294901760, %v9493_v51 }
 0x6e2   :  { %v10063_v8 = vsub.f32 %v2858_v45, %v10057_v3  ;;  %v2808_v60 = vsel %vm126_vm1, %v2802_v48, %v2807_v62  ;;  %6651 = vmatpush1.bf16.msra.mxu0 %v9853_v21  ;;  %v2992_v4 = vand.u32 4294901760, %v2991_v37  ;;  %v11987_v45 = vld [vmem:[#allocation23_spill] sm:$0xff]  ;;  %v11990_v37 = vld [vmem:[#allocation10_spill] sm:$0xff] }
 0x6e3   :  { %v10067_v47 = vand.u32 4294901760, %v2808_v60  ;;  %6652 = vmatprep.subr.bf16.mxu0 %v11694_v44  ;;  %v11989_v62 = vpack.c.bf16 %v11987_v45, %v11988_v46 }
 0x6e4   :  { %2993 = vmatmul.mubr.f32.gmra.mrb[12].mxu0 %v2992_v4  ;;  %v11581_v25 = vand.u32 4294901760, %v10063_v8 }
 0x6e5   :  { %v10072_v1 = vsub.f32 %v2808_v60, %v10067_v47  ;;  %v11991_v60 = vld [vmem:[#allocation12_spill] sm:$0xff] }
 0x6e6   :  { %6654 = vmatpush1.bf16.msra.mxu0 %v9861_v53  ;;  %v3000_v29 = vsub.f32 %v10063_v8, %v11581_v25  ;;  %v11977_v53 = vpack.c.bf16 %v9505_v50, %v9495_v39  ;;  %v11992_v4 = vpack.c.bf16 %v11990_v37, %v11991_v60  ;;  %v12014_v25 = vand.u32 4294901760, %v9491_v18 }
 0x6e7   :  { %6655 = vmatprep.subr.bf16.mxu0 %v11694_v44  ;;  %v11580_v21 = vand.u32 4294901760, %v10072_v1  ;;  %v12024_v39 = vand.u32 4294901760, %v10045_v57 }
 0x6e8   :  { %v3001_v48 = vand.u32 4294901760, %v3000_v29  ;;  %v11993_v29 = vld [vmem:[#allocation16_spill] sm:$0xff]  ;;  %v6755_v22 = vpack.c.bf16 %v12015_v6, %v12014_v25  ;;  %v12023_v6 = vand.u32 4294901760, %v9513_v23 }
 0x6e9   :  { %v3006_v7 = vsub.f32 %v10072_v1, %v11580_v21  ;;  %v12013_v21 = vld [vmem:[#allocation15_spill] sm:$0xff] }
 0x6ea   :  { %6657 = vmatpush1.bf16.msra.mxu0 %v9864_v59  ;;  %3002 = vmatprep.mubr.f32.mxu0 %v3001_v48  ;;  %v11976_v59 = vpack.c.bf16 %v9493_v51, %v9491_v18  ;;  %v11994_v48 = vld [vmem:[#allocation26_spill] sm:$0xff]  ;;  %v12021_v51 = vand.u32 4294901760, %v10025_v13 }
 0x6eb   :  { %6658 = vmatprep.subr.bf16.mxu0 %v11694_v44  ;;  %v3007_v52 = vand.u32 4294901760, %v3006_v7  ;;  %v11995_v7 = vpack.c.bf16 %v11993_v29, %v11994_v48 }
 0x6ed   :  { %3008 = vmatmul.mubr.f32.gmra.mrb[14].mxu0 %v3007_v52  ;;  %v11996_v52 = vld [vmem:[#allocation7_spill] sm:$0xff] }
 0x6ee   :  { %6660 = vmatpush1.bf16.msra.mxu0 %v9882_v20  ;;  %3218 = vmatprep.mubr.f32.mxu0 %v9945_v9  ;;  %v11980_v20 = vpack.c.bf16 %v9522_v16, %v9520_v55  ;;  %v12016_v56 = vand.u32 4294901760, %v11996_v52 }
 0x6ef   :  { %6661 = vmatprep.subr.bf16.mxu0 %v11694_v44 }
 0x6f2   :  { %6663 = vmatpush1.bf16.msra.mxu0 %v9886_v54  ;;  %v11979_v54 = vpack.c.bf16 %v9518_v34, %v9516_v32 }
 0x6f3   :  { %6664 = vmatprep.subr.bf16.mxu0 %v11694_v44 }
 0x6f6   :  { %6666 = vmatpush1.bf16.msra.mxu0 %v9902_v11  ;;  %v11981_v11 = vpack.c.bf16 %v9529_v41, %v9524_v61 }
 0x6f7   :  { %6667 = vmatprep.subr.bf16.mxu0 %v11694_v44 }
 0x6fa   :  { %6669 = vmatpush1.bf16.msra.mxu0 %v9904_v42  ;;  %v11978_v42 = vpack.c.bf16 %v9513_v23, %v9507_v49  ;;  %v12029_v23 = vand.u32 4294901760, %v9520_v55  ;;  %v12035_v55 = vand.u32 4294901760, %v9569_v40  ;;  %v12041_v40 = vand.u32 4294901760, %v9647_v58 }
 0x6fb   :  { %6670 = vmatprep.subr.bf16.mxu0 %v11694_v44  ;;  %v12047_v58 = vand.u32 4294901760, %v11994_v48 }
 0x6fd   :  { %3220 = vmatmul.mubr.f32.vlgmr.msra.gmra.mrb[8].mxu0 %v9960_v27 }
 0x6fe   :  { %3225 = vmatprep.mubr.f32.mxu0 %v9981_v26  ;;  %6672 = vmatpush1.bf16.msra.mxu0 %v11976_v59  ;;  %v11997_v59 = vld [vmem:[#allocation28_spill] sm:$0xff] }
 0x6ff   :  { %6673 = vmatprep.subr.bf16.mxu0 %v11694_v44  ;;  %v12017_v33 = vand.u32 4294901760, %v11997_v59 }
 0x701   :  { %3227 = vmatmul.mubr.f32.gmra.mrb[10].mxu0 %v9984_v24 }
 0x702   :  { %3232 = vmatprep.mubr.f32.mxu0 %v10017_v14  ;;  %6675 = vmatpush1.bf16.msra.mxu0 %v11977_v53  ;;  %v11998_v53 = vld [vmem:[#allocation20_spill] sm:$0xff] }
 0x703   :  { %6676 = vmatprep.subr.bf16.mxu0 %v11694_v44 }
 0x705   :  { %3234 = vmatmul.mubr.f32.gmra.mrb[12].mxu0 %v10038_v63 }
 0x706   :  { %3239 = vmatprep.mubr.f32.mxu0 %v10057_v3  ;;  %6678 = vmatpush1.bf16.msra.mxu0 %v11978_v42  ;;  %v11999_v42 = vld [vmem:[#allocation29_spill] sm:$0xff] }
 0x707   :  { %6679 = vmatprep.subr.bf16.mxu0 %v11694_v44  ;;  %v12020_v18 = vand.u32 4294901760, %v11999_v42 }
 0x709   :  { %3241 = vmatmul.mubr.f32.gmra.mrb[14].mxu0 %v10067_v47 }
 0x70a   :  { %6681 = vmatpush1.bf16.msra.mxu0 %v11979_v54  ;;  %3368 = vmatprep.mubr.f32.mxu0 %v9951_v19  ;;  %v12000_v54 = vld [vmem:[#allocation17_spill] sm:$0xff] }
 0x70b   :  { %6682 = vmatprep.subr.bf16.mxu0 %v11694_v44 }
 0x70e   :  { %6684 = vmatpush1.bf16.msra.mxu0 %v11980_v20  ;;  %v12001_v20 = vld [vmem:[#allocation25_spill] sm:$0xff] }
 0x70f   :  { %6685 = vmatprep.subr.bf16.mxu0 %v11694_v44 }
 0x712   :  { %6687 = vmatpush1.bf16.msra.mxu0 %v11981_v11  ;;  %v12002_v11 = vld [vmem:[#allocation24_spill] sm:$0xff] }
 0x713   :  { %6688 = vmatprep.subr.bf16.mxu0 %v11694_v44 }
 0x716   :  { %6690 = vmatpush1.bf16.msra.mxu0 %v11982_v36  ;;  %v12003_v36 = vand.u32 4294901760, %v9951_v19  ;;  %v12008_v19 = vld [vmem:[#allocation33_spill] sm:$0xff] }
 0x717   :  { %6691 = vmatprep.subr.bf16.mxu0 %v11694_v44 }
 0x71a   :  { %6693 = vmatpush1.bf16.msra.mxu0 %v11983_v17  ;;  %v12004_v17 = vld [vmem:[#allocation30_spill] sm:$0xff] }
 0x71b   :  { %6694 = vmatprep.subr.bf16.mxu0 %v11694_v44 }
 0x71e   :  { %6696 = vmatpush1.bf16.msra.mxu0 %v11984_v28  ;;  %v12005_v28 = vld [vmem:[#allocation27_spill] sm:$0xff] }
 0x71f   :  { %6697 = vmatprep.subr.bf16.mxu0 %v11694_v44 }
 0x722   :  { %6699 = vmatpush1.bf16.msra.mxu0 %v11985_v30  ;;  %v12006_v30 = vld [vmem:[#allocation31_spill] sm:$0xff] }
 0x723   :  { %6700 = vmatprep.subr.bf16.mxu0 %v11694_v44 }
 0x726   :  { %6702 = vmatpush1.bf16.msra.mxu0 %v11986_v38  ;;  %v12007_v38 = vld [vmem:[#allocation32_spill] sm:$0xff] }
 0x727   :  { %6703 = vmatprep.subr.bf16.mxu0 %v11694_v44 }
 0x72a   :  { %6705 = vmatpush1.bf16.msra.mxu0 %v11989_v62  ;;  %v12009_v62 = vld [vmem:[#allocation4_spill] sm:$0xff] }
 0x72b   :  { %6706 = vmatprep.subr.bf16.mxu0 %v11694_v44 }
 0x72e   :  { %6708 = vmatpush1.bf16.msra.mxu0 %v11992_v4  ;;  %v12010_v4 = vld [vmem:[#allocation2_spill] sm:$0xff] }
 0x72f   :  { %6709 = vmatprep.subr.bf16.mxu0 %v11694_v44 }
 0x732   :  { %6711 = vmatpush1.bf16.msra.mxu0 %v11995_v7  ;;  %v12011_v7 = vld [vmem:[#allocation19_spill] sm:$0xff] }
 0x733   :  { %6712 = vmatprep.subr.bf16.mxu0 %v11694_v44 }
 0x735   :  { %3371 = vmatmul.mubr.f32.vlgmr.msra.gmra.mrb[8].mxu0 %v11996_v52  ;;  %v12034_v52 = vand.u32 4294901760, %v9556_v10  ;;  %v12040_v10 = vand.u32 4294901760, %v9634_v43  ;;  %v12046_v43 = vand.u32 4294901760, %v11990_v37 }
 0x736   :  { %3377 = vmatprep.mubr.f32.mxu0 %v11997_v59  ;;  %6714 = vmatpush1.bf16.msra.mxu0 %v11998_v53 }
 0x737   :  { %6715 = vmatprep.subr.bf16.mxu0 %v11694_v44 }
 0x739   :  { %3380 = vmatmul.mubr.f32.gmra.mrb[10].mxu0 %v11999_v42 }
 0x73a   :  { %3386 = vmatprep.mubr.f32.mxu0 %v10025_v13  ;;  %6717 = vmatpush1.bf16.msra.mxu0 %v12000_v54  ;;  %v12027_v13 = vand.u32 4294901760, %v9518_v34  ;;  %v12032_v34 = vand.u32 4294901760, %v9529_v41  ;;  %v12038_v41 = vand.u32 4294901760, %v9594_v2  ;;  %v12044_v2 = vand.u32 4294901760, %v11987_v45  ;;  %v12050_v45 = vld [vmem:[#allocation22_spill] sm:$0xff] }
 0x73b   :  { %6718 = vmatprep.subr.bf16.mxu0 %v11694_v44 }
 0x73d   :  { %3389 = vmatmul.mubr.f32.gmra.mrb[12].mxu0 %v10045_v57  ;;  %v12030_v57 = vand.u32 4294901760, %v9522_v16  ;;  %v12036_v16 = vand.u32 4294901760, %v9571_v35  ;;  %v12042_v35 = vand.u32 4294901760, %v9649_v15  ;;  %v12048_v15 = vand.u32 4294901760, %v11993_v29 }
 0x73e   :  { %3395 = vmatprep.mubr.f32.mxu0 %v10063_v8  ;;  %6720 = vmatpush1.bf16.msra.mxu0 %v12001_v20 }
 0x73f   :  { %6721 = vmatprep.subr.bf16.mxu0 %v11694_v44  ;;  %v6776_v42 = vpack.c.bf16 %v12036_v16, %v12035_v55  ;;  %v5917_v16 = vld [vmem:[%s11280_s1 + $0x2d0] sm:$0xff] }
 0x741   :  { %3398 = vmatmul.mubr.f32.gmra.mrb[14].mxu0 %v10072_v1 }
 0x742   :  { %6723 = vmatpush1.bf16.msra.mxu0 %v12002_v11  ;;  %3498 = vmatprep.mubr.f32.mxu0 %v12003_v36  ;;  %v12012_v36 = vld [vmem:[#allocation22_spill] sm:$0xff] }
 0x743   :  { %6724 = vmatprep.subr.bf16.mxu0 %v11694_v44 }
 0x746   :  { %6726 = vmatpush1.bf16.msra.mxu0 %v12004_v17 }
 0x747   :  { %6727 = vmatprep.subr.bf16.mxu0 %v11694_v44 }
 0x74a   :  { %6729 = vmatpush1.bf16.msra.mxu0 %v12005_v28 }
 0x74b   :  { %6730 = vmatprep.subr.bf16.mxu0 %v11694_v44 }
 0x74e   :  { %6732 = vmatpush1.bf16.msra.mxu0 %v12006_v30 }
 0x74f   :  { %6733 = vmatprep.subr.bf16.mxu0 %v11694_v44 }
 0x752   :  { %6735 = vmatpush1.bf16.msra.mxu0 %v12007_v38 }
 0x753   :  { %6736 = vmatprep.subr.bf16.mxu0 %v11694_v44 }
 0x756   :  { %6738 = vmatpush1.bf16.msra.mxu0 %v12008_v19 }
 0x757   :  { %6739 = vmatprep.subr.bf16.mxu0 %v11694_v44 }
 0x75a   :  { %6741 = vmatpush1.bf16.msra.mxu0 %v12009_v62 }
 0x75b   :  { %6742 = vmatprep.subr.bf16.mxu0 %v11694_v44 }
 0x75e   :  { %6744 = vmatpush1.bf16.msra.mxu0 %v12010_v4 }
 0x75f   :  { %6745 = vmatprep.subr.bf16.mxu0 %v11694_v44 }
 0x762   :  { %6747 = vmatpush1.bf16.msra.mxu0 %v12011_v7 }
 0x763   :  { %6748 = vmatprep.subr.bf16.mxu0 %v11694_v44 }
 0x766   :  { %6750 = vmatpush1.bf16.msra.mxu0 %v12012_v36  ;;  %v12019_v36 = vand.u32 4294901760, %v9505_v50  ;;  %v12025_v50 = vand.u32 4294901760, %v10063_v8  ;;  %v6767_v8 = vpack.c.bf16 %v12030_v57, %v12029_v23  ;;  %v5913_v23 = vld [vmem:[%s11280_s1 + $0x2b0] sm:$0xff] }
 0x767   :  { %6751 = vmatprep.subr.bf16.mxu0 %v11694_v44 }
 0x768   :  { %v6758_v7 = vpack.c.bf16 %v12019_v36, %v12018_v5  ;;  %v12026_v5 = vand.u32 4294901760, %v9516_v32  ;;  %v12031_v32 = vand.u32 4294901760, %v9524_v61  ;;  %v12037_v61 = vand.u32 4294901760, %v9592_v12 }
 0x769   :  { %v12043_v12 = vand.u32 4294901760, %v11988_v46  ;;  %v5906_v46 = vld [vmem:[%s11281_s2 + $0x2] ss:$0 sm:$0xff] }
 0x76a   :  { %6753 = vmatpush1.bf16.msra.mxu0 %v12013_v21  ;;  %v6770_v25 = vpack.c.bf16 %v12032_v34, %v12031_v32  ;;  %v5914_v32 = vld [vmem:[%s11280_s1 + $0x2b8] sm:$0xff]  ;;  %v4150_v34 = vand.u32 4294901760, %v5913_v23 }
 0x76b   :  { %6754 = vmatprep.subr.bf16.mxu0 %v11694_v44 }
 0x76d   :  { %3502 = vmatmul.mubr.f32.vlgmr.msra.gmra.mrb[8].mxu0 %v12016_v56  ;;  %v12022_v56 = vand.u32 4294901760, %v9507_v49  ;;  %v12028_v49 = vand.u32 4294901760, %v10072_v1  ;;  %v12033_v1 = vand.u32 4294901760, %v9554_v31  ;;  %v12039_v31 = vand.u32 4294901760, %v9628_v0 }
 0x76e   :  { %3509 = vmatprep.mubr.f32.mxu0 %v12017_v33  ;;  %6756 = vmatpush1.bf16.msra.mxu0 %v6755_v22  ;;  %v6764_v22 = vpack.c.bf16 %v12027_v13, %v12026_v5  ;;  %v12045_v0 = vand.u32 4294901760, %v11991_v60 }
 0x76f   :  { %6757 = vmatprep.subr.bf16.mxu0 %v11694_v44  ;;  %v6761_v33 = vpack.c.bf16 %v12023_v6, %v12022_v56  ;;  %v6773_v59 = vpack.c.bf16 %v12034_v52, %v12033_v1  ;;  %v6782_v36 = vpack.c.bf16 %v12040_v10, %v12039_v31  ;;  %v6794_v6 = vpack.c.bf16 %v12048_v15, %v12047_v58  ;;  %v5916_v1 = vld [vmem:[%s11280_s1 + $0x2c8] sm:$0xff] }
 0x770   :  { %v6791_v56 = vpack.c.bf16 %v12046_v43, %v12045_v0  ;;  %v4153_v52 = vand.u32 4294901760, %v5914_v32  ;;  %v4159_v55 = vand.u32 4294901760, %v5916_v1  ;;  %v10374_v10 = vsub.f32 %v5913_v23, %v4150_v34  ;;  %v5928_v23 = vld [vmem:[%s11280_s1 + $0x328] sm:$0xff] }
 0x771   :  { %3513 = vmatmul.mubr.f32.gmra.mrb[10].mxu0 %v12020_v18  ;;  %v6785_v18 = vpack.c.bf16 %v12042_v35, %v12041_v40  ;;  %v5921_v40 = vld [vmem:[%s11280_s1 + $0x2f0] sm:$0xff]  ;;  %v4162_v0 = vand.u32 4294901760, %v5917_v16 }
 0x772   :  { %3520 = vmatprep.mubr.f32.mxu0 %v12021_v51  ;;  %6759 = vmatpush1.bf16.msra.mxu0 %v6758_v7  ;;  %v6779_v7 = vpack.c.bf16 %v12038_v41, %v12037_v61  ;;  %v6788_v51 = vpack.c.bf16 %v12044_v2, %v12043_v12  ;;  %v5919_v61 = vld [vmem:[%s11280_s1 + $0x2e0] sm:$0xff]  ;;  %v10382_v35 = vpack.c.bf16 %v4153_v52, %v4150_v34  ;;  %v5922_v2 = vld [vmem:[%s11280_s1 + $0x2f8] sm:$0xff]  ;;  %v4174_v15 = vand.u32 4294901760, %v5921_v40 }
 0x773   :  { %6760 = vmatprep.subr.bf16.mxu0 %v11694_v44 }
 0x774   :  { %12052 = vst [vmem:[#allocation18_spill] sm:$0xff] %v10382_v35 }
 0x775   :  { %3524 = vmatmul.mubr.f32.gmra.mrb[12].mxu0 %v12024_v39 }
 0x776   :  { %3531 = vmatprep.mubr.f32.mxu0 %v12025_v50  ;;  %6762 = vmatpush1.bf16.msra.mxu0 %v6761_v33 }
 0x777   :  { %6763 = vmatprep.subr.bf16.mxu0 %v11694_v44 }
 0x779   :  { %3535 = vmatmul.mubr.f32.gmra.mrb[14].mxu0 %v12028_v49  ;;  %v5912_v49 = vld [vmem:[%s11280_s1 + $0x2a8] sm:$0xff] }
 0x77a   :  { %6765 = vmatpush1.bf16.msra.mxu0 %v6764_v22  ;;  %3689 = vmatprep.mubr.f32.mxu0 %v9945_v9  ;;  %v5911_v22 = vld [vmem:[%s11280_s1 + $0x2a0] sm:$0xff] }
 0x77b   :  { %6766 = vmatprep.subr.bf16.mxu0 %v11694_v44  ;;  %v4144_v57 = vand.u32 4294901760, %v5911_v22 }
 0x77e   :  { %6768 = vmatpush1.bf16.msra.mxu0 %v6767_v8  ;;  %v4147_v8 = vand.u32 4294901760, %v5912_v49 }
 0x77f   :  { %6769 = vmatprep.subr.bf16.mxu0 %v11694_v44 }
 0x780   :  { %v10368_v41 = vpack.c.bf16 %v4147_v8, %v4144_v57  ;;  %v10372_v31 = vsub.f32 %v5912_v49, %v4147_v8  ;;  %v5927_v49 = vld [vmem:[%s11280_s1 + $0x320] sm:$0xff]  ;;  %v4195_v8 = vand.u32 4294901760, %v5928_v23 }
 0x782   :  { %6771 = vmatpush1.bf16.msra.mxu0 %v6770_v25  ;;  %v5915_v25 = vld [vmem:[%s11280_s1 + $0x2c0] sm:$0xff]  ;;  %12051 = vst [vmem:[#allocation23_spill] sm:$0xff] %v10368_v41  ;;  %6840 = vmatpush1.bf16.msra.mxu1 %v10368_v41 }
 0x783   :  { %6772 = vmatprep.subr.bf16.mxu0 %v11694_v44  ;;  %6841 = vmatprep.subr.bf16.mxu1 %v11694_v44 }
 0x786   :  { %6774 = vmatpush1.bf16.msra.mxu0 %v6773_v59  ;;  %v4156_v59 = vand.u32 4294901760, %v5915_v25  ;;  %6843 = vmatpush1.bf16.msra.mxu1 %v10382_v35 }
 0x787   :  { %6775 = vmatprep.subr.bf16.mxu0 %v11694_v44  ;;  %6844 = vmatprep.subr.bf16.mxu1 %v11694_v44 }
 0x788   :  { %v10386_v12 = vsub.f32 %v5915_v25, %v4156_v59 }
 0x78a   :  { %6777 = vmatpush1.bf16.msra.mxu0 %v6776_v42  ;;  %v5918_v42 = vld [vmem:[%s11280_s1 + $0x2d8] sm:$0xff] }
 0x78b   :  { %6778 = vmatprep.subr.bf16.mxu0 %v11694_v44  ;;  %v4165_v43 = vand.u32 4294901760, %v5918_v42 }
 0x78e   :  { %6780 = vmatpush1.bf16.msra.mxu0 %v6779_v7  ;;  %v10370_v7 = vsub.f32 %v5911_v22, %v4144_v57 }
 0x78f   :  { %6781 = vmatprep.subr.bf16.mxu0 %v11694_v44 }
 0x792   :  { %6783 = vmatpush1.bf16.msra.mxu0 %v6782_v36  ;;  %v5920_v36 = vld [vmem:[%s11280_s1 + $0x2e8] sm:$0xff] }
 0x793   :  { %6784 = vmatprep.subr.bf16.mxu0 %v11694_v44  ;;  %v4171_v58 = vand.u32 4294901760, %v5920_v36 }
 0x796   :  { %6786 = vmatpush1.bf16.msra.mxu0 %v6785_v18  ;;  %v10384_v18 = vsub.f32 %v5914_v32, %v4153_v52 }
 0x797   :  { %6787 = vmatprep.subr.bf16.mxu0 %v11694_v44 }
 0x79a   :  { %6789 = vmatpush1.bf16.msra.mxu0 %v6788_v51  ;;  %v10392_v51 = vsub.f32 %v5916_v1, %v4159_v55  ;;  %v12062_v1 = vld [vmem:[#allocation14_spill] sm:$0xff] }
 0x79b   :  { %6790 = vmatprep.subr.bf16.mxu0 %v11694_v44 }
 0x79e   :  { %6792 = vmatpush1.bf16.msra.mxu0 %v6791_v56  ;;  %v4168_v56 = vand.u32 4294901760, %v5919_v61 }
 0x79f   :  { %6793 = vmatprep.subr.bf16.mxu0 %v11694_v44 }
 0x7a2   :  { %6795 = vmatpush1.bf16.msra.mxu0 %v6794_v6  ;;  %v10395_v6 = vsub.f32 %v5917_v16, %v4162_v0 }
 0x7a3   :  { %6796 = vmatprep.subr.bf16.mxu0 %v11694_v44 }
 0x7a5   :  { %3691 = vmatmul.mubr.f32.vlgmr.msra.gmra.mrb[8].mxu0 %v9960_v27 }
 0x7a6   :  { %3696 = vmatprep.mubr.f32.mxu0 %v9981_v26  ;;  %6798 = vmatpush1.bf16.msra.mxu0 %v11998_v53 }
 0x7a7   :  { %6799 = vmatprep.subr.bf16.mxu0 %v11694_v44 }
 0x7a9   :  { %3698 = vmatmul.mubr.f32.gmra.mrb[10].mxu0 %v9984_v24 }
 0x7aa   :  { %3703 = vmatprep.mubr.f32.mxu0 %v10017_v14  ;;  %6801 = vmatpush1.bf16.msra.mxu0 %v12000_v54 }
 0x7ab   :  { %6802 = vmatprep.subr.bf16.mxu0 %v11694_v44 }
 0x7ad   :  { %3705 = vmatmul.mubr.f32.gmra.mrb[12].mxu0 %v10038_v63 }
 0x7ae   :  { %3710 = vmatprep.mubr.f32.mxu0 %v10057_v3  ;;  %6804 = vmatpush1.bf16.msra.mxu0 %v12001_v20 }
 0x7af   :  { %6805 = vmatprep.subr.bf16.mxu0 %v11694_v44 }
 0x7b1   :  { %3712 = vmatmul.mubr.f32.gmra.mrb[14].mxu0 %v10067_v47 }
 0x7b2   :  { %6807 = vmatpush1.bf16.msra.mxu0 %v12002_v11  ;;  %3810 = vmatprep.mubr.f32.mxu0 %v9945_v9  ;;  %v12049_v9 = vld [vmem:[#allocation19_spill] sm:$0xff] }
 0x7b3   :  { %6808 = vmatprep.subr.bf16.mxu0 %v11694_v44 }
 0x7b6   :  { %6810 = vmatpush1.bf16.msra.mxu0 %v12004_v17 }
 0x7b7   :  { %6811 = vmatprep.subr.bf16.mxu0 %v11694_v44 }
 0x7ba   :  { %6813 = vmatpush1.bf16.msra.mxu0 %v12005_v28 }
 0x7bb   :  { %6814 = vmatprep.subr.bf16.mxu0 %v11694_v44 }
 0x7be   :  { %6816 = vmatpush1.bf16.msra.mxu0 %v12006_v30 }
 0x7bf   :  { %6817 = vmatprep.subr.bf16.mxu0 %v11694_v44 }
 0x7c2   :  { %6819 = vmatpush1.bf16.msra.mxu0 %v12007_v38 }
 0x7c3   :  { %6820 = vmatprep.subr.bf16.mxu0 %v11694_v44 }
 0x7c6   :  { %6822 = vmatpush1.bf16.msra.mxu0 %v12008_v19 }
 0x7c7   :  { %6823 = vmatprep.subr.bf16.mxu0 %v11694_v44 }
 0x7ca   :  { %6825 = vmatpush1.bf16.msra.mxu0 %v12009_v62 }
 0x7cb   :  { %6826 = vmatprep.subr.bf16.mxu0 %v11694_v44 }
 0x7ce   :  { %6828 = vmatpush1.bf16.msra.mxu0 %v12010_v4 }
 0x7cf   :  { %6829 = vmatprep.subr.bf16.mxu0 %v11694_v44 }
 0x7d2   :  { %6831 = vmatpush1.bf16.msra.mxu0 %v12049_v9  ;;  %v10397_v9 = vsub.f32 %v5918_v42, %v4165_v43 }
 0x7d3   :  { %6832 = vmatprep.subr.bf16.mxu0 %v11694_v44 }
 0x7d6   :  { %6834 = vmatpush1.bf16.msra.mxu0 %v12050_v45  ;;  %v10399_v45 = vsub.f32 %v5919_v61, %v4168_v56 }
 0x7d7   :  { %6835 = vmatprep.subr.bf16.mxu0 %v11694_v44 }
 0x7da   :  { %6837 = vmatpush1.bf16.msra.mxu0 %v12013_v21 }
 0x7dd   :  { %3812 = vmatmul.mubr.f32.vlgmr.msra.gmra.mrb[8].mxu0 %v9960_v27 }
 0x7de   :  { %3817 = vmatprep.mubr.f32.mxu0 %v9981_v26 }
 0x7e1   :  { %3819 = vmatmul.mubr.f32.gmra.mrb[10].mxu0 %v9984_v24 }
 0x7e2   :  { %3824 = vmatprep.mubr.f32.mxu0 %v10017_v14 }
 0x7e5   :  { %3826 = vmatmul.mubr.f32.gmra.mrb[12].mxu0 %v10038_v63 }
 0x7e6   :  { %3831 = vmatprep.mubr.f32.mxu0 %v10057_v3 }
 0x7e9   :  { %3833 = vmatmul.mubr.f32.gmra.mrb[14].mxu0 %v10067_v47 }
 0x8b0   :  { %v3813_v37 = vpop.f32.mrb[8].mxu0 }
 0x8b1   :  { %v10325_v21 = vadd.f32 %v5906_v46, %v3813_v37  ;;  %v3815_v27 = vpop.f32.mrb[9].mxu0  ;;  %v10401_v37 = vsub.f32 %v5920_v36, %v4171_v58 }
 0x8b2   :  { %v10403_v27 = vsub.f32 %v5921_v40, %v4174_v15  ;;  %v5929_v40 = vld [vmem:[%s11280_s1 + $0x330] sm:$0xff] }
 0x8b3   :  { %v5907_v26 = vmul.f32 -1.442695, %v10325_v21 }
 0x8b4   :  { %v3820_v60 = vpop.f32.mrb[10].mxu0 }
 0x8b5   :  { %7375 = vpow2.f32 %v5907_v26  ;;  %v10328_v24 = vadd.f32 %v5906_v46, %v3820_v60  ;;  %v3822_v14 = vpop.f32.mrb[11].mxu0  ;;  %v10406_v26 = vpack.c.bf16 %v4159_v55, %v4156_v59  ;;  %v10473_v55 = vsub.f32 %v5928_v23, %v4195_v8 }
 0x8b6   :  { %v10412_v14 = vpack.c.bf16 %v4165_v43, %v4162_v0  ;;  %v12064_v0 = vld [vmem:[#allocation3_spill] sm:$0xff] }
 0x8b7   :  { %v5908_v63 = vmul.f32 -1.442695, %v10328_v24  ;;  %12053 = vst [vmem:[#allocation10_spill] sm:$0xff] %v10406_v26  ;;  %6846 = vmatpush1.bf16.msra.mxu1 %v10406_v26 }
 0x8b8   :  { %v3827_v3 = vpop.f32.mrb[12].mxu0  ;;  %12054 = vst [vmem:[#allocation12_spill] sm:$0xff] %v10412_v14  ;;  %6847 = vmatprep.subr.bf16.mxu1 %v11694_v44 }
 0x8b9   :  { %7377 = vpow2.f32 %v5908_v63  ;;  %v10331_v47 = vadd.f32 %v5906_v46, %v3827_v3  ;;  %v3829_v29 = vpop.f32.mrb[13].mxu0  ;;  %v10416_v63 = vpack.c.bf16 %v4171_v58, %v4168_v56  ;;  %v4198_v58 = vand.u32 4294901760, %v5929_v40 }
 0x8ba   :  { %v5923_v29 = vld [vmem:[%s11280_s1 + $0x300] sm:$0xff] }
 0x8bb   :  { %v5909_v48 = vmul.f32 -1.442695, %v10331_v47  ;;  %6849 = vmatpush1.bf16.msra.mxu1 %v10412_v14  ;;  %12055 = vst [vmem:[#allocation16_spill] sm:$0xff] %v10416_v63 }
 0x8bc   :  { %v3834_v53 = vpop.f32.mrb[14].mxu0  ;;  %6850 = vmatprep.subr.bf16.mxu1 %v11694_v44 }
 0x8bd   :  { %7379 = vpow2.f32 %v5909_v48  ;;  %v10334_v54 = vadd.f32 %v5906_v46, %v3834_v53  ;;  %v3836_v20 = vpop.f32.mrb[15].mxu0  ;;  %v4177_v46 = vand.u32 4294901760, %v5922_v2  ;;  %v5924_v48 = vld [vmem:[%s11280_s1 + $0x308] sm:$0xff]  ;;  %v4180_v53 = vand.u32 4294901760, %v5923_v29 }
 0x8be   :  { %v4183_v20 = vand.u32 4294901760, %v5924_v48 }
 0x8bf   :  { %v7376_v11 = vpop.eup %7375  ;;  %v5910_v17 = vmul.f32 -1.442695, %v10334_v54  ;;  %v10408_v60 = vsub.f32 %v5922_v2, %v4177_v46  ;;  %6852 = vmatpush1.bf16.msra.mxu1 %v10416_v63  ;;  %v10420_v3 = vpack.c.bf16 %v4177_v46, %v4174_v15  ;;  %v5930_v2 = vld [vmem:[%s11280_s1 + $0x338] sm:$0xff]  ;;  %v5931_v15 = vld [vmem:[%s11280_s1 + $0x340] sm:$0xff]  ;;  %v5932_v46 = vld [vmem:[%s11280_s1 + $0x348] sm:$0xff] }
 0x8c0   :  { %v3850_v28 = vadd.f32 1.0, %v7376_v11  ;;  %6853 = vmatprep.subr.bf16.mxu1 %v11694_v44  ;;  %v10431_v11 = vpack.c.bf16 %v4183_v20, %v4180_v53 }
 0x8c1   :  { %7381 = vpow2.f32 %v5910_v17  ;;  %12056 = vst [vmem:[#allocation26_spill] sm:$0xff] %v10420_v3  ;;  %v10433_v17 = vsub.f32 %v5923_v29, %v4180_v53  ;;  %v4201_v53 = vand.u32 4294901760, %v5930_v2 }
 0x8c2   :  { %7383 = vrcp.f32 %v3850_v28  ;;  %12057 = vst [vmem:[#allocation7_spill] sm:$0xff] %v10431_v11  ;;  %v10435_v28 = vsub.f32 %v5924_v48, %v4183_v20  ;;  %v10507_v20 = vsub.f32 %v5929_v40, %v4198_v58 }
 0x8c3   :  { %v7378_v30 = vpop.eup %7377  ;;  %6855 = vmatpush1.bf16.msra.mxu1 %v10420_v3  ;;  %v11633_v3 = vand.u32 4294901760, %v10433_v17 }
 0x8c4   :  { %v3851_v38 = vadd.f32 1.0, %v7378_v30  ;;  %6856 = vmatprep.subr.bf16.mxu1 %v11694_v44  ;;  %v5925_v30 = vld [vmem:[%s11280_s1 + $0x310] sm:$0xff] }
 0x8c6   :  { %7385 = vrcp.f32 %v3851_v38  ;;  %v5926_v38 = vld [vmem:[%s11280_s1 + $0x318] sm:$0xff] }
 0x8c7   :  { %v7380_v19 = vpop.eup %7379  ;;  %6858 = vmatpush1.bf16.msra.mxu1 %v10431_v11 }
 0x8c8   :  { %v3852_v62 = vadd.f32 1.0, %v7380_v19  ;;  %6859 = vmatprep.subr.bf16.mxu1 %v11694_v44 }
 0x8ca   :  { %7387 = vrcp.f32 %v3852_v62  ;;  %v4186_v62 = vand.u32 4294901760, %v5925_v30 }
 0x8cb   :  { %v7382_v4 = vpop.eup %7381 }
 0x8cc   :  { %v7384_v33 = vpop.eup %7383  ;;  %v3853_v39 = vadd.f32 1.0, %v7382_v4  ;;  %v4189_v4 = vand.u32 4294901760, %v5926_v38 }
 0x8cd   :  { %3866 = vrot.lane.b32.xlu0 %v7384_v33, %s7431_s11 }
 0x8ce   :  { %7389 = vrcp.f32 %v3853_v39  ;;  %v10446_v39 = vpack.c.bf16 %v4189_v4, %v4186_v62 }
 0x8d0   :  { %v7386_v50 = vpop.eup %7385  ;;  %12058 = vst [vmem:[#allocation28_spill] sm:$0xff] %v10446_v39  ;;  %6861 = vmatpush1.bf16.msra.mxu1 %v10446_v39  ;;  %v11616_v39 = vand.u32 4294901760, %v10408_v60 }
 0x8d1   :  { %3868 = vrot.lane.b32.xlu1 %v7386_v50, %s7431_s11  ;;  %v10448_v50 = vsub.f32 %v5925_v30, %v4186_v62  ;;  %6862 = vmatprep.subr.bf16.mxu1 %v11694_v44  ;;  %v4204_v30 = vand.u32 4294901760, %v5931_v15 }
 0x8d4   :  { %v7388_v5 = vpop.eup %7387 }
 0x8d5   :  { %3870 = vrot.lane.b32.xlu0 %v7388_v5, %s7431_s11  ;;  %v10450_v5 = vsub.f32 %v5926_v38, %v4189_v4  ;;  %v4207_v38 = vand.u32 4294901760, %v5932_v46  ;;  %v10511_v4 = vpack.c.bf16 %v4201_v53, %v4198_v58 }
 0x8d7   :  { %12066 = vst [vmem:[#allocation25_spill] sm:$0xff] %v10511_v4 }
 0x8d8   :  { %v7390_v13 = vpop.eup %7389 }
 0x8d9   :  { %3872 = vrot.lane.b32.xlu1 %v7390_v13, %s7431_s11  ;;  %v12059_v13 = vld [vmem:[#allocation13_spill] sm:$0xff] }
 0x93f   :  { %v3867_v19 = vpop.permute.xlu0 %3866 }
 0x940   :  { %v3878_v33 = vmul.f32 %v10325_v21, %v3867_v19  ;;  %v4192_v21 = vand.u32 4294901760, %v5927_v49  ;;  %v12065_v19 = vld [vmem:[#allocation5_spill] sm:$0xff] }
 0x942   :  { %v10453_v22 = vadd.f32 %v3878_v33, %v12059_v13  ;;  %v10465_v25 = vpack.c.bf16 %v4195_v8, %v4192_v21  ;;  %v10471_v59 = vsub.f32 %v5927_v49, %v4192_v21  ;;  %v10513_v33 = vsub.f32 %v5930_v2, %v4201_v53  ;;  %v5933_v21 = vld [vmem:[%s11280_s1 + $0x350] sm:$0xff]  ;;  %v5934_v8 = vld [vmem:[%s11280_s1 + $0x358] sm:$0xff]  ;;  %v5935_v2 = vld [vmem:[%s11280_s1 + $0x360] sm:$0xff] }
 0x943   :  { %v3869_v57 = vpop.permute.xlu1 %3868 }
 0x944   :  { %12060 = vst [vmem:[#allocation20_spill] sm:$0xff] %v10453_v22  ;;  %v3879_v32 = vmul.f32 %v10328_v24, %v3869_v57  ;;  %v3980_v34 = vrot.slane %v10453_v22, 5  ;;  %12061 = vst [vmem:[#allocation29_spill] sm:$0xff] %v10465_v25  ;;  %6864 = vmatpush1.bf16.msra.mxu1 %v10465_v25  ;;  %v4006_v16 = vrot.slane %v10453_v22, 6  ;;  %v3890_v42 = vrot.slane %v10453_v22, 1 }
 0x945   :  { %6865 = vmatprep.subr.bf16.mxu1 %v11694_v44  ;;  %v3916_v56 = vrot.slane %v10453_v22, 2  ;;  %v3942_v23 = vrot.slane %v10453_v22, 3  ;;  %v10523_v57 = vpack.c.bf16 %v4207_v38, %v4204_v30  ;;  %v11617_v25 = vand.u32 4294901760, %v10403_v27 }
 0x946   :  { %v10468_v52 = vadd.f32 %v3879_v32, %v12062_v1  ;;  %3988 = vrot.lane.b32.xlu0 %v3980_v34, %s7428_s22  ;;  %v3891_v43 = vsel %vm29_vm0, %v12064_v0, %v3890_v42  ;;  %v10532_v32 = vsub.f32 %v5931_v15, %v4204_v30  ;;  %v4210_v1 = vand.u32 4294901760, %v5933_v21 }
 0x947   :  { %v3917_v62 = vsel %vm57_vm3, %v12065_v19, %v3916_v56  ;;  %12067 = vst [vmem:[#allocation24_spill] sm:$0xff] %v10523_v57  ;;  %v3871_v58 = vpop.permute.xlu0 %3870 }
 0x948   :  { %12063 = vst [vmem:[#allocation17_spill] sm:$0xff] %v10468_v52  ;;  %v3981_v24 = vrot.slane %v10468_v52, 5  ;;  %v3892_v36 = vrot.slane %v10468_v52, 1  ;;  %v11588_v48 = vrot.slane %v10468_v52, 6  ;;  %v3918_v49 = vrot.slane %v10468_v52, 2  ;;  %6867 = vmatpush1.bf16.msra.mxu1 %v10511_v4 }
 0x949   :  { %6868 = vmatprep.subr.bf16.mxu1 %v11694_v44 }
 0x94a   :  { %4014 = vrot.lane.b32.xlu0 %v4006_v16, %s7429_s12  ;;  %v3982_v61 = vsel %vm126_vm1, %v3980_v34, %v3981_v24  ;;  %v3893_v29 = vsel %vm29_vm0, %v3890_v42, %v3892_v36  ;;  %v4008_v13 = vsel %vm154_vm2, %v4006_v16, %v11588_v48  ;;  %v10534_v34 = vsub.f32 %v5932_v46, %v4207_v38  ;;  %v12082_v48 = vld [vmem:[#allocation9_spill] sm:$0xff] }
 0x94b   :  { %3990 = vrot.lane.b32.xlu1 %v3982_v61, %s7428_s22  ;;  %v4213_v16 = vand.u32 4294901760, %v5934_v8  ;;  %v3919_v42 = vsel %vm57_vm3, %v3916_v56, %v3918_v49  ;;  %v3943_v61 = vrot.slane %v10468_v52, 3  ;;  %v3873_v15 = vpop.permute.xlu1 %3872  ;;  %v10550_v56 = vsub.f32 %v5933_v21, %v4210_v1 }
 0x94c   :  { %6870 = vmatpush1.bf16.msra.mxu1 %v10523_v57  ;;  %v11610_v57 = vand.u32 4294901760, %v10399_v45 }
 0x94d   :  { %v10541_v40 = vpack.c.bf16 %v4213_v16, %v4210_v1  ;;  %6871 = vmatprep.subr.bf16.mxu1 %v11694_v44  ;;  %12069 = vst [vmem:[#allocation27_spill] sm:$0xff] %v10550_v56  ;;  %v10552_v46 = vsub.f32 %v5934_v8, %v4213_v16  ;;  %v3944_v30 = vsel %vm85_vm4, %v3942_v23, %v3943_v61  ;;  %v5937_v8 = vld [vmem:[%s11280_s1 + $0x370] sm:$0xff]  ;;  %v11591_v16 = vand.u32 4294901760, %v10372_v31 }
 0x94e   :  { %3898 = vrot.lane.b32.xlu0 %v3891_v43, %s7428_s22  ;;  %v5936_v43 = vld [vmem:[%s11280_s1 + $0x368] sm:$0xff]  ;;  %v4222_v1 = vand.u32 4294901760, %v5937_v8 }
 0x94f   :  { %3900 = vrot.lane.b32.xlu1 %v3893_v29, %s7428_s22  ;;  %12068 = vst [vmem:[#allocation30_spill] sm:$0xff] %v10541_v40  ;;  %12070 = vst [vmem:[#allocation31_spill] sm:$0xff] %v10552_v46  ;;  %v4216_v29 = vand.u32 4294901760, %v5935_v2  ;;  %v4219_v53 = vand.u32 4294901760, %v5936_v43 }
 0x950   :  { %6873 = vmatpush1.bf16.msra.mxu1 %v10541_v40 }
 0x951   :  { %v10556_v38 = vsub.f32 %v5935_v2, %v4216_v29  ;;  %v10564_v21 = vpack.c.bf16 %v4219_v53, %v4216_v29  ;;  %6874 = vmatprep.subr.bf16.mxu1 %v11694_v44 }
 0x952   :  { %3924 = vrot.lane.b32.xlu0 %v3917_v62, %s7429_s12  ;;  %v10558_v62 = vsub.f32 %v5936_v43, %v4219_v53  ;;  %v10580_v43 = vsub.f32 %v5937_v8, %v4222_v1  ;;  %v11593_v53 = vand.u32 4294901760, %v10374_v10  ;;  %v12078_v8 = vld [vmem:[#allocation11_spill] sm:$0xff] }
 0x953   :  { %4016 = vrot.lane.b32.xlu1 %v4008_v13, %s7429_s12  ;;  %12071 = vst [vmem:[#allocation32_spill] sm:$0xff] %v10556_v38  ;;  %v3880_v13 = vmul.f32 %v10331_v47, %v3871_v58  ;;  %12073 = vst [vmem:[#allocation4_spill] sm:$0xff] %v10564_v21 }
 0x954   :  { %12072 = vst [vmem:[#allocation33_spill] sm:$0xff] %v10558_v62  ;;  %12075 = vst [vmem:[#allocation2_spill] sm:$0xff] %v10580_v43  ;;  %6876 = vmatpush1.bf16.msra.mxu1 %v10564_v21 }
 0x955   :  { %6877 = vmatprep.subr.bf16.mxu1 %v11694_v44 }
 0x956   :  { %3948 = vrot.lane.b32.xlu0 %v3942_v23, %s7431_s11  ;;  %v5938_v23 = vld [vmem:[%s11280_s1 + $0x378] sm:$0xff] }
 0x957   :  { %3926 = vrot.lane.b32.xlu1 %v3919_v42, %s7429_s12  ;;  %v3881_v42 = vmul.f32 %v10334_v54, %v3873_v15  ;;  %v4225_v47 = vand.u32 4294901760, %v5938_v23  ;;  %v11587_v54 = vand.u32 4294901760, %v10370_v7 }
 0x959   :  { %v10582_v58 = vsub.f32 %v5938_v23, %v4225_v47  ;;  %v4300_v15 = vsub.f32 %v10370_v7, %v11587_v54  ;;  %v10591_v29 = vpack.c.bf16 %v4225_v47, %v4222_v1  ;;  %v10599_v23 = vadd.f32 %v3880_v13, %v12078_v8 }
 0x95a   :  { %3952 = vrot.lane.b32.xlu0 %v3943_v61, %s7431_s11  ;;  %v12074_v61 = vld [vmem:[#allocation6_spill] sm:$0xff]  ;;  %v12083_v1 = vrot.slane %v10468_v52, 6 }
 0x95b   :  { %3950 = vrot.lane.b32.xlu1 %v3944_v30, %s7431_s11  ;;  %v3983_v2 = vsel %vm126_vm1, %v3981_v24, %v12074_v61  ;;  %12076 = vst [vmem:[#allocation15_spill] sm:$0xff] %v10582_v58  ;;  %12077 = vst [vmem:[#allocation19_spill] sm:$0xff] %v10591_v29  ;;  %v4307_v24 = vsub.f32 %v10372_v31, %v11591_v16  ;;  %v11592_v30 = vand.u32 4294901760, %v10384_v18  ;;  %6879 = vmatpush1.bf16.msra.mxu1 %v10591_v29 }
 0x95c   :  { %12079 = vst [vmem:[#allocation22_spill] sm:$0xff] %v10599_v23  ;;  %v4009_v47 = vsel %vm154_vm2, %v12083_v1, %v12082_v48  ;;  %v4314_v16 = vsub.f32 %v10374_v10, %v11593_v53  ;;  %6880 = vmatprep.subr.bf16.mxu1 %v11694_v44  ;;  %v11598_v1 = vand.u32 4294901760, %v10392_v51  ;;  %v11605_v29 = vand.u32 4294901760, %v10397_v9 }
 0x95d   :  { %v4308_v21 = vand.u32 4294901760, %v4307_v24  ;;  %v4321_v13 = vsub.f32 %v10384_v18, %v11592_v30  ;;  %v3984_v30 = vrot.slane %v10599_v23, 5 }
 0x95e   :  { %3992 = vrot.lane.b32.xlu0 %v3983_v2, %s7428_s22  ;;  %v12080_v2 = vld [vmem:[#allocation21_spill] sm:$0xff] }
 0x95f   :  { %3902 = vrot.lane.b32.xlu1 %v3892_v36, %s7428_s22  ;;  %v10602_v54 = vadd.f32 %v3881_v42, %v12080_v2  ;;  %v4301_v36 = vand.u32 4294901760, %v4300_v15  ;;  %v4315_v15 = vand.u32 4294901760, %v4314_v16  ;;  %v4322_v8 = vand.u32 4294901760, %v4321_v13 }
 0x960   :  { %v11599_v2 = vand.u32 4294901760, %v10386_v12  ;;  %v11602_v13 = vand.u32 4294901760, %v10395_v6 }
 0x961   :  { %12081 = vst [vmem:[#allocation13_spill] sm:$0xff] %v10602_v54  ;;  %v10618_v42 = vpack.c.bf16 %v4308_v21, %v4301_v36  ;;  %v3896_v24 = vrot.slane %v10602_v54, 1  ;;  %v10626_v53 = vpack.c.bf16 %v4322_v8, %v4315_v15  ;;  %v4335_v21 = vsub.f32 %v10392_v51, %v11598_v1 }
 0x962   :  { %4018 = vrot.lane.b32.xlu0 %v4009_v47, %s7429_s12  ;;  %v3985_v47 = vrot.slane %v10602_v54, 5  ;;  %v4010_v8 = vrot.slane %v10599_v23, 6  ;;  %v4342_v1 = vsub.f32 %v10395_v6, %v11602_v13  ;;  %v4011_v13 = vrot.slane %v10602_v54, 6 }
 0x963   :  { %3928 = vrot.lane.b32.xlu1 %v3918_v49, %s7429_s12  ;;  %v4328_v49 = vsub.f32 %v10386_v12, %v11599_v2  ;;  %v4336_v36 = vand.u32 4294901760, %v4335_v21  ;;  %v3894_v21 = vrot.slane %v10599_v23, 1 }
 0x964   :  { %v3986_v15 = vsel %vm126_vm1, %v3984_v30, %v3985_v47  ;;  %v4343_v2 = vand.u32 4294901760, %v4342_v1 }
 0x965   :  { %v4329_v16 = vand.u32 4294901760, %v4328_v49  ;;  %v4349_v49 = vsub.f32 %v10397_v9, %v11605_v29  ;;  %v4356_v29 = vsub.f32 %v10399_v45, %v11610_v57  ;;  %v3895_v57 = vsel %vm29_vm0, %v12064_v0, %v3894_v21 }
 0x966   :  { %3908 = vrot.lane.b32.xlu0 %v3896_v24, %s7428_s22 }
 0x967   :  { %3994 = vrot.lane.b32.xlu1 %v3984_v30, %s7428_s22  ;;  %v10641_v40 = vpack.c.bf16 %v4336_v36, %v4329_v16  ;;  %v4350_v30 = vand.u32 4294901760, %v4349_v49  ;;  %v3897_v16 = vsel %vm29_vm0, %v3894_v21, %v3896_v24  ;;  %v3945_v36 = vrot.slane %v10599_v23, 3 }
 0x968   :  { %v4357_v49 = vand.u32 4294901760, %v4356_v29  ;;  %v4370_v29 = vsub.f32 %v10403_v27, %v11617_v25  ;;  %v3946_v21 = vrot.slane %v10602_v54, 3  ;;  %v11625_v25 = vand.u32 4294901760, %v10448_v50 }
 0x969   :  { %v10657_v4 = vpack.c.bf16 %v4350_v30, %v4343_v2  ;;  %v3920_v2 = vrot.slane %v10599_v23, 2  ;;  %v3922_v30 = vrot.slane %v10602_v54, 2 }
 0x96a   :  { %3996 = vrot.lane.b32.xlu0 %v3986_v15, %s7428_s22  ;;  %v11611_v15 = vand.u32 4294901760, %v10401_v37 }
 0x96b   :  { %4020 = vrot.lane.b32.xlu1 %v4010_v8, %s7429_s12  ;;  %v3923_v0 = vsel %vm57_vm3, %v3920_v2, %v3922_v30 }
 0x96c   :  { %v4363_v1 = vsub.f32 %v10401_v37, %v11611_v15 }
 0x96e   :  { %3906 = vrot.lane.b32.xlu0 %v3897_v16, %s7428_s22  ;;  %v4364_v24 = vand.u32 4294901760, %v4363_v1  ;;  %v4012_v16 = vsel %vm154_vm2, %v4010_v8, %v4011_v13  ;;  %v4377_v1 = vsub.f32 %v10408_v60, %v11616_v39  ;;  %v4371_v8 = vand.u32 4294901760, %v4370_v29 }
 0x96f   :  { %3954 = vrot.lane.b32.xlu1 %v3945_v36, %s7431_s11 }
 0x970   :  { %v10674_v15 = vpack.c.bf16 %v4364_v24, %v4357_v49  ;;  %v4378_v11 = vand.u32 4294901760, %v4377_v1  ;;  %v3921_v49 = vsel %vm57_vm3, %v12065_v19, %v3920_v2  ;;  %v3947_v19 = vsel %vm85_vm4, %v3945_v36, %v3946_v21 }
 0x971   :  { %v11619_v36 = vand.u32 4294901760, %v10471_v59 }
 0x972   :  { %4022 = vrot.lane.b32.xlu0 %v4012_v16, %s7429_s12  ;;  %v11629_v16 = vand.u32 4294901760, %v10435_v28  ;;  %v10690_v24 = vpack.c.bf16 %v4378_v11, %v4371_v8  ;;  %v3987_v11 = vsel %vm126_vm1, %v3985_v47, %v12074_v61  ;;  %v4398_v8 = vsub.f32 %v10448_v50, %v11625_v25 }
 0x973   :  { %3904 = vrot.lane.b32.xlu1 %v3895_v57, %s7428_s22  ;;  %v4384_v57 = vsub.f32 %v10433_v17, %v11633_v3  ;;  %v4412_v47 = vsub.f32 %v10471_v59, %v11619_v36  ;;  %v11623_v36 = vand.u32 4294901760, %v10534_v34 }
 0x974   :  { %v4391_v29 = vsub.f32 %v10435_v28, %v11629_v16 }
 0x975   :  { %v4385_v1 = vand.u32 4294901760, %v4384_v57  ;;  %v4399_v57 = vand.u32 4294901760, %v4398_v8  ;;  %v11620_v8 = vand.u32 4294901760, %v10513_v33 }
 0x976   :  { %3932 = vrot.lane.b32.xlu0 %v3923_v0, %s7429_s12  ;;  %v4392_v39 = vand.u32 4294901760, %v4391_v29  ;;  %v11624_v0 = vand.u32 4294901760, %v10450_v5 }
 0x977   :  { %3930 = vrot.lane.b32.xlu1 %v3921_v49, %s7429_s12 }
 0x978   :  { %v10705_v2 = vpack.c.bf16 %v4392_v39, %v4385_v1  ;;  %v4405_v49 = vsub.f32 %v10450_v5, %v11624_v0  ;;  %v4013_v39 = vsel %vm154_vm2, %v4011_v13, %v12082_v48  ;;  %v11630_v0 = vand.u32 4294901760, %v10558_v62 }
 0x97a   :  { %3956 = vrot.lane.b32.xlu0 %v3947_v19, %s7431_s11  ;;  %v4406_v29 = vand.u32 4294901760, %v4405_v49  ;;  %v11618_v19 = vand.u32 4294901760, %v10473_v55  ;;  %v4413_v49 = vand.u32 4294901760, %v4412_v47 }
 0x97b   :  { %3998 = vrot.lane.b32.xlu1 %v3987_v11, %s7428_s22  ;;  %v11622_v11 = vand.u32 4294901760, %v10507_v20 }
 0x97c   :  { %v10719_v61 = vpack.c.bf16 %v4406_v29, %v4399_v57  ;;  %v4419_v1 = vsub.f32 %v10473_v55, %v11618_v19 }
 0x97d   :  { %v4426_v13 = vsub.f32 %v10507_v20, %v11622_v11 }
 0x97e   :  { %3934 = vrot.lane.b32.xlu0 %v3922_v30, %s7429_s12  ;;  %v4420_v48 = vand.u32 4294901760, %v4419_v1  ;;  %v4433_v30 = vsub.f32 %v10513_v33, %v11620_v8  ;;  %v4447_v8 = vsub.f32 %v10534_v34, %v11623_v36  ;;  %v11627_v36 = vand.u32 4294901760, %v10556_v38 }
 0x97f   :  { %4024 = vrot.lane.b32.xlu1 %v4013_v39, %s7429_s12  ;;  %v4427_v29 = vand.u32 4294901760, %v4426_v13  ;;  %v11621_v39 = vand.u32 4294901760, %v10532_v32 }
 0x980   :  { %v10736_v57 = vpack.c.bf16 %v4420_v48, %v4413_v49  ;;  %v4434_v19 = vand.u32 4294901760, %v4433_v30  ;;  %v11626_v49 = vand.u32 4294901760, %v10550_v56  ;;  %v11628_v48 = vand.u32 4294901760, %v10552_v46 }
 0x981   :  { %v4440_v1 = vsub.f32 %v10532_v32, %v11621_v39  ;;  %v4448_v13 = vand.u32 4294901760, %v4447_v8  ;;  %v4468_v8 = vsub.f32 %v10556_v38, %v11627_v36 }
 0x982   :  { %v10741_v47 = vpack.c.bf16 %v4434_v19, %v4427_v29  ;;  %v4454_v30 = vsub.f32 %v10550_v56, %v11626_v49  ;;  %v4461_v19 = vsub.f32 %v10552_v46, %v11628_v48 }
 0x983   :  { %3958 = vrot.lane.b32.xlu1 %v3946_v21, %s7431_s11  ;;  %v4441_v21 = vand.u32 4294901760, %v4440_v1  ;;  %v4475_v1 = vsub.f32 %v10558_v62, %v11630_v0  ;;  %v4469_v49 = vand.u32 4294901760, %v4468_v8 }
 0x984   :  { %v4455_v39 = vand.u32 4294901760, %v4454_v30  ;;  %v4462_v11 = vand.u32 4294901760, %v4461_v19 }
 0x985   :  { %v10757_v29 = vpack.c.bf16 %v4448_v13, %v4441_v21  ;;  %v11631_v21 = vand.u32 4294901760, %v10580_v43  ;;  %v11632_v13 = vand.u32 4294901760, %v10582_v58  ;;  %v4476_v30 = vand.u32 4294901760, %v4475_v1 }
 0x986   :  { %v10761_v25 = vpack.c.bf16 %v4462_v11, %v4455_v39 }
 0x987   :  { %v4482_v19 = vsub.f32 %v10580_v43, %v11631_v21  ;;  %v4489_v11 = vsub.f32 %v10582_v58, %v11632_v13  ;;  %v10777_v39 = vpack.c.bf16 %v4476_v30, %v4469_v49 }
 0x989   :  { %v4483_v36 = vand.u32 4294901760, %v4482_v19  ;;  %v4490_v48 = vand.u32 4294901760, %v4489_v11 }
 0x98b   :  { %v10779_v16 = vpack.c.bf16 %v4490_v48, %v4483_v36  ;;  %v3967_v36 = vrot.slane %v10468_v52, 4  ;;  %v3966_v48 = vrot.slane %v10453_v22, 4 }
 0x98d   :  { %v3968_v3 = vsel %vm110_vm5, %v3966_v48, %v3967_v36 }
 0x9b8   :  { %v3989_v13 = vpop.permute.xlu0 %3988 }
 0x9b9   :  { %v4050_v11 = vsel %vm182_vm6, %v3966_v48, %v3989_v13 }
 0x9bc   :  { %v4015_v49 = vpop.permute.xlu0 %4014 }
 0x9bd   :  { %v3991_v21 = vpop.permute.xlu1 %3990  ;;  %v4056_v8 = vsel %vm189_vm7, %v4050_v11, %v4015_v49 }
 0x9be   :  { %v4051_v14 = vsel %vm182_vm6, %v3968_v3, %v3991_v21  ;;  %v4077_v41 = vrot.slane %v4056_v8, 5 }
 0x9c0   :  { %v3899_v0 = vpop.permute.xlu0 %3898 }
 0x9c1   :  { %v3901_v1 = vpop.permute.xlu1 %3900  ;;  %v4032_v13 = vsel %vm182_vm6, 0.0, %v3899_v0 }
 0x9c4   :  { %v3925_v63 = vpop.permute.xlu0 %3924 }
 0x9c5   :  { %v4017_v26 = vpop.permute.xlu1 %4016  ;;  %v4038_v48 = vsel %vm189_vm7, %v4032_v13, %v3925_v63 }
 0x9c6   :  { %v4057_v30 = vsel %vm189_vm7, %v4051_v14, %v4017_v26  ;;  %v4033_v26 = vsel %vm182_vm6, %v10453_v22, %v3901_v1 }
 0x9c7   :  { %v4078_v56 = vrot.slane %v4057_v30, 5 }
 0x9c8   :  { %v3949_v46 = vpop.permute.xlu0 %3948 }
 0x9c9   :  { %v4079_v19 = vsel %vm126_vm1, %v4077_v41, %v4078_v56  ;;  %v3927_v38 = vpop.permute.xlu1 %3926  ;;  %v4044_v14 = vsel %vm196_vm8, %v4038_v48, %v3949_v46 }
 0x9ca   :  { %v4135_v49 = vsel %vm196_vm8, %v4079_v19, 0  ;;  %v4039_v41 = vsel %vm189_vm7, %v4033_v26, %v3927_v38  ;;  %v4074_v30 = vrot.slane %v4044_v14, 5 }
 0x9cb   :  { %v10820_v11 = vand.u32 4294901760, %v4135_v49 }
 0x9cc   :  { %v3953_v3 = vpop.permute.xlu0 %3952 }
 0x9cd   :  { %v10826_v21 = vsub.f32 %v4135_v49, %v10820_v11  ;;  %v3951_v8 = vpop.permute.xlu1 %3950  ;;  %v12084_v49 = vld [vmem:[#allocation8_spill] sm:$0xff] }
 0x9ce   :  { %v4045_v0 = vsel %vm196_vm8, %v4039_v41, %v3951_v8  ;;  %v3969_v38 = vsel %vm110_vm5, %v3967_v36, %v12084_v49 }
 0x9cf   :  { %v4075_v19 = vrot.slane %v4045_v0, 5  ;;  %v11652_v63 = vand.u32 4294901760, %v10826_v21 }
 0x9d0   :  { %v3993_v13 = vpop.permute.xlu0 %3992 }
 0x9d1   :  { %v4076_v35 = vsel %vm126_vm1, %v4074_v30, %v4075_v19  ;;  %v3903_v43 = vpop.permute.xlu1 %3902  ;;  %v4238_v46 = vsub.f32 %v10826_v21, %v11652_v63  ;;  %v4052_v14 = vsel %vm182_vm6, %v3969_v38, %v3993_v13 }
 0x9d2   :  { %v10835_v1 = vand.u32 4294901760, %v4076_v35  ;;  %v4034_v8 = vsel %vm182_vm6, %v10468_v52, %v3903_v43 }
 0x9d3   :  { %v4239_v48 = vand.u32 4294901760, %v4238_v46 }
 0x9d4   :  { %v10840_v26 = vsub.f32 %v4076_v35, %v10835_v1  ;;  %v4019_v41 = vpop.permute.xlu0 %4018 }
 0x9d5   :  { %v4058_v0 = vsel %vm189_vm7, %v4052_v14, %v4019_v41  ;;  %v3929_v30 = vpop.permute.xlu1 %3928  ;;  %4240 = vmatprep.mubr.f32.mxu1 %v4239_v48 }
 0x9d6   :  { %12085 = vst [vmem:[#allocation14_spill] sm:$0xff] %v10840_v26  ;;  %v11656_v63 = vand.u32 4294901760, %v10840_v26  ;;  %v4082_v22 = vrot.slane %v4058_v0, 5  ;;  %v4040_v58 = vsel %vm189_vm7, %v4034_v8, %v3929_v30 }
 0x9d7   :  { %v4046_v36 = vsel %vm196_vm8, %v4040_v58, %v3953_v3 }
 0x9d8   :  { %v4244_v35 = vsub.f32 %v10840_v26, %v11656_v63  ;;  %v4083_v13 = vsel %vm126_vm1, %v4078_v56, %v4082_v22  ;;  %v4080_v46 = vrot.slane %v4046_v36, 5  ;;  %v10853_v38 = vpop.permute.xlu0 %3908 }
 0x9d9   :  { %v4137_v43 = vsel %vm196_vm8, %v4083_v13, 0  ;;  %v3995_v14 = vpop.permute.xlu1 %3994 }
 0x9da   :  { %v10856_v48 = vand.u32 4294901760, %v4137_v43  ;;  %v4081_v41 = vsel %vm126_vm1, %v4075_v19, %v4080_v46  ;;  %v4245_v0 = vand.u32 4294901760, %v4244_v35  ;;  %v3971_v19 = vrot.slane %v10602_v54, 4 }
 0x9db   :  { %v10859_v8 = vand.u32 4294901760, %v4081_v41  ;;  %v3970_v35 = vrot.slane %v10599_v23, 4 }
 0x9dc   :  { %v10862_v58 = vsub.f32 %v4137_v43, %v10856_v48  ;;  %4246 = vmatmul.mubr.f32.vlgmr.msra.gmra.mrb[8].mxu1 %v4245_v0  ;;  %v3997_v3 = vpop.permute.xlu0 %3996 }
 0x9dd   :  { %6882 = vmatpush1.bf16.msra.mxu1 %v10618_v42  ;;  %v4021_v22 = vpop.permute.xlu1 %4020  ;;  %v10866_v56 = vsub.f32 %v4081_v41, %v10859_v8  ;;  %v4053_v41 = vsel %vm182_vm6, %v3970_v35, %v3995_v14  ;;  %v3972_v63 = vsel %vm110_vm5, %v3970_v35, %v3971_v19 }
 0x9de   :  { %12086 = vst [vmem:[#allocation3_spill] sm:$0xff] %v10862_v58  ;;  %6883 = vmatprep.subr.bf16.mxu1 %v11694_v44  ;;  %v11662_v30 = vand.u32 4294901760, %v10862_v58  ;;  %v4059_v52 = vsel %vm189_vm7, %v4053_v41, %v4021_v22  ;;  %v4054_v62 = vsel %vm182_vm6, %v3972_v63, %v3997_v3 }
 0x9df   :  { %12087 = vst [vmem:[#allocation5_spill] sm:$0xff] %v10866_v56  ;;  %v11665_v36 = vand.u32 4294901760, %v10866_v56 }
 0x9e0   :  { %v3907_v13 = vpop.permute.xlu0 %3906  ;;  %v4253_v46 = vsub.f32 %v10862_v58, %v11662_v30 }
 0x9e1   :  { %6885 = vmatpush1.bf16.msra.mxu1 %v10626_v53  ;;  %v3955_v42 = vpop.permute.xlu1 %3954  ;;  %v4259_v43 = vsub.f32 %v10866_v56, %v11665_v36  ;;  %v4087_v36 = vrot.slane %v4059_v52, 5  ;;  %v4036_v52 = vsel %vm182_vm6, %v10599_v23, %v3907_v13  ;;  %v12130_v23 = vand.u32 4294901760, %v10374_v10 }
 0x9e2   :  { %6886 = vmatprep.subr.bf16.mxu1 %v11694_v44  ;;  %v4254_v0 = vand.u32 4294901760, %v4253_v46 }
 0x9e3   :  { %v4260_v26 = vand.u32 4294901760, %v4259_v43 }
 0x9e4   :  { %4255 = vmatprep.mubr.f32.mxu1 %v4254_v0  ;;  %v4023_v30 = vpop.permute.xlu0 %4022 }
 0x9e5   :  { %6888 = vmatpush1.bf16.msra.mxu1 %v10641_v40  ;;  %v4060_v53 = vsel %vm189_vm7, %v4054_v62, %v4023_v30  ;;  %v3905_v58 = vpop.permute.xlu1 %3904 }
 0x9e6   :  { %v4088_v56 = vrot.slane %v4060_v53, 5  ;;  %4261 = vmatmul.mubr.f32.gmra.mrb[10].mxu1 %v4260_v26  ;;  %6889 = vmatprep.subr.bf16.mxu1 %v11694_v44  ;;  %v4035_v46 = vsel %vm182_vm6, 0.0, %v3905_v58 }
 0x9e8   :  { %v4089_v14 = vsel %vm126_vm1, %v4087_v36, %v4088_v56  ;;  %v3933_v35 = vpop.permute.xlu0 %3932 }
 0x9e9   :  { %v4139_v22 = vsel %vm196_vm8, %v4089_v14, 0  ;;  %6891 = vmatpush1.bf16.msra.mxu1 %v10657_v4  ;;  %v3931_v63 = vpop.permute.xlu1 %3930  ;;  %v4042_v30 = vsel %vm189_vm7, %v4036_v52, %v3933_v35 }
 0x9ea   :  { %v10892_v3 = vand.u32 4294901760, %v4139_v22  ;;  %v4041_v40 = vsel %vm189_vm7, %v4035_v46, %v3931_v63  ;;  %6892 = vmatprep.subr.bf16.mxu1 %v11694_v44 }
 0x9eb   :  { %v4047_v62 = vsel %vm196_vm8, %v4041_v40, %v3955_v42  ;;  %v3973_v42 = vsel %vm110_vm5, %v3971_v19, %v12084_v49  ;;  %v4037_v19 = vsel %vm182_vm6, %v10602_v54, %v10853_v38 }
 0x9ec   :  { %v10900_v26 = vsub.f32 %v4139_v22, %v10892_v3  ;;  %v3957_v58 = vpop.permute.xlu0 %3956  ;;  %v4084_v43 = vrot.slane %v4047_v62, 5 }
 0x9ed   :  { %6894 = vmatpush1.bf16.msra.mxu1 %v10674_v15  ;;  %v4048_v4 = vsel %vm196_vm8, %v4042_v30, %v3957_v58  ;;  %v3999_v36 = vpop.permute.xlu1 %3998 }
 0x9ee   :  { %v4085_v41 = vrot.slane %v4048_v4, 5  ;;  %6895 = vmatprep.subr.bf16.mxu1 %v11694_v44  ;;  %v11671_v0 = vand.u32 4294901760, %v10900_v26  ;;  %v4055_v15 = vsel %vm182_vm6, %v3973_v42, %v3999_v36 }
 0x9f0   :  { %v4086_v13 = vsel %vm126_vm1, %v4084_v43, %v4085_v41  ;;  %v4268_v53 = vsub.f32 %v10900_v26, %v11671_v0  ;;  %v3935_v22 = vpop.permute.xlu0 %3934 }
 0x9f1   :  { %v10913_v14 = vand.u32 4294901760, %v4086_v13  ;;  %6897 = vmatpush1.bf16.msra.mxu1 %v10690_v24  ;;  %v4025_v35 = vpop.permute.xlu1 %4024  ;;  %v4043_v52 = vsel %vm189_vm7, %v4037_v19, %v3935_v22  ;;  %v12096_v19 = vpack.c.bf16 %v10473_v55, %v10471_v59 }
 0x9f2   :  { %v4061_v46 = vsel %vm189_vm7, %v4055_v15, %v4025_v35  ;;  %6898 = vmatprep.subr.bf16.mxu1 %v11694_v44  ;;  %v4269_v63 = vand.u32 4294901760, %v4268_v53 }
 0x9f3   :  { %v10920_v40 = vsub.f32 %v4086_v13, %v10913_v14  ;;  %v4092_v49 = vrot.slane %v4061_v46, 5 }
 0x9f4   :  { %4270 = vmatprep.mubr.f32.mxu1 %v4269_v63  ;;  %v12094_v63 = vpack.c.bf16 %v10435_v28, %v10433_v17 }
 0x9f5   :  { %v4093_v24 = vsel %vm126_vm1, %v4088_v56, %v4092_v49  ;;  %6900 = vmatpush1.bf16.msra.mxu1 %v10705_v2  ;;  %v3959_v62 = vpop.permute.xlu1 %3958  ;;  %v11670_v30 = vand.u32 4294901760, %v10920_v40  ;;  %v12095_v49 = vpack.c.bf16 %v10450_v5, %v10448_v50 }
 0x9f6   :  { %v4141_v58 = vsel %vm196_vm8, %v4093_v24, 0  ;;  %v4049_v4 = vsel %vm196_vm8, %v4043_v52, %v3959_v62  ;;  %6901 = vmatprep.subr.bf16.mxu1 %v11694_v44  ;;  %v12097_v52 = vpack.c.bf16 %v10513_v33, %v10507_v20  ;;  %v12098_v24 = vpack.c.bf16 %v10534_v34, %v10532_v32  ;;  %v12099_v62 = vld [vmem:[#allocation31_spill] sm:$0xff] }
 0x9f7   :  { %v10932_v36 = vand.u32 4294901760, %v4141_v58  ;;  %v4090_v43 = vrot.slane %v4049_v4, 5  ;;  %v4274_v38 = vsub.f32 %v10920_v40, %v11670_v30 }
 0x9f9   :  { %v10938_v56 = vsub.f32 %v4141_v58, %v10932_v36  ;;  %v4091_v2 = vsel %vm126_vm1, %v4085_v41, %v4090_v43  ;;  %6903 = vmatpush1.bf16.msra.mxu1 %v10719_v61  ;;  %v4275_v13 = vand.u32 4294901760, %v4274_v38  ;;  %v12100_v58 = vld [vmem:[#allocation27_spill] sm:$0xff]  ;;  %v12102_v43 = vld [vmem:[#allocation33_spill] sm:$0xff]  ;;  %v12103_v38 = vld [vmem:[#allocation32_spill] sm:$0xff] }
 0x9fa   :  { %v10942_v42 = vand.u32 4294901760, %v4091_v2  ;;  %6904 = vmatprep.subr.bf16.mxu1 %v11694_v44  ;;  %v12101_v4 = vpack.c.bf16 %v12099_v62, %v12100_v58 }
 0x9fb   :  { %4276 = vmatmul.mubr.f32.gmra.mrb[12].mxu1 %v4275_v13  ;;  %v11669_v53 = vand.u32 4294901760, %v10938_v56  ;;  %v12105_v13 = vld [vmem:[#allocation15_spill] sm:$0xff] }
 0x9fc   :  { %v10947_v15 = vsub.f32 %v4091_v2, %v10942_v42  ;;  %v12104_v2 = vpack.c.bf16 %v12102_v43, %v12103_v38 }
 0x9fd   :  { %6906 = vmatpush1.bf16.msra.mxu1 %v10736_v57  ;;  %v4283_v35 = vsub.f32 %v10938_v56, %v11669_v53  ;;  %v12088_v57 = vpack.c.bf16 %v10372_v31, %v10370_v7  ;;  %v12127_v53 = vand.u32 4294901760, %v10372_v31  ;;  %v12133_v31 = vand.u32 4294901760, %v10900_v26 }
 0x9fe   :  { %6907 = vmatprep.subr.bf16.mxu1 %v11694_v44  ;;  %v11668_v61 = vand.u32 4294901760, %v10947_v15 }
 0x9ff   :  { %v4284_v41 = vand.u32 4294901760, %v4283_v35  ;;  %v12106_v35 = vld [vmem:[#allocation2_spill] sm:$0xff] }
 0xa00   :  { %v4289_v22 = vsub.f32 %v10947_v15, %v11668_v61  ;;  %v12126_v61 = vand.u32 4294901760, %v10370_v7 }
 0xa01   :  { %6909 = vmatpush1.bf16.msra.mxu1 %v10741_v47  ;;  %4285 = vmatprep.mubr.f32.mxu1 %v4284_v41  ;;  %v12091_v47 = vpack.c.bf16 %v10397_v9, %v10395_v6  ;;  %v12107_v41 = vpack.c.bf16 %v12105_v13, %v12106_v35 }
 0xa02   :  { %6910 = vmatprep.subr.bf16.mxu1 %v11694_v44  ;;  %v4290_v46 = vand.u32 4294901760, %v4289_v22  ;;  %v12108_v22 = vld [vmem:[#allocation14_spill] sm:$0xff]  ;;  %v7007_v30 = vpack.c.bf16 %v12127_v53, %v12126_v61  ;;  %v12135_v53 = vand.u32 4294901760, %v10392_v51 }
 0xa03   :  { %v12128_v0 = vand.u32 4294901760, %v12108_v22 }
 0xa04   :  { %4291 = vmatmul.mubr.f32.gmra.mrb[14].mxu1 %v4290_v46  ;;  %v12109_v46 = vld [vmem:[#allocation3_spill] sm:$0xff] }
 0xa05   :  { %6912 = vmatpush1.bf16.msra.mxu1 %v10757_v29  ;;  %4501 = vmatprep.mubr.f32.mxu1 %v10820_v11  ;;  %v12092_v29 = vpack.c.bf16 %v10401_v37, %v10399_v45  ;;  %v12129_v54 = vand.u32 4294901760, %v12109_v46 }
 0xa06   :  { %6913 = vmatprep.subr.bf16.mxu1 %v11694_v44 }
 0xa09   :  { %6915 = vmatpush1.bf16.msra.mxu1 %v10761_v25  ;;  %v12089_v25 = vpack.c.bf16 %v10384_v18, %v10374_v10  ;;  %v12136_v10 = vand.u32 4294901760, %v10920_v40 }
 0xa0a   :  { %6916 = vmatprep.subr.bf16.mxu1 %v11694_v44 }
 0xa0d   :  { %6918 = vmatpush1.bf16.msra.mxu1 %v10777_v39  ;;  %v12093_v39 = vpack.c.bf16 %v10408_v60, %v10403_v27 }
 0xa0e   :  { %6919 = vmatprep.subr.bf16.mxu1 %v11694_v44 }
 0xa11   :  { %6921 = vmatpush1.bf16.msra.mxu1 %v10779_v16  ;;  %v12090_v16 = vpack.c.bf16 %v10392_v51, %v10386_v12  ;;  %v12141_v51 = vand.u32 4294901760, %v10399_v45  ;;  %v12147_v45 = vand.u32 4294901760, %v10448_v50  ;;  %v12153_v50 = vand.u32 4294901760, %v10532_v32 }
 0xa12   :  { %6922 = vmatprep.subr.bf16.mxu1 %v11694_v44  ;;  %v12159_v32 = vand.u32 4294901760, %v12106_v35 }
 0xa14   :  { %4503 = vmatmul.mubr.f32.vlgmr.msra.gmra.mrb[8].mxu1 %v10835_v1 }
 0xa15   :  { %4508 = vmatprep.mubr.f32.mxu1 %v10856_v48  ;;  %6924 = vmatpush1.bf16.msra.mxu1 %v12088_v57  ;;  %v12110_v57 = vld [vmem:[#allocation23_spill] sm:$0xff] }
 0xa16   :  { %6925 = vmatprep.subr.bf16.mxu1 %v11694_v44 }
 0xa18   :  { %4510 = vmatmul.mubr.f32.gmra.mrb[10].mxu1 %v10859_v8 }
 0xa19   :  { %4515 = vmatprep.mubr.f32.mxu1 %v10892_v3  ;;  %6927 = vmatpush1.bf16.msra.mxu1 %v12089_v25  ;;  %v12111_v25 = vld [vmem:[#allocation5_spill] sm:$0xff] }
 0xa1a   :  { %6928 = vmatprep.subr.bf16.mxu1 %v11694_v44  ;;  %v12132_v7 = vand.u32 4294901760, %v12111_v25 }
 0xa1c   :  { %4517 = vmatmul.mubr.f32.gmra.mrb[12].mxu1 %v10913_v14 }
 0xa1d   :  { %4522 = vmatprep.mubr.f32.mxu1 %v10932_v36  ;;  %6930 = vmatpush1.bf16.msra.mxu1 %v12090_v16  ;;  %v12112_v16 = vld [vmem:[#allocation18_spill] sm:$0xff] }
 0xa1e   :  { %6931 = vmatprep.subr.bf16.mxu1 %v11694_v44 }
 0xa20   :  { %4524 = vmatmul.mubr.f32.gmra.mrb[14].mxu1 %v10942_v42 }
 0xa21   :  { %6933 = vmatpush1.bf16.msra.mxu1 %v12091_v47  ;;  %4651 = vmatprep.mubr.f32.mxu1 %v10826_v21  ;;  %v12113_v47 = vld [vmem:[#allocation10_spill] sm:$0xff] }
 0xa22   :  { %6934 = vmatprep.subr.bf16.mxu1 %v11694_v44 }
 0xa25   :  { %6936 = vmatpush1.bf16.msra.mxu1 %v12092_v29  ;;  %v12114_v29 = vld [vmem:[#allocation12_spill] sm:$0xff] }
 0xa26   :  { %6937 = vmatprep.subr.bf16.mxu1 %v11694_v44 }
 0xa29   :  { %6939 = vmatpush1.bf16.msra.mxu1 %v12093_v39  ;;  %v12115_v39 = vand.u32 4294901760, %v10826_v21  ;;  %v12120_v21 = vld [vmem:[#allocation29_spill] sm:$0xff] }
 0xa2a   :  { %6940 = vmatprep.subr.bf16.mxu1 %v11694_v44 }
 0xa2d   :  { %6942 = vmatpush1.bf16.msra.mxu1 %v12094_v63  ;;  %v12116_v63 = vld [vmem:[#allocation16_spill] sm:$0xff] }
 0xa2e   :  { %6943 = vmatprep.subr.bf16.mxu1 %v11694_v44 }
 0xa31   :  { %6945 = vmatpush1.bf16.msra.mxu1 %v12095_v49  ;;  %v12117_v49 = vld [vmem:[#allocation26_spill] sm:$0xff] }
 0xa32   :  { %6946 = vmatprep.subr.bf16.mxu1 %v11694_v44 }
 0xa35   :  { %6948 = vmatpush1.bf16.msra.mxu1 %v12096_v19  ;;  %v12118_v19 = vld [vmem:[#allocation7_spill] sm:$0xff] }
 0xa36   :  { %6949 = vmatprep.subr.bf16.mxu1 %v11694_v44 }
 0xa39   :  { %6951 = vmatpush1.bf16.msra.mxu1 %v12097_v52  ;;  %v12119_v52 = vld [vmem:[#allocation28_spill] sm:$0xff] }
 0xa3a   :  { %6952 = vmatprep.subr.bf16.mxu1 %v11694_v44 }
 0xa3d   :  { %6954 = vmatpush1.bf16.msra.mxu1 %v12098_v24  ;;  %v12121_v24 = vld [vmem:[#allocation25_spill] sm:$0xff] }
 0xa3e   :  { %6955 = vmatprep.subr.bf16.mxu1 %v11694_v44 }
 0xa41   :  { %6957 = vmatpush1.bf16.msra.mxu1 %v12101_v4  ;;  %v12122_v4 = vld [vmem:[#allocation24_spill] sm:$0xff] }
 0xa42   :  { %6958 = vmatprep.subr.bf16.mxu1 %v11694_v44 }
 0xa45   :  { %6960 = vmatpush1.bf16.msra.mxu1 %v12104_v2  ;;  %v12123_v2 = vld [vmem:[#allocation30_spill] sm:$0xff] }
 0xa46   :  { %6961 = vmatprep.subr.bf16.mxu1 %v11694_v44 }
 0xa49   :  { %6963 = vmatpush1.bf16.msra.mxu1 %v12107_v41  ;;  %v12124_v41 = vld [vmem:[#allocation4_spill] sm:$0xff] }
 0xa4a   :  { %6964 = vmatprep.subr.bf16.mxu1 %v11694_v44 }
 0xa4c   :  { %4654 = vmatmul.mubr.f32.vlgmr.msra.gmra.mrb[8].mxu1 %v12108_v22  ;;  %v12146_v22 = vand.u32 4294901760, %v10435_v28  ;;  %v12152_v28 = vand.u32 4294901760, %v10513_v33  ;;  %v12158_v33 = vand.u32 4294901760, %v12102_v43 }
 0xa4d   :  { %4660 = vmatprep.mubr.f32.mxu1 %v12109_v46  ;;  %6966 = vmatpush1.bf16.msra.mxu1 %v12110_v57 }
 0xa4e   :  { %6967 = vmatprep.subr.bf16.mxu1 %v11694_v44 }
 0xa50   :  { %4663 = vmatmul.mubr.f32.gmra.mrb[10].mxu1 %v12111_v25 }
 0xa51   :  { %4669 = vmatprep.mubr.f32.mxu1 %v10900_v26  ;;  %6969 = vmatpush1.bf16.msra.mxu1 %v12112_v16  ;;  %v12139_v26 = vand.u32 4294901760, %v10397_v9  ;;  %v12144_v9 = vand.u32 4294901760, %v10408_v60  ;;  %v12150_v60 = vand.u32 4294901760, %v10473_v55  ;;  %v12156_v55 = vand.u32 4294901760, %v12099_v62  ;;  %v12162_v62 = vld [vmem:[#allocation4_spill] sm:$0xff] }
 0xa52   :  { %6970 = vmatprep.subr.bf16.mxu1 %v11694_v44 }
 0xa54   :  { %4672 = vmatmul.mubr.f32.gmra.mrb[12].mxu1 %v10920_v40  ;;  %v12142_v40 = vand.u32 4294901760, %v10401_v37  ;;  %v12148_v37 = vand.u32 4294901760, %v10450_v5  ;;  %v12154_v5 = vand.u32 4294901760, %v10534_v34  ;;  %v12160_v34 = vand.u32 4294901760, %v12105_v13 }
 0xa55   :  { %4678 = vmatprep.mubr.f32.mxu1 %v10938_v56  ;;  %6972 = vmatpush1.bf16.msra.mxu1 %v12113_v47 }
 0xa56   :  { %6973 = vmatprep.subr.bf16.mxu1 %v11694_v44  ;;  %v7028_v25 = vpack.c.bf16 %v12148_v37, %v12147_v45 }
 0xa58   :  { %4681 = vmatmul.mubr.f32.gmra.mrb[14].mxu1 %v10947_v15 }
 0xa59   :  { %6975 = vmatpush1.bf16.msra.mxu1 %v12114_v29  ;;  %4781 = vmatprep.mubr.f32.mxu1 %v12115_v39  ;;  %v12125_v39 = vld [vmem:[#allocation19_spill] sm:$0xff] }
 0xa5a   :  { %6976 = vmatprep.subr.bf16.mxu1 %v11694_v44 }
 0xa5d   :  { %6978 = vmatpush1.bf16.msra.mxu1 %v12116_v63 }
 0xa5e   :  { %6979 = vmatprep.subr.bf16.mxu1 %v11694_v44 }
 0xa61   :  { %6981 = vmatpush1.bf16.msra.mxu1 %v12117_v49 }
 0xa62   :  { %6982 = vmatprep.subr.bf16.mxu1 %v11694_v44 }
 0xa65   :  { %6984 = vmatpush1.bf16.msra.mxu1 %v12118_v19 }
 0xa66   :  { %6985 = vmatprep.subr.bf16.mxu1 %v11694_v44 }
 0xa69   :  { %6987 = vmatpush1.bf16.msra.mxu1 %v12119_v52 }
 0xa6a   :  { %6988 = vmatprep.subr.bf16.mxu1 %v11694_v44 }
 0xa6d   :  { %6990 = vmatpush1.bf16.msra.mxu1 %v12120_v21 }
 0xa6e   :  { %6991 = vmatprep.subr.bf16.mxu1 %v11694_v44 }
 0xa71   :  { %6993 = vmatpush1.bf16.msra.mxu1 %v12121_v24 }
 0xa72   :  { %6994 = vmatprep.subr.bf16.mxu1 %v11694_v44 }
 0xa75   :  { %6996 = vmatpush1.bf16.msra.mxu1 %v12122_v4 }
 0xa76   :  { %6997 = vmatprep.subr.bf16.mxu1 %v11694_v44 }
 0xa79   :  { %6999 = vmatpush1.bf16.msra.mxu1 %v12123_v2 }
 0xa7a   :  { %7000 = vmatprep.subr.bf16.mxu1 %v11694_v44 }
 0xa7d   :  { %7002 = vmatpush1.bf16.msra.mxu1 %v12124_v41  ;;  %v12131_v41 = vand.u32 4294901760, %v10384_v18  ;;  %v12137_v18 = vand.u32 4294901760, %v10938_v56  ;;  %v7019_v56 = vpack.c.bf16 %v12142_v40, %v12141_v51  ;;  %v5172_v51 = vld [vmem:[%s11282_s3 + $0x18] sm:$0xff] }
 0xa7e   :  { %7003 = vmatprep.subr.bf16.mxu1 %v11694_v44 }
 0xa7f   :  { %v7010_v2 = vpack.c.bf16 %v12131_v41, %v12130_v23  ;;  %v12138_v23 = vand.u32 4294901760, %v10395_v6  ;;  %v12143_v6 = vand.u32 4294901760, %v10403_v27  ;;  %v12149_v27 = vand.u32 4294901760, %v10471_v59 }
 0xa80   :  { %v12155_v59 = vand.u32 4294901760, %v12100_v58 }
 0xa81   :  { %7005 = vmatpush1.bf16.msra.mxu1 %v12125_v39  ;;  %v7022_v61 = vpack.c.bf16 %v12144_v9, %v12143_v6 }
 0xa82   :  { %7006 = vmatprep.subr.bf16.mxu1 %v11694_v44 }
 0xa84   :  { %4785 = vmatmul.mubr.f32.vlgmr.msra.gmra.mrb[8].mxu1 %v12128_v0  ;;  %v12134_v0 = vand.u32 4294901760, %v10386_v12  ;;  %v12140_v12 = vand.u32 4294901760, %v10947_v15  ;;  %v12145_v15 = vand.u32 4294901760, %v10433_v17  ;;  %v12151_v17 = vand.u32 4294901760, %v10507_v20 }
 0xa85   :  { %4792 = vmatprep.mubr.f32.mxu1 %v12129_v54  ;;  %7008 = vmatpush1.bf16.msra.mxu1 %v7007_v30  ;;  %v7016_v30 = vpack.c.bf16 %v12139_v26, %v12138_v23  ;;  %v12157_v20 = vand.u32 4294901760, %v12103_v38 }
 0xa86   :  { %7009 = vmatprep.subr.bf16.mxu1 %v11694_v44  ;;  %v7013_v54 = vpack.c.bf16 %v12135_v53, %v12134_v0  ;;  %v7025_v46 = vpack.c.bf16 %v12146_v22, %v12145_v15  ;;  %v7034_v41 = vpack.c.bf16 %v12152_v28, %v12151_v17  ;;  %v7046_v53 = vpack.c.bf16 %v12160_v34, %v12159_v32 }
 0xa87   :  { %v7043_v0 = vpack.c.bf16 %v12158_v33, %v12157_v20 }
 0xa88   :  { %4796 = vmatmul.mubr.f32.gmra.mrb[10].mxu1 %v12132_v7  ;;  %v7037_v7 = vpack.c.bf16 %v12154_v5, %v12153_v50 }
 0xa89   :  { %4803 = vmatprep.mubr.f32.mxu1 %v12133_v31  ;;  %7011 = vmatpush1.bf16.msra.mxu1 %v7010_v2  ;;  %v7031_v2 = vpack.c.bf16 %v12150_v60, %v12149_v27  ;;  %v7040_v31 = vpack.c.bf16 %v12156_v55, %v12155_v59 }
 0xa8a   :  { %7012 = vmatprep.subr.bf16.mxu1 %v11694_v44 }
 0xa8c   :  { %4807 = vmatmul.mubr.f32.gmra.mrb[12].mxu1 %v12136_v10 }
 0xa8d   :  { %4814 = vmatprep.mubr.f32.mxu1 %v12137_v18  ;;  %7014 = vmatpush1.bf16.msra.mxu1 %v7013_v54 }
 0xa8e   :  { %7015 = vmatprep.subr.bf16.mxu1 %v11694_v44 }
 0xa90   :  { %4818 = vmatmul.mubr.f32.gmra.mrb[14].mxu1 %v12140_v12  ;;  %v5171_v12 = vld [vmem:[%s11282_s3 + $0x10] sm:$0xff] }
 0xa91   :  { %7017 = vmatpush1.bf16.msra.mxu1 %v7016_v30  ;;  %4972 = vmatprep.mubr.f32.mxu1 %v10820_v11  ;;  %v5199_v40 = vand.u32 4294901760, %v5171_v12 }
 0xa92   :  { %7018 = vmatprep.subr.bf16.mxu1 %v11694_v44 }
 0xa93   :  { %v5317_v60 = vsub.f32 %v5171_v12, %v5199_v40 }
 0xa95   :  { %7020 = vmatpush1.bf16.msra.mxu1 %v7019_v56  ;;  %v5202_v56 = vand.u32 4294901760, %v5172_v51  ;;  %v5318_v50 = vand.u32 4294901760, %v5317_v60 }
 0xa96   :  { %7021 = vmatprep.subr.bf16.mxu1 %v11694_v44 }
 0xa97   :  { %v11231_v9 = vpack.c.bf16 %v5202_v56, %v5199_v40  ;;  %v5324_v17 = vsub.f32 %v5172_v51, %v5202_v56  ;;  %v5319_v59 = vsub.f32 %v5317_v60, %v5318_v50 }
 0xa99   :  { %7023 = vmatpush1.bf16.msra.mxu1 %v7022_v61  ;;  %v5325_v5 = vand.u32 4294901760, %v5324_v17  ;;  %v5320_v20 = vand.u32 4294901760, %v5319_v59  ;;  %v11242_v34 = vpack.c.bf16 %v5324_v17, %v5317_v60 }
 0xa9a   :  { %7024 = vmatprep.subr.bf16.mxu1 %v11694_v44 }
 0xa9b   :  { %v7126_v55 = vpack.c.bf16 %v5325_v5, %v5318_v50 }
 0xa9d   :  { %7026 = vmatpush1.bf16.msra.mxu1 %v7025_v46 }
 0xa9e   :  { %7027 = vmatprep.subr.bf16.mxu1 %v11694_v44 }
 0xaa1   :  { %7029 = vmatpush1.bf16.msra.mxu1 %v7028_v25 }
 0xaa2   :  { %7030 = vmatprep.subr.bf16.mxu1 %v11694_v44 }
 0xaa5   :  { %7032 = vmatpush1.bf16.msra.mxu1 %v7031_v2 }
 0xaa6   :  { %7033 = vmatprep.subr.bf16.mxu1 %v11694_v44 }
 0xaa9   :  { %7035 = vmatpush1.bf16.msra.mxu1 %v7034_v41 }
 0xaaa   :  { %7036 = vmatprep.subr.bf16.mxu1 %v11694_v44 }
 0xaad   :  { %7038 = vmatpush1.bf16.msra.mxu1 %v7037_v7 }
 0xaae   :  { %7039 = vmatprep.subr.bf16.mxu1 %v11694_v44 }
 0xab1   :  { %7041 = vmatpush1.bf16.msra.mxu1 %v7040_v31  ;;  %v5326_v31 = vsub.f32 %v5324_v17, %v5325_v5 }
 0xab2   :  { %7042 = vmatprep.subr.bf16.mxu1 %v11694_v44 }
 0xab5   :  { %7044 = vmatpush1.bf16.msra.mxu1 %v7043_v0  ;;  %v5327_v0 = vand.u32 4294901760, %v5326_v31 }
 0xab6   :  { %7045 = vmatprep.subr.bf16.mxu1 %v11694_v44 }
 0xab7   :  { %v7102_v32 = vpack.c.bf16 %v5327_v0, %v5320_v20 }
 0xab9   :  { %7047 = vmatpush1.bf16.msra.mxu1 %v7046_v53 }
 0xaba   :  { %7048 = vmatprep.subr.bf16.mxu1 %v11694_v44 }
 0xabc   :  { %4974 = vmatmul.mubr.f32.vlgmr.msra.gmra.mrb[8].mxu1 %v10835_v1 }
 0xabd   :  { %4979 = vmatprep.mubr.f32.mxu1 %v10856_v48  ;;  %7050 = vmatpush1.bf16.msra.mxu1 %v12110_v57 }
 0xabe   :  { %7051 = vmatprep.subr.bf16.mxu1 %v11694_v44 }
 0xac0   :  { %4981 = vmatmul.mubr.f32.gmra.mrb[10].mxu1 %v10859_v8 }
 0xac1   :  { %4986 = vmatprep.mubr.f32.mxu1 %v10892_v3  ;;  %7053 = vmatpush1.bf16.msra.mxu1 %v12112_v16 }
 0xac2   :  { %7054 = vmatprep.subr.bf16.mxu1 %v11694_v44 }
 0xac4   :  { %4988 = vmatmul.mubr.f32.gmra.mrb[12].mxu1 %v10913_v14 }
 0xac5   :  { %4993 = vmatprep.mubr.f32.mxu1 %v10932_v36  ;;  %7056 = vmatpush1.bf16.msra.mxu1 %v12113_v47 }
 0xac6   :  { %7057 = vmatprep.subr.bf16.mxu1 %v11694_v44 }
 0xac8   :  { %4995 = vmatmul.mubr.f32.gmra.mrb[14].mxu1 %v10942_v42 }
 0xac9   :  { %7059 = vmatpush1.bf16.msra.mxu1 %v12114_v29  ;;  %5093 = vmatprep.mubr.f32.mxu1 %v10820_v11  ;;  %v12161_v11 = vld [vmem:[#allocation30_spill] sm:$0xff] }
 0xaca   :  { %7060 = vmatprep.subr.bf16.mxu1 %v11694_v44 }
 0xacd   :  { %7062 = vmatpush1.bf16.msra.mxu1 %v12116_v63 }
 0xace   :  { %7063 = vmatprep.subr.bf16.mxu1 %v11694_v44 }
 0xad1   :  { %7065 = vmatpush1.bf16.msra.mxu1 %v12117_v49 }
 0xad2   :  { %7066 = vmatprep.subr.bf16.mxu1 %v11694_v44 }
 0xad5   :  { %7068 = vmatpush1.bf16.msra.mxu1 %v12118_v19 }
 0xad6   :  { %7069 = vmatprep.subr.bf16.mxu1 %v11694_v44 }
 0xad9   :  { %7071 = vmatpush1.bf16.msra.mxu1 %v12119_v52 }
 0xada   :  { %7072 = vmatprep.subr.bf16.mxu1 %v11694_v44 }
 0xadd   :  { %7074 = vmatpush1.bf16.msra.mxu1 %v12120_v21 }
 0xade   :  { %7075 = vmatprep.subr.bf16.mxu1 %v11694_v44 }
 0xae1   :  { %7077 = vmatpush1.bf16.msra.mxu1 %v12121_v24 }
 0xae2   :  { %7078 = vmatprep.subr.bf16.mxu1 %v11694_v44 }
 0xae5   :  { %7080 = vmatpush1.bf16.msra.mxu1 %v12122_v4  ;;  %v5169_v4 = vld [vmem:[%s11282_s3] sm:$0xff] }
 0xae6   :  { %7081 = vmatprep.subr.bf16.mxu1 %v11694_v44  ;;  %v5193_v54 = vand.u32 4294901760, %v5169_v4 }
 0xae8   :  { %v5303_v61 = vsub.f32 %v5169_v4, %v5193_v54 }
 0xae9   :  { %7083 = vmatpush1.bf16.msra.mxu1 %v12161_v11 }
 0xaea   :  { %7084 = vmatprep.subr.bf16.mxu1 %v11694_v44  ;;  %v5304_v46 = vand.u32 4294901760, %v5303_v61 }
 0xaec   :  { %v5305_v25 = vsub.f32 %v5303_v61, %v5304_v46 }
 0xaed   :  { %7086 = vmatpush1.bf16.msra.mxu1 %v12162_v62  ;;  %v12163_v62 = vld [vmem:[#allocation20_spill] sm:$0xff] }
 0xaee   :  { %7087 = vmatprep.subr.bf16.mxu1 %v11694_v44  ;;  %v5940_v44 = vld [vmem:[%s11281_s2 + $0x3] ss:$0 sm:$0xff]  ;;  %v5306_v28 = vand.u32 4294901760, %v5305_v25 }
 0xaf1   :  { %7089 = vmatpush1.bf16.msra.mxu1 %v12125_v39  ;;  %v5170_v39 = vld [vmem:[%s11282_s3 + $0x8] sm:$0xff] }
 0xaf2   :  { %v5196_v10 = vand.u32 4294901760, %v5170_v39 }
 0xaf4   :  { %5095 = vmatmul.mubr.f32.vlgmr.msra.gmra.mrb[8].mxu1 %v10835_v1  ;;  %v11218_v30 = vpack.c.bf16 %v5196_v10, %v5193_v54  ;;  %v5310_v15 = vsub.f32 %v5170_v39, %v5196_v10  ;;  %v12166_v54 = vld [vmem:[#allocation13_spill] sm:$0xff] }
 0xaf5   :  { %5100 = vmatprep.mubr.f32.mxu1 %v10856_v48 }
 0xaf6   :  { %7091 = vmatprep.subr.bf16.mxu1 %v11218_v30  ;;  %7115 = vmatprep.subr.bf16.mxu0 %v11218_v30  ;;  %v5311_v45 = vand.u32 4294901760, %v5310_v15  ;;  %v11240_v33 = vpack.c.bf16 %v5310_v15, %v5303_v61 }
 0xaf7   :  { %7093 = vmatpush3.bf16.msra.mxu1 %v11218_v30  ;;  %7117 = vmatpush3.bf16.msra.mxu0 %v11218_v30 }
 0xaf8   :  { %5102 = vmatmul.mubr.f32.gmra.mrb[10].mxu1 %v10859_v8  ;;  %7119 = vmatprep.subr.bf16.mxu0 %v11231_v9  ;;  %v7122_v37 = vpack.c.bf16 %v5311_v45, %v5304_v46  ;;  %v5312_v27 = vsub.f32 %v5310_v15, %v5311_v45  ;;  %v5945_v46 = vld [vmem:[%s11283_s4] ss:$0 sm:$0xff] }
 0xaf9   :  { %5107 = vmatprep.mubr.f32.mxu1 %v10892_v3  ;;  %7095 = vmatprep.subr.bf16.mxu1 %v11231_v9 }
 0xafa   :  { %v5313_v41 = vand.u32 4294901760, %v5312_v27 }
 0xafb   :  { %7121 = vmatpush3.bf16.msra.mxu0 %v11231_v9  ;;  %7097 = vmatpush3.bf16.msra.mxu1 %v11231_v9 }
 0xafc   :  { %5109 = vmatmul.mubr.f32.gmra.mrb[12].mxu1 %v10913_v14  ;;  %7123 = vmatprep.subr.bf16.mxu0 %v7122_v37  ;;  %v7098_v7 = vpack.c.bf16 %v5313_v41, %v5306_v28 }
 0xafd   :  { %5114 = vmatprep.mubr.f32.mxu1 %v10932_v36 }
 0xafe   :  { %7099 = vmatprep.subr.bf16.mxu1 %v7098_v7 }
 0xb00   :  { %5116 = vmatmul.mubr.f32.gmra.mrb[14].mxu1 %v10942_v42 }
 0xbc7   :  { %v5096_v58 = vpop.f32.mrb[8].mxu1 }
 0xbc8   :  { %v11200_v43 = vadd.f32 %v5940_v44, %v5096_v58  ;;  %v5098_v1 = vpop.f32.mrb[9].mxu1 }
 0xbca   :  { %v5941_v48 = vmul.f32 -1.442695, %v11200_v43 }
 0xbcb   :  { %v5103_v38 = vpop.f32.mrb[10].mxu1 }
 0xbcc   :  { %7391 = vpow2.f32 %v5941_v48  ;;  %v11203_v8 = vadd.f32 %v5940_v44, %v5103_v38  ;;  %v5105_v3 = vpop.f32.mrb[11].mxu1 }
 0xbcd   :  { %v12164_v3 = vld [vmem:[#allocation17_spill] sm:$0xff] }
 0xbce   :  { %v5942_v14 = vmul.f32 -1.442695, %v11203_v8 }
 0xbcf   :  { %v5110_v36 = vpop.f32.mrb[12].mxu1 }
 0xbd0   :  { %7393 = vpow2.f32 %v5942_v14  ;;  %v11206_v42 = vadd.f32 %v5940_v44, %v5110_v36  ;;  %v5112_v13 = vpop.f32.mrb[13].mxu1 }
 0xbd2   :  { %v5943_v35 = vmul.f32 -1.442695, %v11206_v42 }
 0xbd3   :  { %v5117_v57 = vpop.f32.mrb[14].mxu1 }
 0xbd4   :  { %7395 = vpow2.f32 %v5943_v35  ;;  %v11209_v16 = vadd.f32 %v5940_v44, %v5117_v57  ;;  %v5119_v47 = vpop.f32.mrb[15].mxu1 }
 0xbd6   :  { %v7392_v29 = vpop.eup %7391  ;;  %v5944_v63 = vmul.f32 -1.442695, %v11209_v16 }
 0xbd7   :  { %v5133_v49 = vadd.f32 1.0, %v7392_v29 }
 0xbd8   :  { %7397 = vpow2.f32 %v5944_v63  ;;  %v12165_v63 = vld [vmem:[#allocation22_spill] sm:$0xff] }
 0xbd9   :  { %7399 = vrcp.f32 %v5133_v49 }
 0xbda   :  { %v7394_v19 = vpop.eup %7393 }
 0xbdb   :  { %v5134_v52 = vadd.f32 1.0, %v7394_v19 }
 0xbdd   :  { %7401 = vrcp.f32 %v5134_v52 }
 0xbde   :  { %v7396_v21 = vpop.eup %7395 }
 0xbdf   :  { %v5135_v24 = vadd.f32 1.0, %v7396_v21 }
 0xbe1   :  { %7403 = vrcp.f32 %v5135_v24 }
 0xbe2   :  { %v7398_v18 = vpop.eup %7397 }
 0xbe3   :  { %v7400_v23 = vpop.eup %7399  ;;  %v5136_v26 = vadd.f32 1.0, %v7398_v18 }
 0xbe4   :  { %5149 = vrot.lane.b32.xlu0 %v7400_v23, %s7431_s11 }
 0xbe5   :  { %7405 = vrcp.f32 %v5136_v26 }
 0xbe7   :  { %v7402_v6 = vpop.eup %7401 }
 0xbe8   :  { %5151 = vrot.lane.b32.xlu1 %v7402_v6, %s7431_s11 }
 0xbeb   :  { %v7404_v22 = vpop.eup %7403 }
 0xbec   :  { %5153 = vrot.lane.b32.xlu0 %v7404_v22, %s7431_s11 }
 0xbef   :  { %v7406_v2 = vpop.eup %7405 }
 0xbf0   :  { %5155 = vrot.lane.b32.xlu1 %v7406_v2, %s7431_s11 }
 0xc56   :  { %v5150_v53 = vpop.permute.xlu0 %5149 }
 0xc57   :  { %v5161_v11 = vmul.f32 %v11200_v43, %v5150_v53 }
 0xc59   :  { %v5165_v44 = vadd.f32 %v5161_v11, %v12163_v62 }
 0xc5a   :  { %v5152_v58 = vpop.permute.xlu1 %5151 }
 0xc5b   :  { %v5181_v1 = vsel %vm182_vm6, %v5165_v44, 0  ;;  %v5162_v48 = vmul.f32 %v11203_v8, %v5152_v58 }
 0xc5c   :  { %v5261_v38 = vand.u32 4294901760, %v5181_v1 }
 0xc5d   :  { %v5166_v14 = vadd.f32 %v5162_v48, %v12164_v3 }
 0xc5e   :  { %v5262_v36 = vsub.f32 %v5181_v1, %v5261_v38  ;;  %v5154_v13 = vpop.permute.xlu0 %5153 }
 0xc5f   :  { %v5184_v35 = vsel %vm182_vm6, %v5166_v14, 0  ;;  %v5163_v57 = vmul.f32 %v11206_v42, %v5154_v13 }
 0xc60   :  { %v5271_v47 = vand.u32 4294901760, %v5184_v35  ;;  %v5263_v29 = vand.u32 4294901760, %v5262_v36 }
 0xc61   :  { %v5167_v43 = vadd.f32 %v5163_v57, %v12165_v63 }
 0xc62   :  { %v5272_v49 = vsub.f32 %v5184_v35, %v5271_v47  ;;  %v5156_v19 = vpop.permute.xlu1 %5155  ;;  %6048 = vmatprep.mubr.f32.mxu0 %v5263_v29  ;;  %v5264_v52 = vsub.f32 %v5262_v36, %v5263_v29 }
 0xc63   :  { %v5187_v21 = vsel %vm182_vm6, %v5167_v43, 0  ;;  %v5164_v8 = vmul.f32 %v11209_v16, %v5156_v19 }
 0xc64   :  { %v5273_v24 = vand.u32 4294901760, %v5272_v49  ;;  %v5281_v4 = vand.u32 4294901760, %v5187_v21  ;;  %v5265_v39 = vand.u32 4294901760, %v5264_v52 }
 0xc65   :  { %v5168_v10 = vadd.f32 %v5164_v8, %v12166_v54 }
 0xc66   :  { %v5274_v18 = vsub.f32 %v5272_v49, %v5273_v24  ;;  %v5282_v23 = vsub.f32 %v5187_v21, %v5281_v4  ;;  %6006 = vmatprep.mubr.f32.mxu1 %v5265_v39  ;;  %6049 = vmatmul.mubr.f32.vlgmr.msra.gmra.mrb[16].mxu0 %v5273_v24 }
 0xc67   :  { %v5190_v42 = vsel %vm182_vm6, %v5168_v10, 0  ;;  %7125 = vmatpush3.bf16.msra.mxu0 %v7122_v37 }
 0xc68   :  { %v5275_v26 = vand.u32 4294901760, %v5274_v18  ;;  %v5291_v12 = vand.u32 4294901760, %v5190_v42  ;;  %v5283_v51 = vand.u32 4294901760, %v5282_v23  ;;  %7127 = vmatprep.subr.bf16.mxu0 %v7126_v55 }
 0xc6a   :  { %v5292_v40 = vsub.f32 %v5190_v42, %v5291_v12  ;;  %6007 = vmatmul.mubr.f32.vlgmr.msra.gmra.mrb[16].mxu1 %v5275_v26  ;;  %6051 = vmatprep.mubr.f32.mxu0 %v5283_v51  ;;  %v5284_v16 = vsub.f32 %v5282_v23, %v5283_v51 }
 0xc6b   :  { %7101 = vmatpush3.bf16.msra.mxu1 %v7098_v7  ;;  %7129 = vmatpush3.bf16.msra.mxu0 %v7126_v55 }
 0xc6c   :  { %v5285_v56 = vand.u32 4294901760, %v5284_v16  ;;  %v5293_v6 = vand.u32 4294901760, %v5292_v40  ;;  %7103 = vmatprep.subr.bf16.mxu1 %v7102_v32  ;;  %7131 = vmatprep.subr.bf16.mxu0 %v11218_v30 }
 0xc6e   :  { %6009 = vmatprep.mubr.f32.mxu1 %v5285_v56  ;;  %6052 = vmatmul.mubr.f32.gmra.mrb[18].mxu0 %v5293_v6  ;;  %v5294_v61 = vsub.f32 %v5292_v40, %v5293_v6 }
 0xc6f   :  { %6062 = vmatprep.mubr.f32.mxu0 %v5261_v38  ;;  %7105 = vmatpush3.bf16.msra.mxu1 %v7102_v32 }
 0xc70   :  { %v5295_v15 = vand.u32 4294901760, %v5294_v61  ;;  %7107 = vmatprep.subr.bf16.mxu1 %v11240_v33 }
 0xc72   :  { %6010 = vmatmul.mubr.f32.gmra.mrb[18].mxu1 %v5295_v15  ;;  %6063 = vmatmul.mubr.f32.vlgmr.msra.gmra.mrb[16].mxu0 %v5271_v47 }
 0xc73   :  { %6020 = vmatprep.mubr.f32.mxu1 %v5261_v38  ;;  %6065 = vmatprep.mubr.f32.mxu0 %v5281_v4 }
 0xc74   :  { %7133 = vmatpush3.bf16.msra.mxu0 %v11218_v30 }
 0xc75   :  { %7135 = vmatprep.subr.bf16.mxu0 %v11231_v9 }
 0xc76   :  { %6021 = vmatmul.mubr.f32.vlgmr.msra.gmra.mrb[16].mxu1 %v5271_v47  ;;  %6066 = vmatmul.mubr.f32.gmra.mrb[18].mxu0 %v5291_v12 }
 0xc77   :  { %7109 = vmatpush3.bf16.msra.mxu1 %v11240_v33  ;;  %6023 = vmatprep.mubr.f32.mxu1 %v5281_v4 }
 0xc78   :  { %7137 = vmatpush3.bf16.msra.mxu0 %v11231_v9  ;;  %6076 = vmatprep.mubr.f32.mxu0 %v5261_v38 }
 0xc79   :  { %7111 = vmatprep.subr.bf16.mxu1 %v11242_v34 }
 0xc7a   :  { %6024 = vmatmul.mubr.f32.gmra.mrb[18].mxu1 %v5291_v12 }
 0xc7b   :  { %7113 = vmatpush3.bf16.msra.mxu1 %v11242_v34  ;;  %6077 = vmatmul.mubr.f32.vlgmr.msra.gmra.mrb[16].mxu0 %v5271_v47 }
 0xc7c   :  { %6034 = vmatprep.mubr.f32.mxu1 %v5262_v36  ;;  %6079 = vmatprep.mubr.f32.mxu0 %v5281_v4 }
 0xc7e   :  { %6035 = vmatmul.mubr.f32.vlgmr.msra.gmra.mrb[16].mxu1 %v5272_v49 }
 0xc7f   :  { %6080 = vmatmul.mubr.f32.gmra.mrb[18].mxu0 %v5291_v12  ;;  %6037 = vmatprep.mubr.f32.mxu1 %v5282_v23 }
 0xc82   :  { %6038 = vmatmul.mubr.f32.gmra.mrb[18].mxu1 %v5292_v40 }
 0xd4e   :  { %v6078_v30 = vpop.f32.mrb[16].mxu0 }
 0xd4f   :  { %v5784_v22 = vpop.f32.mrb[17].mxu0 }
 0xd51   :  { %v6036_v9 = vpop.f32.mrb[16].mxu1 }
 0xd52   :  { %v7154_v45 = vadd.f32 %v6036_v9, %v5945_v46  ;;  %v6081_v37 = vpop.f32.mrb[18].mxu0  ;;  %v5486_v25 = vpop.f32.mrb[17].mxu1 }
 0xd53   :  { %v7156_v27 = vadd.f32 %v5945_v46, %v5486_v25  ;;  %v5796_v60 = vpop.f32.mrb[19].mxu0 }
 0xd54   :  { %v7155_v2 = vadd.f32 %v7154_v45, %v6078_v30 }
 0xd55   :  { %v7157_v17 = vadd.f32 %v7156_v27, %v5784_v22  ;;  %v6039_v28 = vpop.f32.mrb[18].mxu1 }
 0xd56   :  { %v5947_v41 = vmul.f32 -1.442695, %v7155_v2  ;;  %v7158_v50 = vadd.f32 %v6039_v28, %v5945_v46  ;;  %v5500_v5 = vpop.f32.mrb[19].mxu1 }
 0xd57   :  { %v5946_v7 = vmul.f32 -1.442695, %v7157_v17  ;;  %v7160_v59 = vadd.f32 %v5945_v46, %v5500_v5 }
 0xd58   :  { %7407 = vpow2.f32 %v5947_v41  ;;  %v7159_v55 = vadd.f32 %v7158_v50, %v6081_v37 }
 0xd59   :  { %7409 = vpow2.f32 %v5946_v7  ;;  %v7161_v31 = vadd.f32 %v7160_v59, %v5796_v60 }
 0xd5a   :  { %v5949_v20 = vmul.f32 -1.442695, %v7159_v55 }
 0xd5b   :  { %v5948_v33 = vmul.f32 -1.442695, %v7161_v31 }
 0xd5c   :  { %7411 = vpow2.f32 %v5949_v20 }
 0xd5d   :  { %7413 = vpow2.f32 %v5948_v33 }
 0xd62   :  { %v7408_v0 = vpop.eup %7407 }
 0xd63   :  { %v7410_v32 = vpop.eup %7409  ;;  %v5819_v34 = vadd.f32 1.0, %v7408_v0 }
 0xd64   :  { %v5818_v53 = vadd.f32 1.0, %v7410_v32 }
 0xd65   :  { %7415 = vrcp.f32 %v5819_v34 }
 0xd66   :  { %v7412_v11 = vpop.eup %7411  ;;  %7417 = vrcp.f32 %v5818_v53 }
 0xd67   :  { %v7414_v62 = vpop.eup %7413  ;;  %v5821_v44 = vadd.f32 1.0, %v7412_v11 }
 0xd68   :  { %v5820_v58 = vadd.f32 1.0, %v7414_v62 }
 0xd69   :  { %7419 = vrcp.f32 %v5821_v44 }
 0xd6a   :  { %7421 = vrcp.f32 %v5820_v58 }
 0xd6f   :  { %v7416_v1 = vpop.eup %7415 }
 0xd70   :  { %v7418_v48 = vpop.eup %7417  ;;  %5831 = vst [vmem:[%s11284_s5 + $0x8] sm:$0xff] %v7416_v1 }
 0xd71   :  { %5830 = vst [vmem:[%s11284_s5] sm:$0xff] %v7418_v48 }
 0xd73   :  { %v7420_v38 = vpop.eup %7419 }
 0xd74   :  { %v7422_v3 = vpop.eup %7421  ;;  %5833 = vst [vmem:[%s11284_s5 + $0x18] sm:$0xff] %v7420_v38 }
 0xd75   :  { %5832 = vst [vmem:[%s11284_s5 + $0x10] sm:$0xff] %v7422_v3 }

</bundles_post_ra>
